<compile_context>
chip_gen: v7x
topology: tpu7x:2x2x1
jax: 0.10.0
libtpu: 0.0.40
codegen_flags: <defaults>
</compile_context>

<pallas_src>
import math

import jax
import jax.numpy as jnp
from jax.experimental import pallas as pl
from jax.experimental.pallas import tpu as pltpu


def _round_up(x, m):
    return ((x + m - 1) // m) * m


def _make_fc_gat_kernel(mxu_dtype, neg_slope=0.2):
    def kernel(x_ref, mcol_ref, w_ref, b_ref, al_ref, ar_ref, ab_ref, out_ref):
        bt, e, in_dim = x_ref.shape
        out_dim = w_ref.shape[1]

        # --- W projection: fold the Bt graphs into the MXU M dimension ------------------
        # E is padded to a multiple of 16 on the host, so this reshape is a free view.
        x2 = x_ref[...].reshape(bt * e, in_dim)
        h2 = jnp.dot(x2, w_ref[...], preferred_element_type=jnp.float32) + b_ref[...]
        h3 = h2.reshape(bt, e, out_dim)                                    # (Bt, E, d) f32
        # TODO(synk): F.dropout(h, p, training) is identity in eval mode; training-time
        # dropout is not implemented.

        # --- GAT pair scores without the (E, E, 2d) concat -------------------------------
        # a([h_i, h_j]) = h_i . a_left + h_j . a_right + a_bias.  Both reductions run on
        # VPU + XLU; one tiny sublane->lane relayout gives the column orientation
        # (no per-graph M=1 MXU pushes).
        s_row = jnp.sum(h3 * al_ref[...], axis=-1, keepdims=True)          # (Bt, E, 1)
        s_r = jnp.sum(h3 * ar_ref[...], axis=-1, keepdims=True)            # (Bt, E, 1)
        s_col = jnp.swapaxes(s_r, 1, 2)                                    # (Bt, 1, E)
        raw = s_row + s_col + ab_ref[0, 0]                                 # (Bt, E, E)

        # --- fused LeakyReLU(0.2) + fully-connected validity mask ------------------------
        # Reference predicate: (m_i != 0) & (m_j != 0).  Single select, no f32 pair mask.
        m_col = mcol_ref[...]                                              # (Bt, 1, E)
        m_row = jnp.swapaxes(m_col, 1, 2)                                  # (Bt, E, 1)
        valid = (m_row != 0.0) & (m_col != 0.0)                            # (Bt, E, E)
        scores = jnp.where(valid, jnp.maximum(raw, neg_slope * raw), -1e30)

        # --- softmax over neighbors (f32 throughout) --------------------------------------
        scores = scores - jnp.max(scores, axis=-1, keepdims=True)
        p = jnp.exp(scores)
        den = jnp.sum(p, axis=-1, keepdims=True)
        inv = pl.reciprocal(den, approx=True)
        inv = inv * (2.0 - den * inv)          # one Newton step -> f32-accurate reciprocal
        coefs = p * inv
        # TODO(synk): on v6e/v7x the single EUP exp over (Bt,E,E) can become the binding
        # slot once DMA is fixed; a bf16 exp is possible there but unsafe on v5e, so the
        # portable f32 path is kept.

        # --- aggregate masked node features (bf16 MXU operands, f32 accumulation) ---------
        h_m = h3 * m_row
        out = jnp.einsum("bij,bjd->bid",
                         coefs.astype(mxu_dtype), h_m.astype(mxu_dtype),
                         preferred_element_type=jnp.float32)
        out_ref[...] = out.astype(out_ref.dtype)

    return kernel


def _vmem_limit_bytes():
    """Generation-aware VMEM limit (~70% of capacity: ~45 MiB v7x, ~90 MiB v5e/v6e)."""
    try:
        cap = int(pltpu.get_tpu_info().vmem_capacity_bytes)
        if cap <= 0:
            raise ValueError
    except Exception:
        cap = 64 << 20                      # conservative fallback (v7x per-TC VMEM)
    return max(32 << 20, min(int(0.70 * cap), 112 << 20))


def _pick_block_batch(n, e, in_dim, out_dim, x_bytes, out_bytes, budget, target_rows=512):
    """Largest useful divisor of n, capped at n//2 (keep grid >= 2 for v7x 2-TC sharding),
    that fits an explicit per-step VMEM working-set estimate."""
    if n <= 1:
        return 1
    divisors = [d for d in range(1, n // 2 + 1) if n % d == 0]

    def est(bt):
        xb = 2 * bt * e * in_dim * x_bytes                      # double-buffered input
        ob = 2 * bt * e * out_dim * out_bytes                   # double-buffered output
        mb = 2 * bt * 8 * max(e, 128) * 4                       # padded mask block
        wb = 2 * (in_dim * out_dim * x_bytes + 4 * out_dim * 4)  # resident weights/vectors
        hb = bt * e * out_dim * (2 * 4 + 2 * x_bytes)           # h3 / h_m (+ bf16 copies)
        sb = 4 * bt * e * e * 4 + bt * e * e * x_bytes          # raw/scores/p/coefs temps
        return xb + ob + mb + wb + hb + sb

    fits = [d for d in divisors if est(d) <= budget]
    if not fits:
        return 1
    for d in fits:                           # smallest block reaching the row target
        if d * e >= target_rows:
            return d
    return fits[-1]                          # else the biggest that still fits


def fc_gat_self_attention(input_state, adj, node_mask, params, *,
                          use_bf16_mxu=True, out_dtype=None, block_batch=None):
    """Forward of FullyConnectedGATSelfAttention (q_attn=False, eval mode).

    input_state: (N, E, in_dim); adj: (N, E, E) (values never used -- the module only
    consumes torch.ones_like(adj)); node_mask: (N, E, 1) or (N, E).
    Returns (N, E, out_dim) in `out_dtype` (defaults to input dtype).
    """
    # TODO(synk): the q_attn=True branch (query-gated a-weights via qattn_W1/W2) is not
    # implemented; the module's constructor default is q_attn=False.
    del adj  # the module builds ones_like(adj); adj values never affect the output
    n, e, in_dim = input_state.shape
    out_dim = params["W_w"].shape[1]
    if out_dtype is None:
        out_dtype = input_state.dtype

    mxu_dtype = jnp.bfloat16 if use_bf16_mxu else jnp.float32
    x_bytes = jnp.dtype(mxu_dtype).itemsize
    out_bytes = jnp.dtype(out_dtype).itemsize

    # --- host-side padding: E -> mult of 16 (free sublane merge), out_dim -> mult of 128
    # (lane-dense stores).  Padded nodes carry mask 0, padded feature columns are zero.
    e_p = _round_up(e, 16)
    out_p = _round_up(out_dim, 128)

    x = input_state
    if e_p != e:
        x = jnp.pad(x, ((0, 0), (0, e_p - e), (0, 0)))
    m = node_mask.reshape(n, e).astype(jnp.float32)
    if e_p != e:
        m = jnp.pad(m, ((0, 0), (0, e_p - e)))
    mask_col = m.reshape(n, 1, e_p)                    # single lane-dense mask stream

    w = params["W_w"]
    b = params["W_b"]
    a_l = params["a_w"][:out_dim]
    a_r = params["a_w"][out_dim:]
    if out_p != out_dim:
        w = jnp.pad(w, ((0, 0), (0, out_p - out_dim)))
        b = jnp.pad(b, (0, out_p - out_dim))
        a_l = jnp.pad(a_l, (0, out_p - out_dim))
        a_r = jnp.pad(a_r, (0, out_p - out_dim))

    x = x.astype(mxu_dtype)
    w = w.astype(mxu_dtype)
    b2 = b.reshape(1, out_p).astype(jnp.float32)
    a_l2 = a_l.reshape(1, out_p).astype(jnp.float32)
    a_r2 = a_r.reshape(1, out_p).astype(jnp.float32)
    a_b2 = params["a_b"].reshape(1, 1).astype(jnp.float32)

    vmem_limit = _vmem_limit_bytes()
    if block_batch is None:
        bt = _pick_block_batch(n, e_p, in_dim, out_p, x_bytes, out_bytes,
                               budget=int(0.8 * vmem_limit))
    else:
        bt = block_batch
    assert n % bt == 0, "block_batch must divide the batch size"

    const = lambda g: (0, 0)
    out = pl.pallas_call(
        _make_fc_gat_kernel(mxu_dtype),
        out_shape=jax.ShapeDtypeStruct((n, e_p, out_p), out_dtype),
        grid_spec=pltpu.PrefetchScalarGridSpec(
            num_scalar_prefetch=0,
            grid=(n // bt,),
            in_specs=[
                pl.BlockSpec((bt, e_p, in_dim), lambda g: (g, 0, 0)),  # input_state
                pl.BlockSpec((bt, 1, e_p), lambda g: (g, 0, 0)),       # node mask (cols)
                pl.BlockSpec((in_dim, out_p), const),                  # W (resident)
                pl.BlockSpec((1, out_p), const),                       # W bias
                pl.BlockSpec((1, out_p), const),                       # a_left
                pl.BlockSpec((1, out_p), const),                       # a_right
                pl.BlockSpec((1, 1), const),                           # a bias
            ],
            out_specs=pl.BlockSpec((bt, e_p, out_p), lambda g: (g, 0, 0)),
        ),
        compiler_params=pltpu.CompilerParams(
            dimension_semantics=("parallel",),                         # shards across TCs
            vmem_limit_bytes=vmem_limit),
    )(x, mask_col, w, b2, a_l2, a_r2, a_b2)

    if e_p != e or out_p != out_dim:
        out = out[:, :e, :out_dim]
    return out


def init_params(key, in_dim, out_dim):
    """Deterministic synthetic parameters matching the PyTorch module's layer shapes."""
    k1, k2, k3, k4 = jax.random.split(key, 4)
    bw = 1.0 / math.sqrt(in_dim)
    ba = 1.0 / math.sqrt(2 * out_dim)
    return {
        "W_w": jax.random.uniform(k1, (in_dim, out_dim), jnp.float32, -bw, bw),
        "W_b": jax.random.uniform(k2, (out_dim,), jnp.float32, -bw, bw),
        "a_w": jax.random.uniform(k3, (2 * out_dim,), jnp.float32, -ba, ba),
        "a_b": jax.random.uniform(k4, (), jnp.float32, -ba, ba),
    }


def reference(input_state, adj, node_mask, params):
    """Pure-JAX reference of the PyTorch forward (q_attn=False, eval mode)."""
    del adj
    n, e, _ = input_state.shape
    out_dim = params["W_w"].shape[1]
    hp = jax.lax.Precision.HIGHEST
    h = jnp.einsum("nei,io->neo", input_state, params["W_w"], precision=hp) + params["W_b"]
    a_l, a_r = params["a_w"][:out_dim], params["a_w"][out_dim:]
    s_l = jnp.einsum("neo,o->ne", h, a_l, precision=hp)
    s_r = jnp.einsum("neo,o->ne", h, a_r, precision=hp)
    raw = s_l[:, :, None] + s_r[:, None, :] + params["a_b"]
    scores = jnp.where(raw > 0, raw, 0.2 * raw)                       # LeakyReLU(0.2)
    m = node_mask.reshape(n, e)
    ok = (m[:, :, None] != 0) & (m[:, None, :] != 0)
    scores = jnp.where(ok, scores, -1e30)
    coefs = jax.nn.softmax(scores, axis=-1)
    h_m = h * m[:, :, None].astype(h.dtype)
    return jnp.einsum("nij,njo->nio", coefs, h_m, precision=hp)


if __name__ == "__main__":
    # Small shapes consistent with the module (real model: ~105 nodes per graph).
    N, E = 32, 16
    IN_DIM, OUT_DIM = 64, 128                     # lane-dense output features

    key = jax.random.PRNGKey(0)
    k_x, k_adj, k_m, k_p = jax.random.split(key, 4)

    x = jax.random.normal(k_x, (N, E, IN_DIM), jnp.float32)
    adj = jax.random.bernoulli(k_adj, 0.5, (N, E, E)).astype(jnp.float32)   # values unused
    node_mask = jax.random.bernoulli(k_m, 0.75, (N, E)).astype(jnp.float32).reshape(N, E, 1)
    params = init_params(k_p, IN_DIM, OUT_DIM)

    ref = reference(x, adj, node_mask, params)

    # Default path: bf16 MXU operands, f32 accumulation, f32 output.
    out = jax.block_until_ready(fc_gat_self_attention(x, adj, node_mask, params))
    assert out.shape == (N, E, OUT_DIM) and out.dtype == jnp.float32
    assert jnp.allclose(out, ref, atol=1.5e-1, rtol=1.5e-1), "bf16-MXU kernel mismatch"

    # f32 MXU path (tight numerical check).
    out_f32 = jax.block_until_ready(
        fc_gat_self_attention(x, adj, node_mask, params, use_bf16_mxu=False))
    assert jnp.allclose(out_f32, ref, atol=2e-2, rtol=2e-2), "f32 kernel mismatch"

    # bf16 output stream (halved HBM writeback) -- looser tolerance by construction.
    out_bf16 = jax.block_until_ready(
        fc_gat_self_attention(x, adj, node_mask, params, out_dtype=jnp.bfloat16))
    assert out_bf16.dtype == jnp.bfloat16
    assert jnp.allclose(out_bf16.astype(jnp.float32), ref, atol=2.5e-1, rtol=2.5e-1), \
        "bf16-output kernel mismatch"

    print("KERNEL_OK")
</pallas_src>

<mosaic_0001>
module attributes {stable_mosaic.version = 11 : i64} {
  func.func @kernel(%arg0: i32, %arg1: memref<16x16x64xbf16, #tpu.memory_space<vmem>>, %arg2: memref<16x1x16xf32, #tpu.memory_space<vmem>>, %arg3: memref<64x128xbf16, #tpu.memory_space<vmem>>, %arg4: memref<1x128xf32, #tpu.memory_space<vmem>>, %arg5: memref<1x128xf32, #tpu.memory_space<vmem>>, %arg6: memref<1x128xf32, #tpu.memory_space<vmem>>, %arg7: memref<1x1xf32, #tpu.memory_space<vmem>>, %arg8: memref<16x16x128xf32, #tpu.memory_space<vmem>>) attributes {dimension_semantics = [#tpu.dimension_semantics<parallel>], iteration_bounds = array<i64: 2>, scalar_prefetch = 0 : i64, scratch_operands = 0 : i64, tpu.core_type = #tpu.core_type<tc>, window_params = [{transform_indices = @transform_0, window_bounds = array<i64: 16, 16, 64>}, {transform_indices = @transform_1, window_bounds = array<i64: 16, 1, 16>}, {pipeline_mode = #tpu.pipeline_mode<synchronous>, transform_indices = @transform_2, window_bounds = array<i64: 64, 128>}, {pipeline_mode = #tpu.pipeline_mode<synchronous>, transform_indices = @transform_3, window_bounds = array<i64: 1, 128>}, {pipeline_mode = #tpu.pipeline_mode<synchronous>, transform_indices = @transform_4, window_bounds = array<i64: 1, 128>}, {pipeline_mode = #tpu.pipeline_mode<synchronous>, transform_indices = @transform_5, window_bounds = array<i64: 1, 128>}, {pipeline_mode = #tpu.pipeline_mode<synchronous>, transform_indices = @transform_6, window_bounds = array<i64: 1, 1>}, {transform_indices = @transform_7, window_bounds = array<i64: 16, 16, 128>}]} {
    %c0 = arith.constant 0 : index
    %c0_0 = arith.constant 0 : index
    %c0_1 = arith.constant 0 : index
    %0 = vector.load %arg1[%c0, %c0_0, %c0_1] : memref<16x16x64xbf16, #tpu.memory_space<vmem>>, vector<16x16x64xbf16>
    %1 = vector.shape_cast %0 : vector<16x16x64xbf16> to vector<256x64xbf16>
    %c0_2 = arith.constant 0 : index
    %c0_3 = arith.constant 0 : index
    %2 = vector.load %arg3[%c0_2, %c0_3] : memref<64x128xbf16, #tpu.memory_space<vmem>>, vector<64x128xbf16>
    %cst = arith.constant dense<0.000000e+00> : vector<256x128xf32>
    %3 = tpu.matmul %1, %2, %cst {dimension_numbers = #tpu.dot_dimension_numbers<[1], [0], [0], [1], [0, 0, 1, 1], [], []>} : vector<256x64xbf16>, vector<64x128xbf16>, vector<256x128xf32> -> vector<256x128xf32>
    %c0_4 = arith.constant 0 : index
    %c0_5 = arith.constant 0 : index
    %4 = vector.load %arg4[%c0_4, %c0_5] : memref<1x128xf32, #tpu.memory_space<vmem>>, vector<1x128xf32>
    %5 = vector.broadcast %4 : vector<1x128xf32> to vector<256x128xf32>
    %6 = arith.addf %3, %5 : vector<256x128xf32>
    %7 = vector.shape_cast %6 : vector<256x128xf32> to vector<16x16x128xf32>
    %c0_6 = arith.constant 0 : index
    %c0_7 = arith.constant 0 : index
    %8 = vector.load %arg5[%c0_6, %c0_7] : memref<1x128xf32, #tpu.memory_space<vmem>>, vector<1x128xf32>
    %9 = vector.shape_cast %8 : vector<1x128xf32> to vector<1x1x128xf32>
    %10 = vector.broadcast %9 : vector<1x1x128xf32> to vector<16x16x128xf32>
    %11 = arith.mulf %7, %10 : vector<16x16x128xf32>
    %cst_8 = arith.constant dense<0.000000e+00> : vector<16x16xf32>
    %12 = vector.multi_reduction <add>, %11, %cst_8 [2] : vector<16x16x128xf32> to vector<16x16xf32>
    %13 = vector.shape_cast %12 : vector<16x16xf32> to vector<16x16x1xf32>
    %c0_9 = arith.constant 0 : index
    %c0_10 = arith.constant 0 : index
    %14 = vector.load %arg6[%c0_9, %c0_10] : memref<1x128xf32, #tpu.memory_space<vmem>>, vector<1x128xf32>
    %15 = vector.shape_cast %14 : vector<1x128xf32> to vector<1x1x128xf32>
    %16 = vector.broadcast %15 : vector<1x1x128xf32> to vector<16x16x128xf32>
    %17 = arith.mulf %7, %16 : vector<16x16x128xf32>
    %cst_11 = arith.constant dense<0.000000e+00> : vector<16x16xf32>
    %18 = vector.multi_reduction <add>, %17, %cst_11 [2] : vector<16x16x128xf32> to vector<16x16xf32>
    %19 = vector.shape_cast %18 : vector<16x16xf32> to vector<16x16x1xf32>
    %20 = tpu.transpose %19, [0, 2, 1] : vector<16x16x1xf32> -> vector<16x1x16xf32>
    %21 = vector.broadcast %13 : vector<16x16x1xf32> to vector<16x16x16xf32>
    %22 = vector.broadcast %20 : vector<16x1x16xf32> to vector<16x16x16xf32>
    %23 = arith.addf %21, %22 : vector<16x16x16xf32>
    %c0_12 = arith.constant 0 : index
    %c0_13 = arith.constant 0 : index
    %24 = vector.load %arg7[%c0_12, %c0_13] : memref<1x1xf32, #tpu.memory_space<vmem>>, vector<1x1xf32>
    %25 = vector.extract %24[0, 0] : f32 from vector<1x1xf32>
    %26 = vector.broadcast %25 : f32 to vector<16x16x16xf32>
    %27 = arith.addf %23, %26 : vector<16x16x16xf32>
    %c0_14 = arith.constant 0 : index
    %c0_15 = arith.constant 0 : index
    %c0_16 = arith.constant 0 : index
    %28 = vector.load %arg2[%c0_14, %c0_15, %c0_16] : memref<16x1x16xf32, #tpu.memory_space<vmem>>, vector<16x1x16xf32>
    %29 = tpu.transpose %28, [0, 2, 1] : vector<16x1x16xf32> -> vector<16x16x1xf32>
    %cst_17 = arith.constant 0.000000e+00 : f32
    %30 = vector.broadcast %cst_17 : f32 to vector<16x16x1xf32>
    %31 = arith.cmpf one, %29, %30 : vector<16x16x1xf32>
    %cst_18 = arith.constant 0.000000e+00 : f32
    %32 = vector.broadcast %cst_18 : f32 to vector<16x1x16xf32>
    %33 = arith.cmpf one, %28, %32 : vector<16x1x16xf32>
    %34 = vector.broadcast %31 : vector<16x16x1xi1> to vector<16x16x16xi1>
    %35 = vector.broadcast %33 : vector<16x1x16xi1> to vector<16x16x16xi1>
    %36 = arith.andi %34, %35 : vector<16x16x16xi1>
    %cst_19 = arith.constant 2.000000e-01 : f32
    %37 = vector.broadcast %cst_19 : f32 to vector<16x16x16xf32>
    %38 = arith.mulf %37, %27 : vector<16x16x16xf32>
    %39 = arith.maximumf %27, %38 : vector<16x16x16xf32>
    %cst_20 = arith.constant -1.000000e+30 : f32
    %40 = vector.broadcast %cst_20 : f32 to vector<16x16x16xf32>
    %41 = arith.select %36, %39, %40 : vector<16x16x16xi1>, vector<16x16x16xf32>
    %cst_21 = arith.constant dense<0xFF800000> : vector<16x16xf32>
    %42 = vector.multi_reduction <maximumf>, %41, %cst_21 [2] : vector<16x16x16xf32> to vector<16x16xf32>
    %43 = vector.shape_cast %42 : vector<16x16xf32> to vector<16x16x1xf32>
    %44 = vector.broadcast %43 : vector<16x16x1xf32> to vector<16x16x16xf32>
    %45 = arith.subf %41, %44 : vector<16x16x16xf32>
    %46 = math.exp %45 : vector<16x16x16xf32>
    %cst_22 = arith.constant dense<0.000000e+00> : vector<16x16xf32>
    %47 = vector.multi_reduction <add>, %46, %cst_22 [2] : vector<16x16x16xf32> to vector<16x16xf32>
    %48 = vector.shape_cast %47 : vector<16x16xf32> to vector<16x16x1xf32>
    %49 = tpu.reciprocal %48 {approx = true} : vector<16x16x1xf32> -> vector<16x16x1xf32>
    %50 = arith.mulf %48, %49 : vector<16x16x1xf32>
    %cst_23 = arith.constant 2.000000e+00 : f32
    %51 = vector.broadcast %cst_23 : f32 to vector<16x16x1xf32>
    %52 = arith.subf %51, %50 : vector<16x16x1xf32>
    %53 = arith.mulf %49, %52 : vector<16x16x1xf32>
    %54 = vector.broadcast %53 : vector<16x16x1xf32> to vector<16x16x16xf32>
    %55 = arith.mulf %46, %54 : vector<16x16x16xf32>
    %56 = vector.broadcast %29 : vector<16x16x1xf32> to vector<16x16x128xf32>
    %57 = arith.mulf %7, %56 : vector<16x16x128xf32>
    %58 = arith.truncf %55 : vector<16x16x16xf32> to vector<16x16x16xbf16>
    %59 = arith.truncf %57 : vector<16x16x128xf32> to vector<16x16x128xbf16>
    "tpu.trace_start"() <{level = 10 : i32, message = "bij,bjd->bid"}> : () -> ()
    %cst_24 = arith.constant dense<0.000000e+00> : vector<16x16x128xf32>
    %60 = tpu.matmul %58, %59, %cst_24 {dimension_numbers = #tpu.dot_dimension_numbers<[2], [1], [1], [2], [0, 0, 0, 1, 1, 2], [0], [0]>} : vector<16x16x16xbf16>, vector<16x16x128xbf16>, vector<16x16x128xf32> -> vector<16x16x128xf32>
    "tpu.trace_stop"() : () -> ()
    %c0_25 = arith.constant 0 : index
    %c0_26 = arith.constant 0 : index
    %c0_27 = arith.constant 0 : index
    %61 = vector.load %arg8[%c0_25, %c0_26, %c0_27] : memref<16x16x128xf32, #tpu.memory_space<vmem>>, vector<16x16x128xf32>
    tpu.vector_store %arg8[%c0_25, %c0_26, %c0_27], %60 {strides = array<i32>} : memref<16x16x128xf32, #tpu.memory_space<vmem>>, vector<16x16x128xf32>,
    return
  }
  func.func @transform_0(%arg0: i32) -> (i32, i32, i32) {
    %c0_i32 = arith.constant 0 : i32
    %c0_i32_0 = arith.constant 0 : i32
    %c0_i32_1 = arith.constant 0 : i32
    return %arg0, %c0_i32, %c0_i32_0 : i32, i32, i32
  }
  func.func @transform_1(%arg0: i32) -> (i32, i32, i32) {
    %c0_i32 = arith.constant 0 : i32
    %c0_i32_0 = arith.constant 0 : i32
    %c0_i32_1 = arith.constant 0 : i32
    return %arg0, %c0_i32, %c0_i32_0 : i32, i32, i32
  }
  func.func @transform_2(%arg0: i32) -> (i32, i32) {
    %c0_i32 = arith.constant 0 : i32
    %c0_i32_0 = arith.constant 0 : i32
    %c0_i32_1 = arith.constant 0 : i32
    return %c0_i32, %c0_i32_0 : i32, i32
  }
  func.func @transform_3(%arg0: i32) -> (i32, i32) {
    %c0_i32 = arith.constant 0 : i32
    %c0_i32_0 = arith.constant 0 : i32
    %c0_i32_1 = arith.constant 0 : i32
    return %c0_i32, %c0_i32_0 : i32, i32
  }
  func.func @transform_4(%arg0: i32) -> (i32, i32) {
    %c0_i32 = arith.constant 0 : i32
    %c0_i32_0 = arith.constant 0 : i32
    %c0_i32_1 = arith.constant 0 : i32
    return %c0_i32, %c0_i32_0 : i32, i32
  }
  func.func @transform_5(%arg0: i32) -> (i32, i32) {
    %c0_i32 = arith.constant 0 : i32
    %c0_i32_0 = arith.constant 0 : i32
    %c0_i32_1 = arith.constant 0 : i32
    return %c0_i32, %c0_i32_0 : i32, i32
  }
  func.func @transform_6(%arg0: i32) -> (i32, i32) {
    %c0_i32 = arith.constant 0 : i32
    %c0_i32_0 = arith.constant 0 : i32
    %c0_i32_1 = arith.constant 0 : i32
    return %c0_i32, %c0_i32_0 : i32, i32
  }
  func.func @transform_7(%arg0: i32) -> (i32, i32, i32) {
    %c0_i32 = arith.constant 0 : i32
    %c0_i32_0 = arith.constant 0 : i32
    %c0_i32_1 = arith.constant 0 : i32
    return %arg0, %c0_i32, %c0_i32_0 : i32, i32, i32
  }
}

</mosaic_0001>

<bundles_post_ra>
// kernel: tpu_custom_call.1
= control target key start
LH: loop header
LB: loop body
LE: loop exit
PB: predicated region body
PF: predicated region fallthrough
CT: control target
= control target key end

     0   :  { %s6407_s0 = inlined_call_operand.hbm [shape: bf16[32,16,64], index: 0, kind: input, shape index: {}]   ;;  %s6408_s1 = inlined_call_operand.vmem [shape: f32[32,1,16], index: 1, kind: input, shape index: {}]   ;;  %s6409_s2 = inlined_call_operand.vmem [shape: bf16[64,128], index: 2, kind: input, shape index: {}]   ;;  %s6410_s3 = inlined_call_operand.vmem [shape: f32[1,128], index: 3, kind: input, shape index: {}]   ;;  %s6411_s4 = inlined_call_operand.vmem [shape: f32[1,128], index: 4, kind: input, shape index: {}]   ;;  %s6412_s5 = inlined_call_operand.vmem [shape: f32[1,128], index: 5, kind: input, shape index: {}]   ;;  %s6413_s6 = inlined_call_operand.<no memory space> [shape: f32[1,1], index: 6, kind: input, shape index: {}]   ;;  %s6414_s7 = inlined_call_operand.hbm [shape: f32[32,16,128], index: 7, kind: output, shape index: {}]  }
   0x1   :  { %v12_v0 = vstv %s6413_s6 }
   0x2   :  { %13 = vst [vmem:[#allocation2] sm:$0x1] %v12_v0 }
   0x3   :  { %14 = vsyncpa [#allocation4], 0 }
   0x4   :  { %16 = vsyncpa [#allocation4 + $0x1], 0 }
   0x5   :  { %17 = vsyncpa [#allocation5], 0 }
   0x6   :  { %19 = vsyncpa [#allocation5 + $0x1], 0  ;;  %s4617_s26 = smov 0   ;;  %s4619_s27 = smov 0  }
   0x7   :  { %s4621_s28 = smov 0   ;;  %s4623_s29 = smov 0  }
   0x8 LB: > { %s4638_s6 = sadd.s32 4294967295, %s4563_s29   ;;  %s3998_s30 = sadd.s32 4294967294, %s4563_s29   ;;  %s4563_s29 = sphi %s4623_s29, %s6724_s29   ;;  %s4559_s28 = sphi %s4621_s28, %s6723_s28   ;;  %s4555_s27 = sphi %s4619_s27, %s6722_s27   ;;  %s4551_s26 = sphi %s4617_s26, %s6721_s26  }
   0x9   : > { %s4642_s8 = sadd.s32 1, %s4563_s29   ;;  %s32_s9 = sadd.s32 1, %s4559_s28 }
   0xa   : > { %s29_s10 = ssub.s32 %s4563_s29, %s4642_s8  ;;  %p39_p0 = scmp.ne.s32.totalorder %s4559_s28, %s4555_s27 }
   0xb   : > { %p30_p1 = scmp.eq.s32.totalorder %s29_s10, 0  ;;  %p40_p2 = scmp.eq.s32.totalorder %s4563_s29, 0 }
   0xc   : > { %p45_p3 = scmp.ne.s32.totalorder %s4555_s27, %s4551_s26  ;;  %p46_p4 = scmp.eq.s32.totalorder %s4638_s6, 0 }
   0xd   : > { %s4654_s11 = scalar_select %p30_p1, %s4559_s28, %s32_s9  }
   0xe   : > { %p4656_p5 = por %p40_p2, %p39_p0  ;;  %p4660_p6 = por %p46_p4, %p45_p3 }
   0xf   : > { %p200_p7 = scmp.eq.s32.totalorder %s4638_s6, 1  ;;  %p206_p8 = scmp.eq.s32.totalorder %s3998_s30, 1 }
  0x10   : > { %p4276_p10 = scmp.lt.s32.totalorder %s4563_s29, 2  ;;  %s241_s16 = sand.u32 1, %s4559_s28  }
  0x11   : > { %p4667_p11 = por %p200_p7, %p39_p0  ;;  %p4671_p12 = por %p206_p8, %p45_p3 }
  0x12   : > { %s4071_s17 = sshll.u32 %s4563_s29, 11  ;;  %s4001_s18 = sshll.u32 %s241_s16, 7 }
  0x13   : > { %s6497_s14 = scalar_select %p4667_p11, 1, 0 }
  0x14   : > { %s6498_s15 = scalar_select %p4671_p12, 1, 0 }
  0x15   : > { %s4680_s21 = scalar_lea.hbm %s6407_s0, %s4071_s17  ;;  %s245_s22 = scalar_lea.vmem [#allocation3], %s4001_s18 }
  0x16   : > { %s253_s23 = sshll.u32 %s245_s22, 4  ;;  %p4684_p13 = pnand %p4276_p10, %p4656_p5  ;;  %s4688_s23 = int_to_ptr.vmem [resolvable:$true] %s253_s23 }
  0x17   : > { %s4690_s25 = scalar_lea.sflag [#allocation4], %s241_s16  ;;  %s4467_s30 = scalar_lea.hbm %s4680_s21, 2048 }
  0x18   : > { %p4468_p0 = scmp.ne.s32.totalorder %s4680_s21, %s4467_s30  ;;  %p4469_p1 = pneg %p4684_p13 }
  0x19   : > { %s4472_s12 = scalar_lea.hbm %s6407_s0, 4096  ;;  %p4473_p4 = scmp.lt.u32.totalorder %s4680_s21, %s6407_s0 }
  0x1a   : > { %p4470_p2 = pnand %p4469_p1, %p4468_p0  ;;  %p4474_p5 = scmp.lt.u32.totalorder %s4472_s12, %s4467_s30 }
  0x1b   : > { %p4476_p8 = scmp.lt.u32.totalorder %s4467_s30, %s4680_s21 }
  0x1c   : > { %p4471_p3 = pneg %p4470_p2  ;;  %p4475_p7 = por %p4474_p5, %p4473_p4 }
  0x1e   : > { %p4477_p10 = por %p4476_p8, %p4475_p7 }
  0x20   : > { %p4478_p9 = pnand %p4477_p10, %p4471_p3 }
  0x22   : > { %4481 = shalt.err (!%p4478_p9)
}
  0x23   : > { %s4482_s16 = scalar_lea.vmem %s4688_s23, 2048  ;;  %s4565_s19 = smov [#allocation3]  }
  0x24   : > { %p4483_p0 = scmp.ne.s32.totalorder %s4688_s23, %s4482_s16  ;;  %s4487_s20 = sshll.u32 %s4565_s19, 4  ;;  %s4488_s20 = int_to_ptr.vmem [resolvable:$false] %s4487_s20 }
  0x25   : > { %s4489_s22 = scalar_lea.vmem %s4488_s20, 4096  ;;  %p4490_p11 = scmp.lt.s32.totalorder %s4688_s23, %s4488_s20 }
  0x26   : > { %p4485_p2 = pnand %p4483_p0, %p4469_p1  ;;  %p4491_p4 = scmp.lt.s32.totalorder %s4489_s22, %s4482_s16 }
  0x28   : > { %p4486_p12 = pneg %p4485_p2  ;;  %p4492_p5 = por %p4491_p4, %p4490_p11 }
  0x2a   : > { %p4493_p7 = pnand %p4492_p5, %p4486_p12 }
  0x2c   : > { %4496 = shalt.err (!%p4493_p7)
}
  0x2d   : > { %s4566_s30 = smov 64   ;;  %s4567_s9 = smov 4  }
  0x2e   : > { %4271 = dma.hbm_to_vmem [thread:$0]  (!%p4684_p13), %s4680_s21, 2048, %s4688_s23, %s4690_s25, %s4566_s30, %s4566_s30, %s4567_s9  }
  0x2f   : > { %p4005_p9 = scmp.ge.s32.totalorder %s4563_s29, 1  ;;  %p269_p1 = scmp.lt.s32.totalorder %s4563_s29, 3 }
  0x31   : > { %p270_p3 = pnand %p4005_p9, %p269_p1 }
  0x33   : > { %273 = sbr.rel (%p270_p3) target bundleno = 1682 (0x692), region = 48 }
  0x3a   : > { %s4721_s10 = sand.u32 1, %s4555_s27  }
  0x3b   : > { %s4006_s12 = sshll.u32 %s4721_s10, 7  ;;  %s276_s17 = scalar_lea.sflag [#allocation4], %s4721_s10 }
  0x3c   : > { %s4725_s18 = scalar_lea.vmem [#allocation3], %s4006_s12 }
  0x3d   : > { %4542 = dma.done.wait (%p4660_p6), %s276_s17, 2048  }
  0x3e   : > { %4544 = vsyncadd (%p4660_p6), %s276_s17, 4294965248  ;;  %v4319_v1 = vld [vmem:[%s6409_s2] sm:$0xff]   ;;  %v4320_v2 = vld [vmem:[%s6409_s2 + $0x8] sm:$0xff]   ;;  %vm473_vm0 = vcmask 523264   ;;  %s4008_s13 = sshll.u32 %s4638_s6, 4  ;;  %v6423_v25 = vmov 0  }
  0x3f   : > { %4126 = vmatprep.subr.bf16.mxu0 %v4319_v1  ;;  %v4321_v3 = vld [vmem:[%s6409_s2 + $0x10] sm:$0xff]   ;;  %v4323_v4 = vld [vmem:[%s4725_s18] sm:$0xff]   ;;  %v4322_v5 = vld [vmem:[%s6409_s2 + $0x18] sm:$0xff]   ;;  %p316_p6 = scmp.lt.s32.totalorder %s4008_s13, 31  ;;  %s4007_s19 = sshll.u32 %s4721_s10, 8 }
  0x40   : > { %4127 = vmatpush3.bf16.msra.mxu0 %v4319_v1  ;;  %4134 = vmatprep.mubr.msk.bf16.mxu0 %vm473_vm0, %v4323_v4  ;;  %v4324_v6 = vld [vmem:[%s4725_s18 + $0x8] sm:$0xff]   ;;  %v4325_v7 = vld [vmem:[%s4725_s18 + $0x10] sm:$0xff]   ;;  %v4326_v10 = vld [vmem:[%s4725_s18 + $0x18] sm:$0xff]   ;;  %s4073_s20 = sshll.u32 %s4638_s6, 12  ;;  %s3902_s6 = scalar_lea.sflag [#allocation5], %s4721_s10 }
  0x41   : > { %4128 = vmatprep.subr.bf16.mxu0 %v4320_v2  ;;  %s6726_s13 = smov (!%p316_p6, %s4008_s13), 31  ;;  %v4327_v11 = vld [vmem:[%s4725_s18 + $0x20] sm:$0xff]   ;;  %v4328_v16 = vld [vmem:[%s4725_s18 + $0x28] sm:$0xff]   ;;  %v4329_v17 = vld [vmem:[%s4725_s18 + $0x30] sm:$0xff]   ;;  %p6718_p12 = scmp.ne.s32.totalorder %s6497_s14, 0 }
  0x42   : > { %s4751_s12 = scalar_lea.vmem %s6408_s1, %s6726_s13  ;;  %v4330_v18 = vld [vmem:[%s4725_s18 + $0x38] sm:$0xff]   ;;  %v4331_v19 = vld [vmem:[%s4725_s18 + $0x40] sm:$0xff]   ;;  %v4332_v20 = vld [vmem:[%s4725_s18 + $0x48] sm:$0xff]   ;;  %s6322_s13 = scalar_lea.vmem [#allocation6], %s4007_s19 }
  0x43   : > { %v4756_v8 = vld [vmem:[%s4751_s12] sm:$0x1]  ;;  %v4759_v9 = vld [vmem:[%s4751_s12 + $0x1] sm:$0x1]  ;;  %v4766_v12 = vld [vmem:[%s4751_s12 + $0x2] sm:$0x1] }
  0x44   : > { %4129 = vmatpush3.bf16.msra.mxu0 %v4320_v2  ;;  %1548 = vxpose.xlu0.b32.start.end [1/1] (short) (narrow) %v4756_v8, 16  ;;  %v4769_v13 = vld [vmem:[%s4751_s12 + $0x4] sm:$0x1]  ;;  %v4776_v14 = vld [vmem:[%s4751_s12 + $0x3] sm:$0x1]  ;;  %v4333_v21 = vld [vmem:[%s4725_s18 + $0x50] sm:$0xff]  }
  0x45   : > { %4130 = vmatprep.subr.bf16.mxu0 %v4321_v3  ;;  %1580 = vxpose.xlu1.b32.start.end [1/1] (short) (narrow) %v4759_v9, 16  ;;  %v4779_v15 = vld [vmem:[%s4751_s12 + $0x5] sm:$0x1]  ;;  %v4334_v22 = vld [vmem:[%s4725_s18 + $0x58] sm:$0xff]   ;;  %v4336_v24 = vld [vmem:[%s4725_s18 + $0x68] sm:$0xff]   ;;  %vm2092_vm12 = vcmp.ne.f32.partialorder %v4756_v8, 0.0 }
  0x46   : > { %v4335_v23 = vld [vmem:[%s4725_s18 + $0x60] sm:$0xff]   ;;  %v4337_v26 = vld [vmem:[%s4725_s18 + $0x70] sm:$0xff]   ;;  %v4338_v27 = vld [vmem:[%s4725_s18 + $0x78] sm:$0xff]   ;;  %s3916_s22 = sshll.u32 %s6322_s13, 4  ;;  %s4571_s21 = smov [#allocation6]   ;;  %s6359_s22 = int_to_ptr.vmem [resolvable:$true] %s3916_s22 }
  0x47   : > { %v4809_v28 = vld [vmem:[%s6410_s3] ss:$0 sm:$0xff]  ;;  %s4497_s17 = scalar_lea.vmem %s6359_s22, 4096  ;;  %s4501_s23 = sshll.u32 %s4571_s21, 4  ;;  %s4502_s23 = int_to_ptr.vmem [resolvable:$false] %s4501_s23 }
  0x48   : > { %4131 = vmatpush3.bf16.msra.mxu0 %v4321_v3  ;;  %v4814_v30 = vld [vmem:[%s6412_s5] ss:$0 sm:$0xff]  ;;  %p4498_p11 = scmp.ne.s32.totalorder %s6359_s22, %s4497_s17  ;;  %s4503_s24 = scalar_lea.vmem %s4502_s23, 8192 }
  0x49   : > { %4132 = vmatprep.subr.bf16.mxu0 %v4322_v5  ;;  %1612 = vxpose.xlu0.b32.start.end [1/1] (short) (narrow) %v4766_v12, 16  ;;  %v4819_v31 = vld [vmem:[%s6411_s4] ss:$0 sm:$0xff]  ;;  %p4504_p10 = scmp.lt.s32.totalorder %s6359_s22, %s4502_s23  ;;  %p4505_p0 = scmp.lt.s32.totalorder %s4503_s24, %s4497_s17 }
  0x4a   : > { %1676 = vxpose.xlu1.b32.start.end [1/1] (short) (narrow) %v4769_v13, 16  ;;  %p4499_p13 = pnand %p4498_p11, %p6718_p12 }
  0x4b   : > { %p4506_p2 = por %p4505_p0, %p4504_p10 }
  0x4c   : > { %4133 = vmatpush3.bf16.msra.mxu0 %v4322_v5  ;;  %p4500_p8 = pneg %p4499_p13 }
  0x4e   : > { %1644 = vxpose.xlu0.b32.start.end [1/1] (short) (narrow) %v4776_v14, 16  ;;  %p4507_p4 = pnand %p4506_p2, %p4500_p8 }
  0x4f   : > { %4135 = vmatmul.mubr.msk.bf16.vlgmr.msra.gmra.mrb[0].mxu0 %vm473_vm0, %v4324_v6  ;;  %1708 = vxpose.xlu1.b32.start.end [1/1] (short) (narrow) %v4779_v15, 16 }
  0x50   : > { %4138 = vmatprep.mubr.msk.bf16.mxu0 %vm473_vm0, %v4325_v7 }
  0x57   : > { %4139 = vmatmul.mubr.msk.bf16.gmra.mrb[4].mxu0 %vm473_vm0, %v4326_v10 }
  0x58   : > { %4142 = vmatprep.mubr.msk.bf16.mxu0 %vm473_vm0, %v4327_v11 }
  0x5f   : > { %4143 = vmatmul.mubr.msk.bf16.gmra.mrb[8].mxu0 %vm473_vm0, %v4328_v16 }
  0x60   : > { %4146 = vmatprep.mubr.msk.bf16.mxu0 %vm473_vm0, %v4329_v17 }
  0x67   : > { %4147 = vmatmul.mubr.msk.bf16.gmra.mrb[12].mxu0 %vm473_vm0, %v4330_v18 }
  0x68   : > { %4150 = vmatprep.mubr.msk.bf16.mxu0 %vm473_vm0, %v4331_v19 }
  0x6d   : > { %4317 = vset.pattern.permute.xlu1 %v6423_v25 }
  0x6f   : > { %4151 = vmatmul.mubr.msk.bf16.gmra.mrb[16].mxu0 %vm473_vm0, %v4332_v20 }
  0x70   : > { %4154 = vmatprep.mubr.msk.bf16.mxu0 %vm473_vm0, %v4333_v21 }
  0x77   : > { %4155 = vmatmul.mubr.msk.bf16.gmra.mrb[20].mxu0 %vm473_vm0, %v4334_v22 }
  0x78   : > { %4158 = vmatprep.mubr.msk.bf16.mxu0 %vm473_vm0, %v4335_v23 }
  0x7f   : > { %4159 = vmatmul.mubr.msk.bf16.gmra.mrb[24].mxu0 %vm473_vm0, %v4336_v24 }
  0x80   : > { %4162 = vmatprep.mubr.msk.bf16.mxu0 %vm473_vm0, %v4337_v26 }
  0x87   : > { %4163 = vmatmul.mubr.msk.bf16.gmra.mrb[28].mxu0 %vm473_vm0, %v4338_v27 }
 0x122   : > { %v4136_v29 = vpop.f32.mrb[0].mxu0 }
 0x123   : > { %v4822_v32 = vadd.f32 %v4136_v29, %v4809_v28  ;;  %v556_v33 = vpop.f32.mrb[1].mxu0 }
 0x124   : > { %v4137_v34 = vpop.f32.mrb[2].mxu0  ;;  %v4825_v35 = vadd.f32 %v4809_v28, %v556_v33 }
 0x125   : > { %6500 = vst [vmem:[#allocation9_spill] sm:$0xff] %v4822_v32  ;;  %v4828_v36 = vadd.f32 %v4137_v34, %v4809_v28  ;;  %v559_v37 = vpop.f32.mrb[3].mxu0  ;;  %v795_v38 = vmul.f32 %v4814_v30, %v4822_v32  ;;  %v692_v39 = vmul.f32 %v4819_v31, %v4822_v32 }
 0x126   : > { %6501 = vst [vmem:[#allocation10_spill] sm:$0xff] %v4825_v35  ;;  %v690_v41 = vmul.f32 %v4819_v31, %v4825_v35  ;;  %v4839_v45 = vadd.f32 %v4809_v28, %v559_v37  ;;  %v793_v47 = vmul.f32 %v4814_v30, %v4825_v35 }
 0x127   : > { %6502 = vst [vmem:[#allocation11_spill] sm:$0xff] %v4828_v36  ;;  %829 = vadd.xlane.f32.xlu0 %v795_v38  ;;  %726 = vadd.xlane.f32.xlu1 %v692_v39  ;;  %v693_v40 = vmul.f32 %v4819_v31, %v4828_v36  ;;  %v796_v46 = vmul.f32 %v4814_v30, %v4828_v36 }
 0x128   : > { %6503 = vst [vmem:[#allocation12_spill] sm:$0xff] %v4839_v45  ;;  %v794_v51 = vmul.f32 %v4814_v30, %v4839_v45  ;;  %v691_v52 = vmul.f32 %v4819_v31, %v4839_v45 }
 0x12a   : > { %v4140_v42 = vpop.f32.mrb[4].mxu0 }
 0x12b   : > { %728 = vadd.xlane.f32.xlu1 %v693_v40  ;;  %722 = vadd.xlane.f32.xlu0 %v690_v41  ;;  %v572_v43 = vpop.f32.mrb[5].mxu0  ;;  %v4846_v49 = vadd.f32 %v4140_v42, %v4809_v28 }
 0x12c   : > { %v4141_v44 = vpop.f32.mrb[6].mxu0  ;;  %v4860_v59 = vadd.f32 %v4809_v28, %v572_v43 }
 0x12d   : > { %v575_v48 = vpop.f32.mrb[7].mxu0  ;;  %6504 = vst [vmem:[#allocation13_spill] sm:$0xff] %v4846_v49  ;;  %v4849_v50 = vadd.f32 %v4141_v44, %v4809_v28  ;;  %v696_v55 = vmul.f32 %v4819_v31, %v4846_v49  ;;  %v799_v62 = vmul.f32 %v4814_v30, %v4846_v49 }
 0x12e   : > { %6506 = vst [vmem:[#allocation15_spill] sm:$0xff] %v4860_v59  ;;  %v4863_v60 = vadd.f32 %v4809_v28, %v575_v48  ;;  %v694_v3 = vmul.f32 %v4819_v31, %v4860_v59  ;;  %v797_v10 = vmul.f32 %v4814_v30, %v4860_v59 }
 0x12f   : > { %831 = vadd.xlane.f32.xlu1 %v796_v46  ;;  %825 = vadd.xlane.f32.xlu0 %v793_v47  ;;  %6505 = vst [vmem:[#allocation14_spill] sm:$0xff] %v4849_v50  ;;  %v697_v54 = vmul.f32 %v4819_v31, %v4849_v50  ;;  %v800_v61 = vmul.f32 %v4814_v30, %v4849_v50 }
 0x130   : > { %6507 = vst [vmem:[#allocation16_spill] sm:$0xff] %v4863_v60  ;;  %v695_v2 = vmul.f32 %v4819_v31, %v4863_v60  ;;  %v798_v7 = vmul.f32 %v4814_v30, %v4863_v60 }
 0x132   : > { %v4144_v53 = vpop.f32.mrb[8].mxu0 }
 0x133   : > { %827 = vadd.xlane.f32.xlu1 %v794_v51  ;;  %724 = vadd.xlane.f32.xlu0 %v691_v52  ;;  %v588_v56 = vpop.f32.mrb[9].mxu0  ;;  %v4874_v5 = vadd.f32 %v4144_v53, %v4809_v28 }
 0x134   : > { %v4145_v57 = vpop.f32.mrb[10].mxu0  ;;  %v4900_v26 = vadd.f32 %v4809_v28, %v588_v56 }
 0x135   : > { %v591_v58 = vpop.f32.mrb[11].mxu0  ;;  %6508 = vst [vmem:[#allocation17_spill] sm:$0xff] %v4874_v5  ;;  %v4877_v6 = vadd.f32 %v4145_v57, %v4809_v28  ;;  %v700_v17 = vmul.f32 %v4819_v31, %v4874_v5  ;;  %v803_v33 = vmul.f32 %v4814_v30, %v4874_v5 }
 0x136   : > { %6514 = vst [vmem:[#allocation23_spill] sm:$0xff] %v4900_v26  ;;  %v4903_v27 = vadd.f32 %v4809_v28, %v591_v58  ;;  %v698_v42 = vmul.f32 %v4819_v31, %v4900_v26  ;;  %v801_v52 = vmul.f32 %v4814_v30, %v4900_v26  ;;  %v5148_v26 = vld [vmem:[%s4751_s12 + $0xe] sm:$0x1] }
 0x137   : > { %736 = vadd.xlane.f32.xlu1 %v697_v54  ;;  %734 = vadd.xlane.f32.xlu0 %v696_v55  ;;  %6509 = vst [vmem:[#allocation18_spill] sm:$0xff] %v4877_v6  ;;  %v701_v16 = vmul.f32 %v4819_v31, %v4877_v6  ;;  %v804_v29 = vmul.f32 %v4814_v30, %v4877_v6  ;;  %6547 = vst [vmem:[#allocation56_spill] sm:$0xff] %v5148_v26 }
 0x138   : > { %6515 = vst [vmem:[#allocation24_spill] sm:$0xff] %v4903_v27  ;;  %v699_v41 = vmul.f32 %v4819_v31, %v4903_v27  ;;  %v802_v51 = vmul.f32 %v4814_v30, %v4903_v27 }
 0x13a   : > { %v4148_v63 = vpop.f32.mrb[12].mxu0 }
 0x13b   : > { %839 = vadd.xlane.f32.xlu1 %v800_v61  ;;  %837 = vadd.xlane.f32.xlu0 %v799_v62  ;;  %v604_v0 = vpop.f32.mrb[13].mxu0  ;;  %v4926_v47 = vadd.f32 %v4148_v63, %v4809_v28 }
 0x13c   : > { %v4149_v1 = vpop.f32.mrb[14].mxu0 }
 0x13d   : > { %v607_v4 = vpop.f32.mrb[15].mxu0  ;;  %6520 = vst [vmem:[#allocation29_spill] sm:$0xff] %v4926_v47  ;;  %v4929_v48 = vadd.f32 %v4149_v1, %v4809_v28  ;;  %v704_v55 = vmul.f32 %v4819_v31, %v4926_v47 }
 0x13f   : > { %732 = vadd.xlane.f32.xlu1 %v695_v2  ;;  %730 = vadd.xlane.f32.xlu0 %v694_v3  ;;  %6521 = vst [vmem:[#allocation30_spill] sm:$0xff] %v4929_v48  ;;  %v705_v54 = vmul.f32 %v4819_v31, %v4929_v48  ;;  %v4952_v2 = vadd.f32 %v4809_v28, %v604_v0 }
 0x140   : > { %v4955_v3 = vadd.f32 %v4809_v28, %v607_v4 }
 0x141   : > { %6526 = vst [vmem:[#allocation35_spill] sm:$0xff] %v4952_v2 }
 0x142   : > { %v4152_v11 = vpop.f32.mrb[16].mxu0  ;;  %6527 = vst [vmem:[#allocation36_spill] sm:$0xff] %v4955_v3  ;;  %v703_v4 = vmul.f32 %v4819_v31, %v4955_v3 }
 0x143   : > { %835 = vadd.xlane.f32.xlu1 %v798_v7  ;;  %833 = vadd.xlane.f32.xlu0 %v797_v10  ;;  %v4888_v18 = vadd.f32 %v4152_v11, %v4809_v28  ;;  %v620_v19 = vpop.f32.mrb[17].mxu0  ;;  %v808_v7 = vmul.f32 %v4814_v30, %v4929_v48  ;;  %v807_v10 = vmul.f32 %v4814_v30, %v4926_v47  ;;  %v5124_v48 = vld [vmem:[%s4751_s12 + $0xa] sm:$0x1] }
 0x144   : > { %v4891_v20 = vadd.f32 %v4809_v28, %v620_v19  ;;  %v4153_v21 = vpop.f32.mrb[18].mxu0 }
 0x145   : > { %6510 = vst [vmem:[#allocation19_spill] sm:$0xff] %v4888_v18  ;;  %v4894_v22 = vadd.f32 %v4153_v21, %v4809_v28  ;;  %v623_v23 = vpop.f32.mrb[19].mxu0  ;;  %v702_v21 = vmul.f32 %v4819_v31, %v4952_v2 }
 0x146   : > { %6511 = vst [vmem:[#allocation20_spill] sm:$0xff] %v4891_v20  ;;  %v4897_v24 = vadd.f32 %v4809_v28, %v623_v23 }
 0x147   : > { %6512 = vst [vmem:[#allocation21_spill] sm:$0xff] %v4894_v22  ;;  %744 = vadd.xlane.f32.xlu1 %v701_v16  ;;  %742 = vadd.xlane.f32.xlu0 %v700_v17 }
 0x148   : > { %6513 = vst [vmem:[#allocation22_spill] sm:$0xff] %v4897_v24 }
 0x14a   : > { %v4156_v34 = vpop.f32.mrb[20].mxu0 }
 0x14b   : > { %847 = vadd.xlane.f32.xlu1 %v804_v29  ;;  %845 = vadd.xlane.f32.xlu0 %v803_v33  ;;  %v4910_v37 = vadd.f32 %v4156_v34, %v4809_v28  ;;  %v636_v38 = vpop.f32.mrb[21].mxu0  ;;  %v806_v34 = vmul.f32 %v4814_v30, %v4955_v3 }
 0x14c   : > { %v4913_v39 = vadd.f32 %v4809_v28, %v636_v38  ;;  %v4157_v40 = vpop.f32.mrb[22].mxu0  ;;  %v805_v38 = vmul.f32 %v4814_v30, %v4952_v2 }
 0x14d   : > { %6516 = vst [vmem:[#allocation25_spill] sm:$0xff] %v4910_v37  ;;  %v4920_v43 = vadd.f32 %v4157_v40, %v4809_v28  ;;  %v639_v44 = vpop.f32.mrb[23].mxu0  ;;  %v709_v40 = vmul.f32 %v4819_v31, %v4894_v22 }
 0x14e   : > { %6517 = vst [vmem:[#allocation26_spill] sm:$0xff] %v4913_v39  ;;  %v4923_v46 = vadd.f32 %v4809_v28, %v639_v44  ;;  %v810_v44 = vmul.f32 %v4814_v30, %v4897_v24 }
 0x14f   : > { %6518 = vst [vmem:[#allocation27_spill] sm:$0xff] %v4920_v43  ;;  %740 = vadd.xlane.f32.xlu1 %v699_v41  ;;  %738 = vadd.xlane.f32.xlu0 %v698_v42  ;;  %v708_v41 = vmul.f32 %v4819_v31, %v4888_v18  ;;  %v811_v42 = vmul.f32 %v4814_v30, %v4888_v18 }
 0x150   : > { %6519 = vst [vmem:[#allocation28_spill] sm:$0xff] %v4923_v46 }
 0x152   : > { %v4160_v53 = vpop.f32.mrb[24].mxu0 }
 0x153   : > { %843 = vadd.xlane.f32.xlu1 %v802_v51  ;;  %841 = vadd.xlane.f32.xlu0 %v801_v52  ;;  %v4940_v56 = vadd.f32 %v4160_v53, %v4809_v28  ;;  %v652_v57 = vpop.f32.mrb[25].mxu0  ;;  %v706_v51 = vmul.f32 %v4819_v31, %v4891_v20  ;;  %v815_v52 = vmul.f32 %v4814_v30, %v4910_v37 }
 0x154   : > { %v4943_v58 = vadd.f32 %v4809_v28, %v652_v57  ;;  %v4161_v61 = vpop.f32.mrb[26].mxu0  ;;  %v809_v53 = vmul.f32 %v4814_v30, %v4891_v20  ;;  %v711_v57 = vmul.f32 %v4819_v31, %v4923_v46 }
 0x155   : > { %6522 = vst [vmem:[#allocation31_spill] sm:$0xff] %v4940_v56  ;;  %v4946_v62 = vadd.f32 %v4161_v61, %v4809_v28  ;;  %v655_v63 = vpop.f32.mrb[27].mxu0  ;;  %v712_v61 = vmul.f32 %v4819_v31, %v4910_v37 }
 0x156   : > { %6523 = vst [vmem:[#allocation32_spill] sm:$0xff] %v4943_v58  ;;  %v4949_v1 = vadd.f32 %v4809_v28, %v655_v63 }
 0x157   : > { %6524 = vst [vmem:[#allocation33_spill] sm:$0xff] %v4946_v62  ;;  %752 = vadd.xlane.f32.xlu1 %v705_v54  ;;  %750 = vadd.xlane.f32.xlu0 %v704_v55  ;;  %v713_v54 = vmul.f32 %v4819_v31, %v4920_v43  ;;  %v812_v55 = vmul.f32 %v4814_v30, %v4894_v22 }
 0x158   : > { %6525 = vst [vmem:[#allocation34_spill] sm:$0xff] %v4949_v1  ;;  %v717_v63 = vmul.f32 %v4819_v31, %v4946_v62 }
 0x15a   : > { %v4164_v11 = vpop.f32.mrb[28].mxu0 }
 0x15b   : > { %855 = vadd.xlane.f32.xlu1 %v808_v7  ;;  %853 = vadd.xlane.f32.xlu0 %v807_v10  ;;  %v4962_v16 = vadd.f32 %v4164_v11, %v4809_v28  ;;  %v668_v17 = vpop.f32.mrb[29].mxu0  ;;  %v710_v7 = vmul.f32 %v4819_v31, %v4913_v39  ;;  %v715_v10 = vmul.f32 %v4819_v31, %v4949_v1 }
 0x15c   : > { %v4965_v19 = vadd.f32 %v4809_v28, %v668_v17  ;;  %v4165_v0 = vpop.f32.mrb[30].mxu0  ;;  %v813_v11 = vmul.f32 %v4814_v30, %v4913_v39 }
 0x15d   : > { %6528 = vst [vmem:[#allocation37_spill] sm:$0xff] %v4962_v16  ;;  %v4972_v23 = vadd.f32 %v4165_v0, %v4809_v28  ;;  %v671_v29 = vpop.f32.mrb[31].mxu0  ;;  %v816_v0 = vmul.f32 %v4814_v30, %v4920_v43 }
 0x15e   : > { %6529 = vst [vmem:[#allocation38_spill] sm:$0xff] %v4965_v19  ;;  %v4975_v33 = vadd.f32 %v4809_v28, %v671_v29  ;;  %v707_v28 = vmul.f32 %v4819_v31, %v4897_v24  ;;  %v819_v29 = vmul.f32 %v4814_v30, %v4940_v56 }
 0x15f   : > { %6530 = vst [vmem:[#allocation39_spill] sm:$0xff] %v4972_v23  ;;  %748 = vadd.xlane.f32.xlu1 %v703_v4  ;;  %746 = vadd.xlane.f32.xlu0 %v702_v21  ;;  %v721_v17 = vmul.f32 %v4819_v31, %v4972_v23  ;;  %v814_v21 = vmul.f32 %v4814_v30, %v4923_v46 }
 0x160   : > { %6531 = vst [vmem:[#allocation40_spill] sm:$0xff] %v4975_v33  ;;  %v719_v4 = vmul.f32 %v4819_v31, %v4975_v33 }
 0x163   : > { %851 = vadd.xlane.f32.xlu1 %v806_v34  ;;  %849 = vadd.xlane.f32.xlu0 %v805_v38  ;;  %v716_v34 = vmul.f32 %v4819_v31, %v4940_v56  ;;  %v823_v38 = vmul.f32 %v4814_v30, %v4962_v16 }
 0x167   : > { %760 = vadd.xlane.f32.xlu1 %v709_v40  ;;  %758 = vadd.xlane.f32.xlu0 %v708_v41  ;;  %v5027_v40 = vpop.trf.xlu0  ;;  %v714_v41 = vmul.f32 %v4819_v31, %v4943_v58 }
 0x168   : > { %6532 = vst [vmem:[#allocation41_spill] sm:$0xff] %v5027_v40  ;;  %vm2060_vm1 = vcmp.ne.f32.partialorder %v5027_v40, 0.0 }
 0x16b   : > { %756 = vadd.xlane.f32.xlu1 %v707_v28  ;;  %861 = vadd.xlane.f32.xlu0 %v811_v42  ;;  %v720_v28 = vmul.f32 %v4819_v31, %v4962_v16  ;;  %v5033_v42 = vpop.trf.xlu1 }
 0x16c   : > { %6533 = vst [vmem:[#allocation42_spill] sm:$0xff] %v5033_v42  ;;  %vm2062_vm13 = vcmp.ne.f32.partialorder %v5033_v42, 0.0 }
 0x16f   : > { %859 = vadd.xlane.f32.xlu1 %v810_v44  ;;  %754 = vadd.xlane.f32.xlu0 %v706_v51  ;;  %v5035_v44 = vpop.trf.xlu0  ;;  %v718_v51 = vmul.f32 %v4819_v31, %v4965_v19  ;;  %v820_v31 = vmul.f32 %v4814_v30, %v4946_v62 }
 0x170   : > { %6534 = vst [vmem:[#allocation43_spill] sm:$0xff] %v5035_v44  ;;  %vm2061_vm2 = vcmp.ne.f32.partialorder %v5035_v44, 0.0 }
 0x173   : > { %869 = vadd.xlane.f32.xlu1 %v815_v52  ;;  %857 = vadd.xlane.f32.xlu0 %v809_v53  ;;  %v5039_v52 = vpop.trf.xlu1  ;;  %v5041_v53 = vpop.trf.xlu0 }
 0x174   : > { %6535 = vst [vmem:[#allocation44_spill] sm:$0xff] %v5039_v52  ;;  %6536 = vst [vmem:[#allocation45_spill] sm:$0xff] %v5041_v53  ;;  %vm2063_vm3 = vcmp.ne.f32.partialorder %v5039_v52, 0.0  ;;  %vm2064_vm0 = vcmp.ne.f32.partialorder %v5041_v53, 0.0 }
 0x177   : > { %768 = vadd.xlane.f32.xlu1 %v713_v54  ;;  %863 = vadd.xlane.f32.xlu0 %v812_v55  ;;  %v817_v54 = vmul.f32 %v4814_v30, %v4943_v58  ;;  %v818_v55 = vmul.f32 %v4814_v30, %v4949_v1  ;;  %v5104_v1 = vld [vmem:[%s4751_s12 + $0x6] sm:$0x1] }
 0x17b   : > { %764 = vadd.xlane.f32.xlu1 %v711_v57  ;;  %766 = vadd.xlane.f32.xlu0 %v712_v61  ;;  %v2108_v57 = vsel %vm2060_vm1, 1, %v6423_v25  ;;  %v5049_v61 = vpop.trf.xlu1 }
 0x17c   : > { %6537 = vst [vmem:[#allocation46_spill] sm:$0xff] %v5049_v61  ;;  %vm2068_vm7 = vcmp.ne.f32.partialorder %v5049_v61, 0.0 }
 0x17f   : > { %776 = vadd.xlane.f32.xlu1 %v717_v63  ;;  %762 = vadd.xlane.f32.xlu0 %v710_v7  ;;  %v5051_v63 = vpop.trf.xlu0  ;;  %v2109_v7 = vsel %vm2061_vm2, 1, %v6423_v25  ;;  %vm2095_vm2 = vcmp.ne.f32.partialorder %v4776_v14, 0.0 }
 0x180   : > { %6538 = vst [vmem:[#allocation47_spill] sm:$0xff] %v5051_v63  ;;  %vm2065_vm4 = vcmp.ne.f32.partialorder %v5051_v63, 0.0 }
 0x183   : > { %772 = vadd.xlane.f32.xlu1 %v715_v10  ;;  %865 = vadd.xlane.f32.xlu0 %v813_v11  ;;  %v5058_v10 = vpop.trf.xlu1  ;;  %v5060_v11 = vpop.trf.xlu0 }
 0x184   : > { %6539 = vst [vmem:[#allocation48_spill] sm:$0xff] %v5058_v10  ;;  %6540 = vst [vmem:[#allocation49_spill] sm:$0xff] %v5060_v11  ;;  %vm2066_vm5 = vcmp.ne.f32.partialorder %v5060_v11, 0.0  ;;  %vm2069_vm8 = vcmp.ne.f32.partialorder %v5058_v10, 0.0 }
 0x187   : > { %784 = vadd.xlane.f32.xlu1 %v721_v17  ;;  %871 = vadd.xlane.f32.xlu0 %v816_v0  ;;  %v821_v17 = vmul.f32 %v4814_v30, %v4965_v19  ;;  %v2111_v0 = vsel %vm2063_vm3, 1, %v6423_v25  ;;  %vm2093_vm3 = vcmp.ne.f32.partialorder %v4759_v9, 0.0 }
 0x18b   : > { %780 = vadd.xlane.f32.xlu1 %v719_v4  ;;  %867 = vadd.xlane.f32.xlu0 %v814_v21  ;;  %v822_v4 = vmul.f32 %v4814_v30, %v4975_v33  ;;  %v2113_v21 = vsel %vm2065_vm4, 1, %v6423_v25 }
 0x18f   : > { %877 = vadd.xlane.f32.xlu1 %v819_v29  ;;  %774 = vadd.xlane.f32.xlu0 %v716_v34  ;;  %v5069_v29 = vpop.trf.xlu1  ;;  %v5071_v34 = vpop.trf.xlu0 }
 0x190   : > { %6541 = vst [vmem:[#allocation50_spill] sm:$0xff] %v5069_v29  ;;  %6542 = vst [vmem:[#allocation51_spill] sm:$0xff] %v5071_v34  ;;  %vm2067_vm6 = vcmp.ne.f32.partialorder %v5071_v34, 0.0  ;;  %vm2070_vm9 = vcmp.ne.f32.partialorder %v5069_v29, 0.0 }
 0x193   : > { %770 = vadd.xlane.f32.xlu0 %v714_v41  ;;  %885 = vadd.xlane.f32.xlu1 %v823_v38  ;;  %v2114_v38 = vsel %vm2066_vm5, 1, %v6423_v25  ;;  %v5076_v41 = vpop.trf.xlu1 }
 0x194   : > { %6543 = vst [vmem:[#allocation52_spill] sm:$0xff] %v5076_v41  ;;  %vm2071_vm10 = vcmp.ne.f32.partialorder %v5076_v41, 0.0 }
 0x197   : > { %782 = vadd.xlane.f32.xlu0 %v720_v28 }
 0x19b   : > { %778 = vadd.xlane.f32.xlu0 %v718_v51  ;;  %v2115_v51 = vsel %vm2067_vm6, 1, %v6423_v25 }
 0x19f   : > { %873 = vadd.xlane.f32.xlu0 %v817_v54  ;;  %v1497_v54 = vld [vmem:[#allocation2] sm:$0x1] }
 0x1a0   : > { %4262 = vpush %v1497_v54 }
 0x1a3   : > { %875 = vadd.xlane.f32.xlu0 %v818_v55 }
 0x1a4   : > { %2141 = vperm.xlu1 %4317, %v2108_v57   ;;  %v2116_v57 = vsel %vm2068_vm7, 1, %v6423_v25  ;;  %vm2096_vm7 = vcmp.ne.f32.partialorder %v4769_v13, 0.0 }
 0x1a7   : > { %879 = vadd.xlane.f32.xlu0 %v820_v31 }
 0x1a8   : > { %2144 = vperm.xlu1 %4317, %v2109_v7  }
 0x1ab   : > { %881 = vadd.xlane.f32.xlu0 %v821_v17  ;;  %v2117_v17 = vsel %vm2069_vm8, 1, %v6423_v25 }
 0x1ac   : > { %2150 = vperm.xlu1 %4317, %v2111_v0  }
 0x1af   : > { %883 = vadd.xlane.f32.xlu0 %v822_v4 }
 0x1b0   : > { %2156 = vperm.xlu1 %4317, %v2113_v21   ;;  %v2118_v21 = vsel %vm2070_vm9, 1, %v6423_v25 }
 0x1b4   : > { %v830_v28 = vpop.xlane.xlu0 %829  ;;  %2159 = vperm.xlu1 %4317, %v2114_v38   ;;  %v5083_v31 = vpop.xlane.xlu1 %726 }
 0x1b8   : > { %v5080_v55 = vpop.xlane.xlu0 %722  ;;  %2162 = vperm.xlu1 %4317, %v2115_v51   ;;  %v5088_v0 = vpop.xlane.xlu1 %728  ;;  %v2119_v51 = vsel %vm2071_vm10, 1, %v6423_v25 }
 0x1bc   : > { %v826_v7 = vpop.xlane.xlu0 %825  ;;  %2165 = vperm.xlu1 %4317, %v2116_v57   ;;  %v832_v54 = vpop.xlane.xlu1 %831 }
 0x1c0   : > { %v5090_v4 = vpop.xlane.xlu0 %724  ;;  %2168 = vperm.xlu1 %4317, %v2117_v17   ;;  %v828_v16 = vpop.xlane.xlu1 %827 }
 0x1c4   : > { %v5094_v38 = vpop.xlane.xlu0 %734  ;;  %2171 = vperm.xlu1 %4317, %v2118_v21   ;;  %v5099_v56 = vpop.xlane.xlu1 %736 }
 0x1c8   : > { %v838_v57 = vpop.xlane.xlu0 %837  ;;  %2174 = vperm.xlu1 %4317, %v2119_v51   ;;  %v840_v62 = vpop.xlane.xlu1 %839 }
 0x1cc   : > { %v5097_v19 = vpop.xlane.xlu0 %730  ;;  %v5109_v25 = vpop.xlane.xlu1 %732 }
 0x1d0   : > { %v834_v33 = vpop.xlane.xlu0 %833  ;;  %v836_v51 = vpop.xlane.xlu1 %835 }
 0x1d1   : > { %s4263_s18 = spop %4262 }
 0x1d4   : > { %v5101_v17 = vpop.xlane.xlu0 %742  ;;  %v5115_v46 = vpop.xlane.xlu1 %744 }
 0x1d8   : > { %v846_v58 = vpop.xlane.xlu0 %845  ;;  %v848_v18 = vpop.xlane.xlu1 %847 }
 0x1dc   : > { %1740 = vxpose.xlu0.b32.start.end [1/1] (short) (narrow) %v5104_v1, 16  ;;  %v5107_v21 = vpop.xlane.xlu0 %738 }
 0x1e0   : > { %v842_v39 = vpop.xlane.xlu0 %841 }
 0x1e1   : > { %889 = vxpose.xlu0.b32.start [1/2] (short) (narrow) %v826_v7, 8  ;;  %v5121_v7 = vpop.xlane.xlu1 %740 }
 0x1e4   : > { %v5111_v43 = vpop.xlane.xlu0 %750 }
 0x1e5   : > { %890 = vxpose.xlu0.b32.end [2/2] (short) (narrow) %v828_v16, 8 }
 0x1e8   : > { %v5113_v37 = vpop.xlane.xlu0 %853 }
 0x1e9   : > { %921 = vxpose.xlu0.b32.start [1/2] (short) (narrow) %v830_v28, 8  ;;  %v844_v28 = vpop.xlane.xlu1 %843 }
 0x1ec   : > { %v5117_v22 = vpop.xlane.xlu0 %746 }
 0x1ed   : > { %922 = vxpose.xlu0.b32.end [2/2] (short) (narrow) %v832_v54, 8  ;;  %v5131_v3 = vpop.xlane.xlu1 %752 }
 0x1f0   : > { %v850_v24 = vpop.xlane.xlu0 %849 }
 0x1f1   : > { %953 = vxpose.xlu0.b32.start [1/2] (short) (narrow) %v834_v33, 8  ;;  %v5134_v33 = vld [vmem:[%s4751_s12 + $0xd] sm:$0x1]  ;;  %v5139_v2 = vpop.xlane.xlu1 %855 }
 0x1f2   : > { %6545 = vst [vmem:[#allocation54_spill] sm:$0xff] %v5134_v33 }
 0x1f4   : > { %v5119_v20 = vpop.xlane.xlu0 %758 }
 0x1f5   : > { %6544 = vst [vmem:[#allocation53_spill] sm:$0xff] %v5119_v20  ;;  %954 = vxpose.xlu0.b32.end [2/2] (short) (narrow) %v836_v51, 8  ;;  %v5145_v27 = vpop.xlane.xlu1 %748 }
 0x1f8   : > { %v5126_v16 = vpop.xlane.xlu0 %861 }
 0x1f9   : > { %1868 = vxpose.xlu0.b32.start.end [1/1] (short) (narrow) %v5124_v48, 16 }
 0x1fc   : > { %v5129_v47 = vpop.xlane.xlu0 %754 }
 0x1fe   : > { %985 = vxpose.xlu0.b32.start [1/2] (short) (narrow) %v838_v57, 8 }
 0x200   : > { %v858_v54 = vpop.xlane.xlu0 %857 }
 0x202   : > { %986 = vxpose.xlu0.b32.end [2/2] (short) (narrow) %v840_v62, 8  ;;  %v852_v62 = vpop.xlane.xlu1 %851 }
 0x204   : > { %v5136_v51 = vpop.xlane.xlu0 %863 }
 0x206   : > { %1964 = vxpose.xlu0.b32.start.end [1/1] (short) (narrow) %v5134_v33, 16  ;;  %v5153_v60 = vpop.xlane.xlu1 %760 }
 0x207   : > { %6548 = vst [vmem:[#allocation57_spill] sm:$0xff] %v5153_v60 }
 0x208   : > { %v5141_v6 = vpop.xlane.xlu0 %766 }
 0x209   : > { %6546 = vst [vmem:[#allocation55_spill] sm:$0xff] %v5141_v6 }
 0x20b   : > { %1017 = vxpose.xlu0.b32.start [1/2] (short) (narrow) %v842_v39, 8  ;;  %v5157_v39 = vpop.xlane.xlu1 %756 }
 0x20c   : > { %v5143_v5 = vpop.xlane.xlu0 %762 }
 0x20f   : > { %1018 = vxpose.xlu0.b32.end [2/2] (short) (narrow) %v844_v28, 8  ;;  %v860_v36 = vpop.xlane.xlu1 %859 }
 0x210   : > { %v866_v57 = vpop.xlane.xlu0 %865 }
 0x213   : > { %1996 = vxpose.xlu0.b32.start.end [1/1] (short) (narrow) %v5148_v26, 16  ;;  %v5165_v45 = vpop.xlane.xlu1 %869 }
 0x214   : > { %v5151_v50 = vpop.xlane.xlu0 %871 }
 0x217   : > { %v5167_v29 = vpop.xlane.xlu1 %768 }
 0x218   : > { %1049 = vxpose.xlu0.b32.start [1/2] (short) (narrow) %v846_v58, 8  ;;  %v868_v49 = vpop.xlane.xlu0 %867  ;;  %6553 = vst [vmem:[#allocation62_spill] sm:$0xff] %v5167_v29 }
 0x21c   : > { %1050 = vxpose.xlu0.b32.end [2/2] (short) (narrow) %v848_v18, 8  ;;  %v5155_v59 = vpop.xlane.xlu0 %774 }
 0x21d   : > { %6549 = vst [vmem:[#allocation58_spill] sm:$0xff] %v5155_v59 }
 0x220   : > { %1081 = vxpose.xlu0.b32.start [1/2] (short) (narrow) %v850_v24, 8  ;;  %v5159_v32 = vpop.xlane.xlu0 %770  ;;  %v5171_v24 = vpop.xlane.xlu1 %764 }
 0x221   : > { %6550 = vst [vmem:[#allocation59_spill] sm:$0xff] %v5159_v32  ;;  %6554 = vst [vmem:[#allocation63_spill] sm:$0xff] %v5171_v24 }
 0x224   : > { %1082 = vxpose.xlu0.b32.end [2/2] (short) (narrow) %v852_v62, 8  ;;  %v5161_v28 = vpop.xlane.xlu0 %782  ;;  %v5173_v11 = vpop.xlane.xlu1 %776 }
 0x225   : > { %6551 = vst [vmem:[#allocation60_spill] sm:$0xff] %v5161_v28  ;;  %6555 = vst [vmem:[#allocation64_spill] sm:$0xff] %v5173_v11 }
 0x228   : > { %1145 = vxpose.xlu0.b32.start [1/2] (short) (narrow) %v858_v54, 8  ;;  %v5163_v35 = vpop.xlane.xlu0 %778  ;;  %v5175_v40 = vpop.xlane.xlu1 %772 }
 0x229   : > { %6552 = vst [vmem:[#allocation61_spill] sm:$0xff] %v5163_v35  ;;  %6556 = vst [vmem:[#allocation65_spill] sm:$0xff] %v5175_v40 }
 0x22c   : > { %1146 = vxpose.xlu0.b32.end [2/2] (short) (narrow) %v860_v36, 8  ;;  %v874_v58 = vpop.xlane.xlu0 %873  ;;  %v5177_v36 = vpop.xlane.xlu1 %784 }
 0x22d   : > { %6557 = vst [vmem:[#allocation66_spill] sm:$0xff] %v5177_v36 }
 0x230   : > { %1209 = vxpose.xlu0.b32.start [1/2] (short) (narrow) %v866_v57, 8  ;;  %v876_v18 = vpop.xlane.xlu0 %875  ;;  %v5179_v57 = vpop.xlane.xlu1 %780 }
 0x231   : > { %6558 = vst [vmem:[#allocation67_spill] sm:$0xff] %v5179_v57  ;;  %v5198_v57 = vstv %s4263_s18 }
 0x234   : > { %1210 = vxpose.xlu0.b32.end [2/2] (short) (narrow) %v868_v49, 8  ;;  %v5169_v61 = vpop.xlane.xlu0 %879  ;;  %v5181_v41 = vpop.xlane.xlu1 %877  ;;  %v1401_v49 = vlaneseq }
 0x238   : > { %1273 = vxpose.xlu0.b32.start [1/2] (short) (narrow) %v874_v58, 8  ;;  %v882_v62 = vpop.xlane.xlu0 %881  ;;  %v5183_v10 = vpop.xlane.xlu1 %885  ;;  %v6560_v58 = vmov 0  }
 0x239   : > { %v2268_v28 = vsel %vm2092_vm12, 1, %v6560_v58  ;;  %v2110_v8 = vsel %vm2062_vm13, 1, %v6560_v58 }
 0x23c   : > { %1274 = vxpose.xlu0.b32.end [2/2] (short) (narrow) %v876_v18, 8  ;;  %v884_v54 = vpop.xlane.xlu0 %883 }
 0x240   : > { %1337 = vxpose.xlu0.b32.start [1/2] (short) (narrow) %v882_v62, 8  ;;  %v1402_v62 = vshrl.u32 %v1401_v49, 7 }
 0x242   : > { %v5193_v52 = vsub.s32 0, %v1402_v62 }
 0x244   : > { %1338 = vxpose.xlu0.b32.end [2/2] (short) (narrow) %v884_v54, 8  ;;  %v5191_v54 = vpop.permute.xlu1 %2141 }
 0x245   : > { %vm2236_vm8 = vcmp.eq.s32.totalorder %v5191_v54, 1 }
 0x248   : > { %v2145_v49 = vpop.permute.xlu1 %2144 }
 0x249   : > { %vm2237_vm14 = vcmp.eq.s32.totalorder %v2145_v49, 1 }
 0x25c   : > { %v5185_v34 = vpop.trf.xlu0 }
 0x25d   : > { %6559 = vst [vmem:[#allocation68_spill] sm:$0xff] %v5185_v34  ;;  %vm2072_vm11 = vcmp.ne.f32.partialorder %v5185_v34, 0.0 }
 0x25e   : > { %v2120_v18 = vsel %vm2072_vm11, 1, %v6560_v58  ;;  %vm2492_vm11 = vcmask 130048  }
 0x25f   : > { %2177 = vperm.xlu1 %4317, %v2120_v18   ;;  %v2287_v18 = vrot.slane %v2268_v28, %v5193_v52  ;;  %v2112_v28 = vsel %vm2064_vm0, 1, %v6560_v58 }
 0x260   : > { %v5189_v63 = vpop.trf.xlu0 }
 0x261   : > { %vm5205_vm15 = vcmp.eq.s32.totalorder %v2287_v18, 1  ;;  %v2151_v18 = vpop.permute.xlu1 %2150 }
 0x262   : > { %vm2365_vm1 = vmand %vm2237_vm14, %vm5205_vm15  ;;  %vm2239_vm12 = vcmp.eq.s32.totalorder %v2151_v18, 1  ;;  %v5299_v18 = vld [vmem:[%s4751_s12 + $0xb] sm:$0x1] }
 0x263   : > { %vm2364_vm9 = vmand %vm2236_vm8, %vm5205_vm15 }
 0x264   : > { %v905_v44 = vpop.trf.xlu0 }
 0x265   : > { %v1404_v36 = vrot.slane %v905_v44, %v5193_v52  ;;  %v5220_v59 = vpop.permute.xlu1 %2156 }
 0x267   : > { %v1466_v34 = vadd.f32 %v1404_v36, %v5090_v4 }
 0x269   : > { %v1501_v11 = vadd.f32 %v5198_v57, %v1466_v34  ;;  %v937_v4 = vpop.trf.xlu0  ;;  %v2160_v53 = vpop.permute.xlu1 %2159 }
 0x26a   : > { %vm2242_vm5 = vcmp.eq.s32.totalorder %v2160_v53, 1 }
 0x26b   : > { %v2397_v62 = vmul.f32 0.2, %v1501_v11 }
 0x26d   : > { %4318 = vset.pattern.permute.xlu0 %v6560_v58  ;;  %v2429_v44 = vmax.f32 %v1501_v11, %v2397_v62  ;;  %v2271_v62 = vsel %vm2095_vm2, 1, %v6560_v58 }
 0x26e   : > { %2147 = vperm.xlu0 %4318, %v2110_v8   ;;  %v1465_v8 = vadd.f32 %v1404_v36, %v5080_v55  ;;  %v2299_v6 = vrot.slane %v2271_v62, %v5193_v52  ;;  %v5240_v55 = vld [vmem:[%s4751_s12 + $0x7] sm:$0x1] }
 0x26f   : > { %v5213_v34 = vsel %vm2365_vm1, %v2429_v44, -1e+30  ;;  %v5228_v44 = vrot.slane %v937_v4, %v5193_v52  ;;  %vm2097_vm1 = vcmp.ne.f32.partialorder %v4779_v15, 0.0 }
 0x270   : > { %v1500_v14 = vadd.f32 %v5198_v57, %v1465_v8  ;;  %vm5246_vm4 = vcmp.eq.s32.totalorder %v2299_v6, 1 }
 0x271   : > { %v5216_v49 = vpop.trf.xlu0  ;;  %v1468_v60 = vadd.f32 %v5228_v44, %v5088_v0  ;;  %v2269_v0 = vsel %vm2093_vm3, 1, %v6560_v58  ;;  %vm2370_vm6 = vmand %vm2242_vm5, %vm5246_vm4 }
 0x272   : > { %2153 = vperm.xlu0 %4318, %v2112_v28   ;;  %v2396_v32 = vmul.f32 0.2, %v1500_v14  ;;  %v2291_v53 = vrot.slane %v2269_v0, %v5193_v52  ;;  %v5276_v0 = vld [vmem:[%s4751_s12 + $0x9] sm:$0x1] }
 0x273   : > { %v1503_v8 = vadd.f32 %v5198_v57, %v1468_v60 }
 0x274   : > { %v2428_v60 = vmax.f32 %v1500_v14, %v2396_v32  ;;  %vm5281_vm10 = vcmp.eq.s32.totalorder %v2291_v53, 1 }
 0x275   : > { %v2399_v20 = vmul.f32 0.2, %v1503_v8  ;;  %vm2367_vm13 = vmand %vm2239_vm12, %vm5281_vm10 }
 0x279   : > { %v5218_v42 = vpop.trf.xlu0 }
 0x27a   : > { %6563 = vst [vmem:[#allocation69_spill] sm:$0xff] %v5218_v42 }
 0x27d   : > { %v5222_v11 = vpop.trf.xlu0 }
 0x27e   : > { %6564 = vst [vmem:[#allocation70_spill] sm:$0xff] %v5222_v11 }
 0x281   : > { %v1001_v28 = vpop.trf.xlu0 }
 0x282   : > { %v5231_v29 = vrot.slane %v1001_v28, %v5193_v52 }
 0x284   : > { %v1471_v40 = vadd.f32 %v5231_v29, %v5094_v38  ;;  %v5250_v38 = vpop.permute.xlu1 %2162 }
 0x285   : > { %vm2243_vm8 = vcmp.eq.s32.totalorder %v5250_v38, 1 }
 0x286   : > { %v1506_v36 = vadd.f32 %v5198_v57, %v1471_v40  ;;  %v5244_v4 = vpop.trf.xlu0  ;;  %v5258_v40 = vld [vmem:[%s4751_s12 + $0x8] sm:$0x1] }
 0x287   : > { %6565 = vst [vmem:[#allocation71_spill] sm:$0xff] %v5244_v4 }
 0x288   : > { %1772 = vxpose.xlu1.b32.start.end [1/1] (short) (narrow) %v5240_v55, 16  ;;  %v2402_v62 = vmul.f32 0.2, %v1506_v36  ;;  %v5263_v26 = vpop.permute.xlu1 %2165 }
 0x28a   : > { %v5255_v9 = vpop.trf.xlu0  ;;  %v2434_v6 = vmax.f32 %v1506_v36, %v2402_v62  ;;  %v824_v62 = vmul.f32 %v4814_v30, %v4972_v23  ;;  %v2431_v30 = vmax.f32 %v1503_v8, %v2399_v20 }
 0x28b   : > { %6568 = vst [vmem:[#allocation72_spill] sm:$0xff] %v5255_v9 }
 0x28c   : > { %v5265_v33 = vsel %vm2370_vm6, %v2434_v6, -1e+30  ;;  %v2272_v6 = vsel %vm2096_vm7, 1, %v6560_v58  ;;  %v2169_v54 = vpop.permute.xlu1 %2168  ;;  %v5301_v20 = vsel %vm2367_vm13, %v2431_v30, -1e+30  ;;  %vm2094_vm6 = vcmp.ne.f32.partialorder %v4766_v12, 0.0  ;;  %vm2371_vm13 = vmand %vm2243_vm8, %vm5246_vm4 }
 0x28d   : > { %1804 = vxpose.xlu1.b32.start.end [1/1] (short) (narrow) %v5258_v40, 16  ;;  %v2303_v35 = vrot.slane %v2272_v6, %v5193_v52  ;;  %vm2245_vm14 = vcmp.eq.s32.totalorder %v2169_v54, 1  ;;  %6573 = vst [vmem:[#allocation75_spill] sm:$0xff] %v5301_v20  ;;  %v5317_v30 = vld [vmem:[%s4751_s12 + $0xc] sm:$0x1] }
 0x28e   : > { %v1033_v24 = vpop.trf.xlu0  ;;  %6577 = vst [vmem:[#allocation77_spill] sm:$0xff] %v5317_v30 }
 0x28f   : > { %v5271_v36 = vrot.slane %v1033_v24, %v5193_v52  ;;  %v5287_v24 = vsel %vm2364_vm9, %v2428_v60, -1e+30  ;;  %vm5303_vm15 = vcmp.eq.s32.totalorder %v2303_v35, 1 }
 0x290   : > { %6571 = vst [vmem:[#allocation73_spill] sm:$0xff] %v5287_v24  ;;  %vm2373_vm0 = vmand %vm2245_vm14, %vm5303_vm15  ;;  %v5314_v54 = vpop.permute.xlu1 %2171 }
 0x291   : > { %v1474_v32 = vadd.f32 %v5271_v36, %v5121_v7  ;;  %887 = vadd.xlane.f32.xlu0 %v824_v62  ;;  %v2493_v7 = vsel %vm2492_vm11, %v5287_v24, -inf }
 0x292   : > { %1836 = vxpose.xlu1.b32.start.end [1/1] (short) (narrow) %v5276_v0, 16 }
 0x293   : > { %v1509_v14 = vadd.f32 %v5198_v57, %v1474_v32  ;;  %v5292_v53 = vpop.trf.xlu0  ;;  %v2502_v32 = vsel %vm2492_vm11, %v5301_v20, -inf  ;;  %v5330_v20 = vld [vmem:[%s4751_s12 + $0xf] sm:$0x1]  ;;  %s6357_s12 = scalar_lea.hbm %s6414_s7, %s4073_s20 }
 0x294   : > { %6572 = vst [vmem:[#allocation74_spill] sm:$0xff] %v5292_v53 }
 0x295   : > { %2494 = vmax.xlane.f32.xlu0 %v2493_v7  ;;  %v2405_v8 = vmul.f32 0.2, %v1509_v14 }
 0x297   : > { %1900 = vxpose.xlu1.b32.start.end [1/1] (short) (narrow) %v5299_v18, 16  ;;  %v5308_v62 = vpop.trf.xlu0  ;;  %v2437_v6 = vmax.f32 %v1509_v14, %v2405_v8  ;;  %v2273_v14 = vsel %vm2097_vm1, 1, %v6560_v58  ;;  %vm2081_vm1 = vcmp.ne.f32.partialorder %v5222_v11, 0.0  ;;  %v1473_v11 = vadd.f32 %v5271_v36, %v5107_v21 }
 0x298   : > { %6576 = vst [vmem:[#allocation76_spill] sm:$0xff] %v5308_v62  ;;  %v2307_v24 = vrot.slane %v2273_v14, %v5193_v52  ;;  %vm2089_vm8 = vcmp.ne.f32.partialorder %v5308_v62, 0.0 }
 0x299   : > { %2503 = vmax.xlane.f32.xlu0 %v2502_v32  ;;  %v5319_v35 = vsel %vm2373_vm0, %v2437_v6, -1e+30  ;;  %v2175_v32 = vpop.permute.xlu1 %2174  ;;  %vm2080_vm0 = vcmp.ne.f32.partialorder %v5218_v42, 0.0 }
 0x29a   : > { %vm2247_vm2 = vcmp.eq.s32.totalorder %v2175_v32, 1  ;;  %vm5335_vm3 = vcmp.eq.s32.totalorder %v2307_v24, 1 }
 0x29b   : > { %v1065_v7 = vpop.trf.xlu0  ;;  %vm2375_vm5 = vmand %vm2247_vm2, %vm5335_vm3 }
 0x29c   : > { %v5323_v23 = vrot.slane %v1065_v7, %v5193_v52  ;;  %1932 = vxpose.xlu1.b32.start.end [1/1] (short) (narrow) %v5317_v30, 16 }
 0x29e   : > { %v1476_v8 = vadd.f32 %v5323_v23, %v5115_v46 }
 0x2a0   : > { %v1511_v6 = vadd.f32 %v5198_v57, %v1476_v8  ;;  %v5352_v24 = vpop.trf.xlu0 }
 0x2a1   : > { %2028 = vxpose.xlu1.b32.start.end [1/1] (short) (narrow) %v5330_v20, 16  ;;  %v5461_v21 = vrot.slane %v5352_v24, %v5193_v52 }
 0x2a2   : > { %v2407_v15 = vmul.f32 0.2, %v1511_v6 }
 0x2a3   : > { %v1477_v36 = vadd.f32 %v5461_v21, %v5117_v22 }
 0x2a4   : > { %v2439_v30 = vmax.f32 %v1511_v6, %v2407_v15 }
 0x2a6   : > { %1113 = vxpose.xlu1.b32.start [1/2] (short) (narrow) %v5113_v37, 8  ;;  %v5342_v46 = vsel %vm2375_vm5, %v2439_v30, -1e+30 }
 0x2a8   : > { %v5354_v37 = vpop.trf.xlu0 }
 0x2aa   : > { %1114 = vxpose.xlu1.b32.end [2/2] (short) (narrow) %v5139_v2, 8  ;;  %v5360_v2 = vrot.slane %v5216_v49, %v5193_v52 }
 0x2ae   : > { %1177 = vxpose.xlu1.b32.start [1/2] (short) (narrow) %v5126_v16, 8 }
 0x2b0   : > { %v5356_v30 = vpop.trf.xlu0 }
 0x2b2   : > { %1178 = vxpose.xlu1.b32.end [2/2] (short) (narrow) %v5136_v51, 8 }
 0x2b6   : > { %1241 = vxpose.xlu1.b32.start [1/2] (short) (narrow) %v5165_v45, 8  ;;  %v1469_v45 = vadd.f32 %v5360_v2, %v5097_v19 }
 0x2b8   : > { %v5362_v16 = vpop.trf.xlu0 }
 0x2ba   : > { %1242 = vxpose.xlu1.b32.end [2/2] (short) (narrow) %v5151_v50, 8  ;;  %v1472_v50 = vadd.f32 %v5231_v29, %v5099_v56 }
 0x2bc   : > { %v1507_v51 = vadd.f32 %v5198_v57, %v1472_v50 }
 0x2be   : > { %1305 = vxpose.xlu1.b32.start [1/2] (short) (narrow) %v5181_v41, 8  ;;  %v1504_v41 = vadd.f32 %v5198_v57, %v1469_v45  ;;  %v2403_v32 = vmul.f32 0.2, %v1507_v51 }
 0x2c0   : > { %v2400_v8 = vmul.f32 0.2, %v1504_v41  ;;  %v2435_v29 = vmax.f32 %v1507_v51, %v2403_v32  ;;  %v2128_v32 = vsel %vm2080_vm0, 1, %v6560_v58  ;;  %vm2098_vm0 = vcmp.ne.f32.partialorder %v5104_v1, 0.0 }
 0x2c1   : > { %v2274_v13 = vsel %vm2098_vm0, 1, %v6560_v58  ;;  %v1512_v1 = vadd.f32 %v5198_v57, %v1477_v36  ;;  %vm2086_vm0 = vcmp.ne.f32.partialorder %v5244_v4, 0.0 }
 0x2c2   : > { %1306 = vxpose.xlu1.b32.end [2/2] (short) (narrow) %v5169_v61, 8  ;;  %v5369_v61 = vpop.trf.xlu0  ;;  %v2432_v12 = vmax.f32 %v1504_v41, %v2400_v8  ;;  %v5390_v45 = vsel %vm2371_vm13, %v2435_v29, -1e+30 }
 0x2c3   : > { %v2514_v38 = vsel %vm2492_vm11, %v5390_v45, -inf }
 0x2c6   : > { %1369 = vxpose.xlu1.b32.start [1/2] (short) (narrow) %v5183_v10, 8  ;;  %v2270_v10 = vsel %vm2094_vm6, 1, %v6560_v58  ;;  %vm2088_vm6 = vcmp.ne.f32.partialorder %v5292_v53, 0.0 }
 0x2c7   : > { %v2295_v49 = vrot.slane %v2270_v10, %v5193_v52 }
 0x2c9   : > { %vm5377_vm7 = vcmp.eq.s32.totalorder %v2295_v49, 1 }
 0x2de   : > { %v5394_v50 = vpop.permute.xlu1 %2177 }
 0x2ed   : > { %v5375_v14 = vpop.permute.xlu0 %2147 }
 0x2ee   : > { %vm2238_vm13 = vcmp.eq.s32.totalorder %v5375_v14, 1 }
 0x2f1   : > { %v2154_v56 = vpop.permute.xlu0 %2153 }
 0x2f2   : > { %vm2240_vm9 = vcmp.eq.s32.totalorder %v2154_v56, 1 }
 0x2f3   : > { %vm2368_vm12 = vmand %vm2240_vm9, %vm5377_vm7 }
 0x2f4   : > { %v5384_v6 = vsel %vm2368_vm12, %v2432_v12, -1e+30  ;;  %v2129_v12 = vsel %vm2081_vm1, 1, %v6560_v58 }
 0x2f5   : > { %v2505_v15 = vsel %vm2492_vm11, %v5384_v6, -inf }
 0x2f6   : > { %2506 = vmax.xlane.f32.xlu0 %v2505_v15 }
 0x2fa   : > { %2515 = vmax.xlane.f32.xlu0 %v2514_v38 }
 0x308   : > { %v5396_v10 = vpop.trf.xlu1 }
 0x309   : > { %6582 = vst [vmem:[#allocation78_spill] sm:$0xff] %v5396_v10  ;;  %vm2074_vm14 = vcmp.ne.f32.partialorder %v5396_v10, 0.0 }
 0x30a   : > { %v2122_v28 = vsel %vm2074_vm14, 1, %v6560_v58  ;;  %vm2366_vm14 = vmand %vm2238_vm13, %vm5281_vm10 }
 0x30c   : > { %v5399_v41 = vpop.trf.xlu1 }
 0x310   : > { %v5402_v51 = vpop.trf.xlu1  ;;  %2183 = vperm.xlu0 %4318, %v2122_v28  }
 0x311   : > { %6583 = vst [vmem:[#allocation79_spill] sm:$0xff] %v5402_v51  ;;  %vm2076_vm4 = vcmp.ne.f32.partialorder %v5402_v51, 0.0 }
 0x312   : > { %v2124_v49 = vsel %vm2076_vm4, 1, %v6560_v58  ;;  %vm2241_vm4 = vcmp.eq.s32.totalorder %v5220_v59, 1 }
 0x313   : > { %vm2369_vm10 = vmand %vm2241_vm4, %vm5377_vm7  ;;  %vm2244_vm7 = vcmp.eq.s32.totalorder %v5263_v26, 1  ;;  %v2408_v26 = vmul.f32 0.2, %v1512_v1 }
 0x314   : > { %v5407_v8 = vpop.trf.xlu1  ;;  %2189 = vperm.xlu0 %4318, %v2124_v49   ;;  %vm2372_vm1 = vmand %vm2244_vm7, %vm5303_vm15  ;;  %vm2087_vm7 = vcmp.ne.f32.partialorder %v5255_v9, 0.0  ;;  %v6601_v9 = vld [vmem:[#allocation54_spill] sm:$0xff] }
 0x315   : > { %6584 = vst [vmem:[#allocation80_spill] sm:$0xff] %v5407_v8 }
 0x318   : > { %v5411_v56 = vpop.trf.xlu1  ;;  %2201 = vperm.xlu0 %4318, %v2128_v32  }
 0x319   : > { %6585 = vst [vmem:[#allocation81_spill] sm:$0xff] %v5411_v56  ;;  %vm2078_vm13 = vcmp.ne.f32.partialorder %v5411_v56, 0.0 }
 0x31c   : > { %v5414_v29 = vpop.trf.xlu1  ;;  %2204 = vperm.xlu0 %4318, %v2129_v12   ;;  %v2136_v12 = vsel %vm2088_vm6, 1, %v6560_v58  ;;  %vm2248_vm6 = vcmp.eq.s32.totalorder %v5394_v50, 1 }
 0x31d   : > { %6586 = vst [vmem:[#allocation82_spill] sm:$0xff] %v5414_v29 }
 0x31e   : > { %v888_v15 = vpop.xlane.xlu0 %887 }
 0x31f   : > { %1370 = vxpose.xlu1.b32.end [2/2] (short) (narrow) %v888_v15, 8 }
 0x320   : > { %v5416_v38 = vpop.trf.xlu1 }
 0x321   : > { %6587 = vst [vmem:[#allocation83_spill] sm:$0xff] %v5416_v38  ;;  %vm2082_vm2 = vcmp.ne.f32.partialorder %v5416_v38, 0.0 }
 0x322   : > { %v2130_v28 = vsel %vm2082_vm2, 1, %v6560_v58  ;;  %vm2246_vm2 = vcmp.eq.s32.totalorder %v5314_v54, 1  ;;  %v2440_v54 = vmax.f32 %v1512_v1, %v2408_v26  ;;  %v5520_v36 = vpop.xlane.xlu0 %2494  ;;  %v1436_v1 = vrot.slane %v5354_v37, %v5193_v52 }
 0x323   : > { %2207 = vperm.xlu0 %4318, %v2130_v28   ;;  %v2137_v28 = vsel %vm2089_vm8, 1, %v6560_v58  ;;  %vm2374_vm8 = vmand %vm2246_vm2, %vm5335_vm3  ;;  %vm2075_vm3 = vcmp.ne.f32.partialorder %v5399_v41, 0.0  ;;  %vm2100_vm2 = vcmp.ne.f32.partialorder %v5258_v40, 0.0 }
 0x324   : > { %v5420_v49 = vpop.trf.xlu1 }
 0x325   : > { %6588 = vst [vmem:[#allocation84_spill] sm:$0xff] %v5420_v49  ;;  %vm2083_vm5 = vcmp.ne.f32.partialorder %v5420_v49, 0.0 }
 0x326   : > { %v2131_v32 = vsel %vm2083_vm5, 1, %v6560_v58 }
 0x327   : > { %2210 = vperm.xlu0 %4318, %v2131_v32  }
 0x328   : > { %v5425_v42 = vpop.trf.xlu1 }
 0x329   : > { %6589 = vst [vmem:[#allocation85_spill] sm:$0xff] %v5425_v42  ;;  %vm2084_vm4 = vcmp.ne.f32.partialorder %v5425_v42, 0.0 }
 0x32b   : > { %2225 = vperm.xlu0 %4318, %v2136_v12   ;;  %v1467_v12 = vadd.f32 %v5228_v44, %v5083_v31  ;;  %v1508_v31 = vadd.f32 %v5198_v57, %v1473_v11  ;;  %v1475_v44 = vadd.f32 %v5323_v23, %v5101_v17 }
 0x32c   : > { %v5429_v15 = vpop.trf.xlu1 }
 0x32d   : > { %6590 = vst [vmem:[#allocation86_spill] sm:$0xff] %v5429_v15  ;;  %v1502_v62 = vadd.f32 %v5198_v57, %v1467_v12  ;;  %v1510_v11 = vadd.f32 %v5198_v57, %v1475_v44  ;;  %v2404_v17 = vmul.f32 0.2, %v1508_v31  ;;  %v2126_v44 = vsel %vm2078_vm13, 1, %v6560_v58 }
 0x32e   : > { %vm2102_vm13 = vcmp.ne.f32.partialorder %v5124_v48, 0.0  ;;  %v1452_v48 = vrot.slane %v5362_v16, %v5193_v52 }
 0x32f   : > { %2228 = vperm.xlu0 %4318, %v2137_v28   ;;  %v1470_v28 = vadd.f32 %v5360_v2, %v5109_v25  ;;  %v2496_v25 = vsel %vm2492_vm11, %v5213_v34, -inf  ;;  %v2436_v24 = vmax.f32 %v1508_v31, %v2404_v17  ;;  %v2406_v19 = vmul.f32 0.2, %v1510_v11 }
 0x330   : > { %v5432_v38 = vpop.trf.xlu1  ;;  %v2134_v17 = vsel %vm2086_vm0, 1, %v6560_v58 }
 0x331   : > { %6591 = vst [vmem:[#allocation87_spill] sm:$0xff] %v5432_v38  ;;  %vm2090_vm9 = vcmp.ne.f32.partialorder %v5432_v38, 0.0  ;;  %v1505_v38 = vadd.f32 %v5198_v57, %v1470_v28  ;;  %v5482_v22 = vsel %vm2372_vm1, %v2436_v24, -1e+30  ;;  %vm2099_vm1 = vcmp.ne.f32.partialorder %v5240_v55, 0.0 }
 0x332   : > { %v2138_v49 = vsel %vm2090_vm9, 1, %v6560_v58  ;;  %v2517_v28 = vsel %vm2492_vm11, %v5482_v22, -inf  ;;  %vm2073_vm9 = vcmp.ne.f32.partialorder %v5189_v63, 0.0  ;;  %v2275_v26 = vsel %vm2099_vm1, 1, %v6560_v58 }
 0x333   : > { %2231 = vperm.xlu0 %4318, %v2138_v49   ;;  %v2398_v49 = vmul.f32 0.2, %v1502_v62  ;;  %v2121_v50 = vsel %vm2073_vm9, 1, %v6560_v58 }
 0x334   : > { %v5436_v32 = vpop.trf.xlu1 }
 0x335   : > { %6592 = vst [vmem:[#allocation88_spill] sm:$0xff] %v5436_v32  ;;  %vm2091_vm12 = vcmp.ne.f32.partialorder %v5436_v32, 0.0  ;;  %v2401_v32 = vmul.f32 0.2, %v1505_v38 }
 0x336   : > { %v2139_v53 = vsel %vm2091_vm12, 1, %v6560_v58  ;;  %vm2077_vm12 = vcmp.ne.f32.partialorder %v5407_v8, 0.0 }
 0x337   : > { %2234 = vperm.xlu0 %4318, %v2139_v53   ;;  %v2430_v53 = vmax.f32 %v1502_v62, %v2398_v49  ;;  %v2433_v14 = vmax.f32 %v1505_v38, %v2401_v32  ;;  %v2311_v38 = vrot.slane %v2274_v13, %v5193_v52  ;;  %v2438_v32 = vmax.f32 %v1510_v11, %v2406_v19  ;;  %v5524_v19 = vpop.xlane.xlu0 %2503 }
 0x338   : > { %v2125_v31 = vsel %vm2077_vm12, 1, %v6560_v58  ;;  %v1129_v13 = vpop.trf.xlu1 }
 0x339   : > { %v5457_v2 = vsel %vm2366_vm14, %v2430_v53, -1e+30  ;;  %v5469_v23 = vsel %vm2369_vm10, %v2433_v14, -1e+30  ;;  %vm5484_vm5 = vcmp.eq.s32.totalorder %v2311_v38, 1  ;;  %vm2079_vm14 = vcmp.ne.f32.partialorder %v5414_v29, 0.0 }
 0x33a   : > { %v2499_v59 = vsel %vm2492_vm11, %v5457_v2, -inf  ;;  %v2508_v62 = vsel %vm2492_vm11, %v5469_v23, -inf  ;;  %v5493_v60 = vsel %vm2374_vm8, %v2438_v32, -1e+30  ;;  %vm2376_vm15 = vmand %vm2248_vm6, %vm5484_vm5  ;;  %v2127_v14 = vsel %vm2079_vm14, 1, %v6560_v58  ;;  %v6605_v29 = vld [vmem:[#allocation77_spill] sm:$0xff] }
 0x33b   : > { %v2523_v49 = vsel %vm2492_vm11, %v5493_v60, -inf  ;;  %v5499_v53 = vsel %vm2376_vm15, %v2440_v54, -1e+30  ;;  %vm2085_vm10 = vcmp.ne.f32.partialorder %v5429_v15, 0.0  ;;  %v1432_v24 = vrot.slane %v1129_v13, %v5193_v52 }
 0x33c   : > { %v2529_v7 = vsel %vm2492_vm11, %v5499_v53, -inf  ;;  %v2133_v11 = vsel %vm2085_vm10, 1, %v6560_v58  ;;  %vm2101_vm14 = vcmp.ne.f32.partialorder %v5276_v0, 0.0  ;;  %vm2105_vm10 = vcmp.ne.f32.partialorder %v6601_v9, 0.0  ;;  %v6606_v0 = vld [vmem:[#allocation65_spill] sm:$0xff] }
 0x33d   : > { %v1479_v38 = vadd.f32 %v1432_v24, %v5111_v43  ;;  %v2277_v12 = vsel %vm2101_vm14, 1, %v6560_v58  ;;  %v1490_v8 = vadd.f32 %v1452_v48, %v6606_v0 }
 0x33f   : > { %v1514_v54 = vadd.f32 %v5198_v57, %v1479_v38  ;;  %v2511_v38 = vsel %vm2492_vm11, %v5265_v33, -inf }
 0x346   : > { %2497 = vmax.xlane.f32.xlu1 %v2496_v25  ;;  %v2123_v25 = vsel %vm2075_vm3, 1, %v6560_v58 }
 0x34a   : > { %2500 = vmax.xlane.f32.xlu1 %v2499_v59  ;;  %v2132_v59 = vsel %vm2084_vm4, 1, %v6560_v58 }
 0x34e   : > { %2509 = vmax.xlane.f32.xlu1 %v2508_v62  ;;  %v2135_v62 = vsel %vm2087_vm7, 1, %v6560_v58  ;;  %vm2103_vm7 = vcmp.ne.f32.partialorder %v5299_v18, 0.0 }
 0x34f   : > { %v2279_v9 = vsel %vm2103_vm7, 1, %v6560_v58 }
 0x356   : > { %2518 = vmax.xlane.f32.xlu0 %v2517_v28  ;;  %v1481_v28 = vadd.f32 %v1436_v1, %v5129_v47 }
 0x358   : > { %v1516_v37 = vadd.f32 %v5198_v57, %v1481_v28  ;;  %v2526_v28 = vsel %vm2492_vm11, %v5342_v46, -inf }
 0x35a   : > { %2524 = vmax.xlane.f32.xlu0 %v2523_v49  ;;  %v2315_v49 = vrot.slane %v2275_v26, %v5193_v52  ;;  %v2520_v26 = vsel %vm2492_vm11, %v5319_v35, -inf }
 0x35c   : > { %vm5541_vm6 = vcmp.eq.s32.totalorder %v2315_v49, 1 }
 0x35e   : > { %2530 = vmax.xlane.f32.xlu0 %v2529_v7  ;;  %v2276_v7 = vsel %vm2100_vm2, 1, %v6560_v58  ;;  %vm2104_vm2 = vcmp.ne.f32.partialorder %v6605_v29, 0.0 }
 0x35f   : > { %2180 = vperm.xlu1 %4317, %v2121_v50   ;;  %v2410_v50 = vmul.f32 0.2, %v1514_v54 }
 0x361   : > { %v2442_v47 = vmax.f32 %v1514_v54, %v2410_v50  ;;  %v1193_v54 = vpop.trf.xlu1 }
 0x363   : > { %2186 = vperm.xlu1 %4317, %v2123_v25   ;;  %v2319_v25 = vrot.slane %v2276_v7, %v5193_v52 }
 0x365   : > { %vm5548_vm9 = vcmp.eq.s32.totalorder %v2319_v25, 1  ;;  %v1257_v49 = vpop.trf.xlu1  ;;  %v1478_v25 = vadd.f32 %v5461_v21, %v5145_v27  ;;  %v1440_v27 = vrot.slane %v1193_v54, %v5193_v52 }
 0x367   : > { %2192 = vperm.xlu1 %4317, %v2125_v31   ;;  %v2412_v31 = vmul.f32 0.2, %v1516_v37 }
 0x369   : > { %v5568_v7 = vpop.trf.xlu1 }
 0x36b   : > { %2195 = vperm.xlu1 %4317, %v2126_v44  }
 0x36f   : > { %2198 = vperm.xlu1 %4317, %v2127_v14  }
 0x373   : > { %2213 = vperm.xlu1 %4317, %v2132_v59  }
 0x377   : > { %2216 = vperm.xlu1 %4317, %v2133_v11  }
 0x37b   : > { %2219 = vperm.xlu1 %4317, %v2134_v17   ;;  %v2444_v17 = vmax.f32 %v1516_v37, %v2412_v31  ;;  %v1480_v31 = vadd.f32 %v1432_v24, %v5131_v3 }
 0x37f   : > { %2222 = vperm.xlu1 %4317, %v2135_v62  }
 0x383   : > { %v5530_v32 = vpop.xlane.xlu0 %2506 }
 0x387   : > { %v5538_v55 = vpop.xlane.xlu0 %2515 }
 0x38f   : > { %v2184_v40 = vpop.permute.xlu0 %2183 }
 0x390   : > { %vm2250_vm8 = vcmp.eq.s32.totalorder %v2184_v40, 1 }
 0x391   : > { %vm2378_vm15 = vmand %vm2250_vm8, %vm5541_vm6 }
 0x392   : > { %v5552_v14 = vsel %vm2378_vm15, %v2442_v47, -1e+30  ;;  %v1513_v47 = vadd.f32 %v5198_v57, %v1478_v25 }
 0x393   : > { %v2190_v59 = vpop.permute.xlu0 %2189  ;;  %v2535_v11 = vsel %vm2492_vm11, %v5552_v14, -inf }
 0x394   : > { %vm2252_vm3 = vcmp.eq.s32.totalorder %v2190_v59, 1  ;;  %2536 = vmax.xlane.f32.xlu0 %v2535_v11  ;;  %v1482_v59 = vadd.f32 %v1436_v1, %v5157_v39  ;;  %v1444_v11 = vrot.slane %v5356_v30, %v5193_v52  ;;  %v2409_v21 = vmul.f32 0.2, %v1513_v47  ;;  %v6599_v30 = vld [vmem:[#allocation63_spill] sm:$0xff] }
 0x395   : > { %vm2380_vm12 = vmand %vm2252_vm3, %vm5548_vm9 }
 0x396   : > { %v5558_v13 = vsel %vm2380_vm12, %v2444_v17, -1e+30  ;;  %v1517_v3 = vadd.f32 %v5198_v57, %v1482_v59  ;;  %v1485_v39 = vadd.f32 %v1444_v11, %v5143_v5  ;;  %v1486_v24 = vadd.f32 %v1444_v11, %v6599_v30  ;;  %v6602_v59 = vld [vmem:[#allocation56_spill] sm:$0xff]  ;;  %v6603_v30 = vld [vmem:[#allocation59_spill] sm:$0xff] }
 0x397   : > { %v2541_v62 = vsel %vm2492_vm11, %v5558_v13, -inf  ;;  %v5584_v17 = vpop.permute.xlu0 %2201  ;;  %vm2106_vm0 = vcmp.ne.f32.partialorder %v6602_v59, 0.0  ;;  %v1448_v11 = vrot.slane %v1257_v49, %v5193_v52 }
 0x398   : > { %2542 = vmax.xlane.f32.xlu0 %v2541_v62  ;;  %v5607_v16 = vadd.f32 %v5198_v57, %v1485_v39  ;;  %v6604_v39 = vld [vmem:[#allocation57_spill] sm:$0xff]  ;;  %vm2256_vm3 = vcmp.eq.s32.totalorder %v5584_v17, 1  ;;  %v1456_v17 = vrot.slane %v5568_v7, %v5193_v52 }
 0x399   : > { %v1484_v15 = vadd.f32 %v1440_v27, %v6604_v39 }
 0x39b   : > { %v5570_v37 = vpop.trf.xlu1  ;;  %v5602_v5 = vpop.permute.xlu0 %2204  ;;  %v1519_v18 = vadd.f32 %v5198_v57, %v1484_v15 }
 0x39c   : > { %vm2257_vm14 = vcmp.eq.s32.totalorder %v5602_v5, 1 }
 0x39d   : > { %v2415_v7 = vmul.f32 0.2, %v1519_v18 }
 0x39f   : > { %v2447_v56 = vmax.f32 %v1519_v18, %v2415_v7 }
 0x3a3   : > { %2512 = vmax.xlane.f32.xlu1 %v2511_v38  ;;  %v1515_v38 = vadd.f32 %v5198_v57, %v1480_v31  ;;  %v2441_v31 = vmax.f32 %v1513_v47, %v2409_v21  ;;  %v2413_v21 = vmul.f32 0.2, %v1517_v3 }
 0x3a5   : > { %v2411_v54 = vmul.f32 0.2, %v1515_v38  ;;  %v2445_v39 = vmax.f32 %v1517_v3, %v2413_v21  ;;  %v2331_v3 = vrot.slane %v2279_v9, %v5193_v52  ;;  %v5664_v21 = vadd.f32 %v5198_v57, %v1490_v8 }
 0x3a7   : > { %2521 = vmax.xlane.f32.xlu1 %v2520_v26  ;;  %v2278_v26 = vsel %vm2102_vm13, 1, %v6560_v58  ;;  %vm5693_vm7 = vcmp.eq.s32.totalorder %v2331_v3, 1 }
 0x3a8   : > { %v2327_v4 = vrot.slane %v2278_v26, %v5193_v52  ;;  %v5613_v26 = vadd.f32 %v5198_v57, %v1486_v24  ;;  %v5626_v24 = vsel %vm2105_vm10, 1, %v6560_v58  ;;  %vm2107_vm10 = vcmp.ne.f32.partialorder %v5330_v20, 0.0 }
 0x3aa   : > { %v5648_v43 = vmul.f32 0.2, %v5613_v26  ;;  %vm5655_vm15 = vcmp.eq.s32.totalorder %v2327_v4, 1 }
 0x3ab   : > { %2527 = vmax.xlane.f32.xlu1 %v2526_v28  ;;  %v6600_v28 = vld [vmem:[#allocation53_spill] sm:$0xff] }
 0x3ac   : > { %v1483_v25 = vadd.f32 %v1440_v27, %v6600_v28  ;;  %v2208_v27 = vpop.permute.xlu0 %2207 }
 0x3ae   : > { %v1518_v49 = vadd.f32 %v5198_v57, %v1483_v25 }
 0x3b0   : > { %v2211_v9 = vpop.permute.xlu0 %2210 }
 0x3d3   : > { %v5572_v50 = vpop.xlane.xlu1 %2497 }
 0x3d7   : > { %v5576_v40 = vpop.xlane.xlu1 %2500 }
 0x3db   : > { %v5586_v62 = vpop.xlane.xlu1 %2509 }
 0x3df   : > { %v2181_v1 = vpop.permute.xlu1 %2180 }
 0x3e0   : > { %vm2249_vm4 = vcmp.eq.s32.totalorder %v2181_v1, 1  ;;  %v1489_v1 = vadd.f32 %v1452_v48, %v6603_v30  ;;  %v5631_v30 = vsel %vm2106_vm0, 1, %v6560_v58  ;;  %v2416_v48 = vmul.f32 0.2, %v5607_v16 }
 0x3e1   : > { %vm2377_vm1 = vmand %vm2249_vm4, %vm5484_vm5  ;;  %vm2258_vm0 = vcmp.eq.s32.totalorder %v2208_v27, 1 }
 0x3e2   : > { %v5610_v47 = vsel %vm2377_vm1, %v2441_v31, -1e+30  ;;  %v2443_v31 = vmax.f32 %v1515_v38, %v2411_v54  ;;  %v2323_v54 = vrot.slane %v2277_v12, %v5193_v52  ;;  %v5651_v0 = vadd.f32 %v5198_v57, %v1489_v1 }
 0x3e3   : > { %v2187_v28 = vpop.permute.xlu1 %2186  ;;  %v2532_v42 = vsel %vm2492_vm11, %v5610_v47, -inf }
 0x3e4   : > { %vm2251_vm5 = vcmp.eq.s32.totalorder %v2187_v28, 1  ;;  %2533 = vmax.xlane.f32.xlu1 %v2532_v42  ;;  %v6607_v42 = vld [vmem:[#allocation55_spill] sm:$0xff]  ;;  %vm5667_vm13 = vcmp.eq.s32.totalorder %v2323_v54, 1  ;;  %v2420_v3 = vmul.f32 0.2, %v5651_v0 }
 0x3e5   : > { %vm2379_vm8 = vmand %vm2251_vm5, %vm5541_vm6  ;;  %v1487_v38 = vadd.f32 %v1448_v11, %v6607_v42  ;;  %v6608_v42 = vld [vmem:[#allocation62_spill] sm:$0xff] }
 0x3e6   : > { %v5641_v25 = vsel %vm2379_vm8, %v2443_v31, -1e+30  ;;  %v2414_v31 = vmul.f32 0.2, %v1518_v49  ;;  %v1488_v12 = vadd.f32 %v1448_v11, %v6608_v42  ;;  %v1460_v11 = vrot.slane %v5369_v61, %v5193_v52  ;;  %vm5708_vm5 = vmand %vm2257_vm14, %vm5655_vm15 }
 0x3e7   : > { %v2193_v59 = vpop.permute.xlu1 %2192  ;;  %v2538_v28 = vsel %vm2492_vm11, %v5641_v25, -inf  ;;  %v1522_v15 = vadd.f32 %v5198_v57, %v1487_v38  ;;  %v2280_v38 = vsel %vm2104_vm2, 1, %v6560_v58  ;;  %vm5719_vm2 = vmand %vm2258_vm0, %vm5693_vm7 }
 0x3e8   : > { %vm2253_vm6 = vcmp.eq.s32.totalorder %v2193_v59, 1  ;;  %2539 = vmax.xlane.f32.xlu1 %v2538_v28  ;;  %v2446_v61 = vmax.f32 %v1518_v49, %v2414_v31  ;;  %v6615_v59 = vld [vmem:[#allocation73_spill] sm:$0xff]  ;;  %v1523_v29 = vadd.f32 %v5198_v57, %v1488_v12  ;;  %v2335_v49 = vrot.slane %v2280_v38, %v5193_v52 }
 0x3e9   : > { %vm2381_vm12 = vmand %vm2253_vm6, %vm5548_vm9  ;;  %v2589_v28 = vsub.f32 %v6615_v59, %v5520_v36  ;;  %v2448_v31 = vmax.f32 %v5607_v16, %v2416_v48  ;;  %v2449_v16 = vmax.f32 %v5613_v26, %v5648_v43  ;;  %v2421_v38 = vmul.f32 0.2, %v5664_v21  ;;  %v5729_v26 = vpop.permute.xlu0 %2225 }
 0x3ea   : > { %v5671_v4 = vsel %vm2381_vm12, %v2445_v39, -1e+30  ;;  %vm5684_vm9 = vmand %vm2256_vm3, %vm5655_vm15  ;;  %v2419_v10 = vmul.f32 0.2, %v1523_v29  ;;  %vm2259_vm6 = vcmp.eq.s32.totalorder %v2211_v9, 1  ;;  %v2590_v43 = vsub.f32 %v5213_v34, %v5572_v50 }
 0x3eb   : > { %v2196_v44 = vpop.permute.xlu1 %2195  ;;  %v2544_v8 = vsel %vm2492_vm11, %v5671_v4, -inf  ;;  %v5725_v5 = vsel %vm5684_vm9, %v2448_v31, -1e+30  ;;  %vm5735_vm3 = vcmp.eq.s32.totalorder %v2335_v49, 1  ;;  %v6626_v31 = vld [vmem:[#allocation64_spill] sm:$0xff]  ;;  %vm5749_vm12 = vmand %vm2259_vm6, %vm5693_vm7  ;;  %v2452_v50 = vmax.f32 %v5651_v0, %v2420_v3 }
 0x3ec   : > { %vm2254_vm4 = vcmp.eq.s32.totalorder %v2196_v44, 1  ;;  %2545 = vmax.xlane.f32.xlu0 %v2544_v8  ;;  %v2418_v44 = vmul.f32 0.2, %v1522_v15  ;;  %v6618_v8 = vld [vmem:[#allocation58_spill] sm:$0xff]  ;;  %v2553_v1 = vsel %vm2492_vm11, %v5725_v5, -inf  ;;  %v2453_v0 = vmax.f32 %v5664_v21, %v2421_v38  ;;  %v6630_v38 = vld [vmem:[#allocation60_spill] sm:$0xff] }
 0x3ed   : > { %vm2382_vm1 = vmand %vm2254_vm4, %vm5667_vm13  ;;  %v1491_v51 = vadd.f32 %v1456_v17, %v6618_v8  ;;  %v2621_v8 = vmul.f32 1.442695, %v2589_v28  ;;  %v2451_v36 = vmax.f32 %v1523_v29, %v2419_v10  ;;  %v2623_v3 = vmul.f32 1.442695, %v2590_v43 }
 0x3ee   : > { %v5699_v42 = vsel %vm2382_vm1, %v2446_v61, -1e+30  ;;  %v6623_v61 = vld [vmem:[#allocation61_spill] sm:$0xff]  ;;  %v2450_v7 = vmax.f32 %v1522_v15, %v2418_v44  ;;  %v1464_v44 = vrot.slane %v5570_v37, %v5193_v52  ;;  %v2343_v43 = vrot.slane %v5631_v30, %v5193_v52 }
 0x3ef   : > { %v2199_v27 = vpop.permute.xlu1 %2198  ;;  %v2547_v12 = vsel %vm2492_vm11, %v5699_v42, -inf  ;;  %v1493_v59 = vadd.f32 %v1460_v11, %v6623_v61  ;;  %v1526_v28 = vadd.f32 %v5198_v57, %v1491_v51  ;;  %v5756_v51 = vsel %vm5708_vm5, %v2449_v16, -1e+30 }
 0x3f0   : > { %vm2255_vm8 = vcmp.eq.s32.totalorder %v2199_v27, 1  ;;  %2548 = vmax.xlane.f32.xlu0 %v2547_v12  ;;  %v1492_v27 = vadd.f32 %v1456_v17, %v6626_v31  ;;  %v5760_v15 = vsel %vm5719_vm2, %v2450_v7, -1e+30  ;;  %v6629_v17 = vld [vmem:[#allocation67_spill] sm:$0xff]  ;;  %4339 = vpow2.f32 %v2621_v8 }
 0x3f1   : > { %vm2383_vm15 = vmand %vm2255_vm8, %vm5667_vm13  ;;  %v1494_v49 = vadd.f32 %v1460_v11, %v6629_v17  ;;  %v5764_v39 = vadd.f32 %v5198_v57, %v1493_v59  ;;  %v2339_v16 = vrot.slane %v5626_v24, %v5193_v52  ;;  %v5776_v11 = vpop.permute.xlu0 %2228  ;;  %v2556_v37 = vsel %vm2492_vm11, %v5756_v51, -inf }
 0x3f2   : > { %v5739_v54 = vsel %vm2383_vm15, %v2447_v56, -1e+30  ;;  %v5774_v48 = vadd.f32 %v5198_v57, %v1492_v27  ;;  %v2559_v61 = vsel %vm2492_vm11, %v5760_v15, -inf  ;;  %v2422_v59 = vmul.f32 0.2, %v1526_v28 }
 0x3f3   : > { %v2214_v9 = vpop.permute.xlu1 %2213  ;;  %v2550_v12 = vsel %vm2492_vm11, %v5739_v54, -inf  ;;  %v5784_v10 = vsel %vm5749_vm12, %v2451_v36, -1e+30  ;;  %v2283_v24 = vsel %vm2107_vm10, 1, %v6560_v58  ;;  %v5792_v29 = vadd.f32 %v5198_v57, %v1494_v49  ;;  %v6631_v58 = vld [vmem:[#allocation75_spill] sm:$0xff] }
 0x3f4   : > { %vm2260_vm13 = vcmp.eq.s32.totalorder %v2214_v9, 1  ;;  %2551 = vmax.xlane.f32.xlu1 %v2550_v12  ;;  %2554 = vmax.xlane.f32.xlu0 %v2553_v1  ;;  %v1495_v8 = vadd.f32 %v1464_v44, %v6630_v38  ;;  %v2424_v7 = vmul.f32 0.2, %v5764_v39  ;;  %v2592_v20 = vsub.f32 %v6631_v58, %v5524_v19 }
 0x3f5   : > { %vm2388_vm9 = vmand %vm2260_vm13, %vm5735_vm3  ;;  %4341 = vpow2.f32 %v2623_v3  ;;  %v2591_v31 = vsub.f32 %v5457_v2, %v5576_v40  ;;  %vm5804_vm10 = vcmp.eq.s32.totalorder %v2339_v16, 1  ;;  %v2347_v9 = vrot.slane %v2283_v24, %v5193_v52  ;;  %v6634_v40 = vld [vmem:[#allocation66_spill] sm:$0xff]  ;;  %v2232_v49 = vpop.permute.xlu0 %2231 }
 0x3f6   : > { %v5789_v21 = vsel %vm2388_vm9, %v2452_v50, -1e+30  ;;  %v2562_v18 = vsel %vm2492_vm11, %v5784_v10, -inf  ;;  %v2423_v1 = vmul.f32 0.2, %v5774_v48  ;;  %v2593_v19 = vsub.f32 %v5384_v6, %v5530_v32 }
 0x3f7   : > { %v2217_v56 = vpop.permute.xlu1 %2216  ;;  %v2565_v30 = vsel %vm2492_vm11, %v5789_v21, -inf  ;;  %v2454_v2 = vmax.f32 %v1526_v28, %v2422_v59  ;;  %v1496_v52 = vadd.f32 %v1464_v44, %v6634_v40  ;;  %v1530_v50 = vadd.f32 %v5198_v57, %v1495_v8 }
 0x3f8   : > { %vm2261_vm14 = vcmp.eq.s32.totalorder %v2217_v56, 1  ;;  %2557 = vmax.xlane.f32.xlu1 %v2556_v37  ;;  %2560 = vmax.xlane.f32.xlu0 %v2559_v61  ;;  %vm5820_vm7 = vcmp.eq.s32.totalorder %v2343_v43, 1  ;;  %vm2264_vm1 = vcmp.eq.s32.totalorder %v5729_v26, 1  ;;  %v2425_v6 = vmul.f32 0.2, %v5792_v29 }
 0x3f9   : > { %vm2389_vm4 = vmand %vm2261_vm14, %vm5735_vm3  ;;  %v2625_v32 = vmul.f32 1.442695, %v2591_v31  ;;  %v2456_v44 = vmax.f32 %v5764_v39, %v2424_v7  ;;  %v2629_v56 = vmul.f32 1.442695, %v2593_v19  ;;  %vm5843_vm8 = vcmp.eq.s32.totalorder %v2347_v9, 1  ;;  %v2235_v43 = vpop.permute.xlu0 %2234 }
 0x3fa   : > { %v5816_v34 = vsel %vm2389_vm4, %v2453_v0, -1e+30  ;;  %v2627_v0 = vmul.f32 1.442695, %v2592_v20  ;;  %v5835_v26 = vpop.eup %4339  ;;  %vm5839_vm2 = vmand %vm2264_vm1, %vm5820_vm7  ;;  %v2455_v39 = vmax.f32 %v5774_v48, %v2423_v1  ;;  %v2596_v59 = vsub.f32 %v5390_v45, %v5538_v55 }
 0x3fb   : > { %v2220_v12 = vpop.permute.xlu1 %2219  ;;  %v2568_v16 = vsel %vm2492_vm11, %v5816_v34, -inf  ;;  %v1531_v24 = vadd.f32 %v5198_v57, %v1496_v52  ;;  %vm2265_vm15 = vcmp.eq.s32.totalorder %v5776_v11, 1  ;;  %v2426_v38 = vmul.f32 0.2, %v1530_v50 }
 0x3fc   : > { %vm2262_vm0 = vcmp.eq.s32.totalorder %v2220_v12, 1  ;;  %2566 = vmax.xlane.f32.xlu0 %v2565_v30  ;;  %2563 = vmax.xlane.f32.xlu1 %v2562_v18  ;;  %vm2266_vm12 = vcmp.eq.s32.totalorder %v2232_v49, 1  ;;  %4343 = vpow2.f32 %v2625_v32  ;;  %v2594_v8 = vsub.f32 %v5469_v23, %v5586_v62  ;;  %vm2393_vm13 = vmand %vm2265_vm15, %vm5820_vm7 }
 0x3fd   : > { %vm2390_vm5 = vmand %vm2262_vm0, %vm5804_vm10  ;;  %v2685_v7 = vsel %vm2492_vm11, %v5835_v26, 0.0  ;;  %4345 = vpow2.f32 %v2627_v0  ;;  %v5866_v55 = vsel %vm5839_vm2, %v2456_v44, -1e+30  ;;  %v2635_v23 = vmul.f32 1.442695, %v2596_v59 }
 0x3fe   : > { %v5828_v28 = vsel %vm2390_vm5, %v2454_v2, -1e+30  ;;  %4347 = vpow2.f32 %v2629_v56  ;;  %v2457_v62 = vmax.f32 %v5792_v29, %v2425_v6  ;;  %vm2394_vm9 = vmand %vm2266_vm12, %vm5843_vm8  ;;  %v2458_v11 = vmax.f32 %v1530_v50, %v2426_v38 }
 0x3ff   : > { %v2223_v36 = vpop.permute.xlu1 %2222  ;;  %v2571_v3 = vsel %vm2492_vm11, %v5828_v28, -inf  ;;  %v5862_v45 = vpop.eup %4341  ;;  %v2427_v58 = vmul.f32 0.2, %v1531_v24  ;;  %vm2267_vm14 = vcmp.eq.s32.totalorder %v2235_v43, 1  ;;  %v2631_v20 = vmul.f32 1.442695, %v2594_v8 }
 0x400   : > { %vm2263_vm6 = vcmp.eq.s32.totalorder %v2223_v36, 1  ;;  %2572 = vmax.xlane.f32.xlu0 %v2571_v3  ;;  %2569 = vmax.xlane.f32.xlu1 %v2568_v16  ;;  %v2688_v31 = vsel %vm2492_vm11, %v5862_v45, 0.0  ;;  %v2577_v27 = vsel %vm2492_vm11, %v5866_v55, -inf  ;;  %v5878_v9 = vsel %vm2393_vm13, %v2457_v62, -1e+30  ;;  %vm2395_vm4 = vmand %vm2267_vm14, %vm5843_vm8  ;;  %v2519_v36 = vpop.xlane.xlu0 %2518 }
 0x401   : > { %vm2391_vm3 = vmand %vm2263_vm6, %vm5804_vm10  ;;  %v5880_v12 = vsel %vm2394_vm9, %v2458_v11, -1e+30  ;;  %4349 = vpow2.f32 %v2635_v23  ;;  %v2459_v29 = vmax.f32 %v1531_v24, %v2427_v58  ;;  %v2580_v30 = vsel %vm2492_vm11, %v5878_v9, -inf }
 0x402   : > { %v5856_v48 = vsel %vm2391_vm3, %v2455_v39, -1e+30  ;;  %4351 = vpow2.f32 %v2631_v20  ;;  %v2583_v18 = vsel %vm2492_vm11, %v5880_v12, -inf  ;;  %v2597_v16 = vsub.f32 %v5482_v22, %v2519_v36 }
 0x403   : > { %v2574_v57 = vsel %vm2492_vm11, %v5856_v48, -inf  ;;  %v5890_v19 = vsel %vm2395_vm4, %v2459_v29, -1e+30  ;;  %vm4570_vm10 = vmmov 0  }
 0x404   : > { %2686 = vadd.xlane.f32.xlu0 %v2685_v7  ;;  %2575 = vmax.xlane.f32.xlu1 %v2574_v57  ;;  %v2586_v50 = vsel %vm2492_vm11, %v5890_v19, -inf  ;;  %v2525_v3 = vpop.xlane.xlu0 %2524  ;;  %v2637_v39 = vmul.f32 1.442695, %v2597_v16 }
 0x405   : > { %v2599_v59 = vsub.f32 %v5493_v60, %v2525_v3 }
 0x406   : > { %v5888_v1 = vpop.eup %4343 }
 0x407   : > { %v5892_v2 = vpop.eup %4345  ;;  %v2691_v52 = vsel %vm2492_vm11, %v5888_v1, 0.0  ;;  %v2641_v7 = vmul.f32 1.442695, %v2599_v59 }
 0x408   : > { %2689 = vadd.xlane.f32.xlu1 %v2688_v31  ;;  %2578 = vmax.xlane.f32.xlu0 %v2577_v27  ;;  %v5894_v40 = vpop.eup %4347  ;;  %v2694_v6 = vsel %vm2492_vm11, %v5892_v2, 0.0  ;;  %v2531_v61 = vpop.xlane.xlu0 %2530 }
 0x409   : > { %v2697_v49 = vsel %vm2492_vm11, %v5894_v40, 0.0  ;;  %v2601_v57 = vsub.f32 %v5499_v53, %v2531_v61 }
 0x40b   : > { %v5900_v17 = vpop.eup %4349 }
 0x40c   : > { %2581 = vmax.xlane.f32.xlu1 %v2580_v30  ;;  %2584 = vmax.xlane.f32.xlu0 %v2583_v18  ;;  %v5906_v32 = vpop.eup %4351  ;;  %v2706_v0 = vsel %vm2492_vm11, %v5900_v17, 0.0 }
 0x40d   : > { %v2700_v44 = vsel %vm2492_vm11, %v5906_v32, 0.0 }
 0x410   : > { %2692 = vadd.xlane.f32.xlu0 %v2691_v52  ;;  %2587 = vmax.xlane.f32.xlu1 %v2586_v50 }
 0x414   : > { %2698 = vadd.xlane.f32.xlu0 %v2697_v49  ;;  %2695 = vadd.xlane.f32.xlu1 %v2694_v6 }
 0x418   : > { %2707 = vadd.xlane.f32.xlu0 %v2706_v0  ;;  %2701 = vadd.xlane.f32.xlu1 %v2700_v44 }
 0x421   : > { %v2537_v43 = vpop.xlane.xlu0 %2536 }
 0x422   : > { %v2603_v11 = vsub.f32 %v5552_v14, %v2537_v43 }
 0x425   : > { %v2543_v58 = vpop.xlane.xlu0 %2542 }
 0x426   : > { %v2605_v31 = vsub.f32 %v5558_v13, %v2543_v58 }
 0x428   : > { %v2653_v29 = vmul.f32 1.442695, %v2605_v31 }
 0x430   : > { %v2513_v56 = vpop.xlane.xlu1 %2512 }
 0x431   : > { %v2595_v37 = vsub.f32 %v5265_v33, %v2513_v56  ;;  %v2645_v33 = vmul.f32 1.442695, %v2601_v57 }
 0x433   : > { %v2633_v24 = vmul.f32 1.442695, %v2595_v37 }
 0x434   : > { %v2522_v38 = vpop.xlane.xlu1 %2521 }
 0x435   : > { %4353 = vpow2.f32 %v2633_v24  ;;  %v2598_v8 = vsub.f32 %v5319_v35, %v2522_v38  ;;  %v2649_v35 = vmul.f32 1.442695, %v2603_v11 }
 0x436   : > { %4355 = vpow2.f32 %v2637_v39 }
 0x437   : > { %v2639_v23 = vmul.f32 1.442695, %v2598_v8 }
 0x438   : > { %v2528_v62 = vpop.xlane.xlu1 %2527 }
 0x439   : > { %4357 = vpow2.f32 %v2639_v23  ;;  %v2600_v22 = vsub.f32 %v5342_v46, %v2528_v62 }
 0x43a   : > { %4359 = vpow2.f32 %v2641_v7 }
 0x43b   : > { %v2643_v60 = vmul.f32 1.442695, %v2600_v22 }
 0x43d   : > { %4361 = vpow2.f32 %v2643_v60 }
 0x43e   : > { %4363 = vpow2.f32 %v2645_v33 }
 0x43f   : > { %v5919_v20 = vpop.eup %4353  ;;  %4365 = vpow2.f32 %v2649_v35 }
 0x440   : > { %v2703_v53 = vsel %vm2492_vm11, %v5919_v20, 0.0  ;;  %v5924_v27 = vpop.eup %4355  ;;  %4367 = vpow2.f32 %v2653_v29 }
 0x441   : > { %2704 = vadd.xlane.f32.xlu1 %v2703_v53  ;;  %v2709_v30 = vsel %vm2492_vm11, %v5924_v27, 0.0 }
 0x443   : > { %v5926_v46 = vpop.eup %4357 }
 0x444   : > { %v2712_v14 = vsel %vm2492_vm11, %v5926_v46, 0.0  ;;  %v5932_v18 = vpop.eup %4359 }
 0x445   : > { %2713 = vadd.xlane.f32.xlu0 %v2712_v14  ;;  %2710 = vadd.xlane.f32.xlu1 %v2709_v30  ;;  %v2715_v50 = vsel %vm2492_vm11, %v5932_v18, 0.0 }
 0x447   : > { %v5934_v13 = vpop.eup %4361 }
 0x448   : > { %v2718_v52 = vsel %vm2492_vm11, %v5934_v13, 0.0  ;;  %v5940_v49 = vpop.eup %4363 }
 0x449   : > { %2719 = vadd.xlane.f32.xlu0 %v2718_v52  ;;  %2716 = vadd.xlane.f32.xlu1 %v2715_v50  ;;  %v2721_v6 = vsel %vm2492_vm11, %v5940_v49, 0.0  ;;  %v5944_v0 = vpop.eup %4365 }
 0x44a   : > { %v2727_v44 = vsel %vm2492_vm11, %v5944_v0, 0.0  ;;  %v5948_v36 = vpop.eup %4367 }
 0x44b   : > { %v2733_v3 = vsel %vm2492_vm11, %v5948_v36, 0.0 }
 0x44d   : > { %2722 = vadd.xlane.f32.xlu1 %v2721_v6 }
 0x451   : > { %2728 = vadd.xlane.f32.xlu1 %v2727_v44 }
 0x455   : > { %2734 = vadd.xlane.f32.xlu1 %v2733_v3 }
 0x471   : > { %v2534_v16 = vpop.xlane.xlu1 %2533 }
 0x472   : > { %v2602_v56 = vsub.f32 %v5610_v47, %v2534_v16 }
 0x474   : > { %v2647_v37 = vmul.f32 1.442695, %v2602_v56 }
 0x475   : > { %v2540_v61 = vpop.xlane.xlu1 %2539 }
 0x476   : > { %4369 = vpow2.f32 %v2647_v37  ;;  %v2604_v39 = vsub.f32 %v5641_v25, %v2540_v61 }
 0x478   : > { %v2651_v59 = vmul.f32 1.442695, %v2604_v39 }
 0x479   : > { %v2546_v24 = vpop.xlane.xlu0 %2545 }
 0x47a   : > { %4371 = vpow2.f32 %v2651_v59  ;;  %v2606_v38 = vsub.f32 %v5671_v4, %v2546_v24 }
 0x47c   : > { %v2655_v8 = vmul.f32 1.442695, %v2606_v38 }
 0x47d   : > { %v2549_v43 = vpop.xlane.xlu0 %2548 }
 0x47e   : > { %4373 = vpow2.f32 %v2655_v8  ;;  %v2607_v7 = vsub.f32 %v5699_v42, %v2549_v43 }
 0x480   : > { %v5956_v57 = vpop.eup %4369  ;;  %v2657_v23 = vmul.f32 1.442695, %v2607_v7 }
 0x481   : > { %v2552_v62 = vpop.xlane.xlu1 %2551  ;;  %v5958_v47 = vpop.xlane.xlu0 %2554  ;;  %v2724_v22 = vsel %vm2492_vm11, %v5956_v57, 0.0 }
 0x482   : > { %4375 = vpow2.f32 %v2657_v23  ;;  %v2608_v25 = vsub.f32 %v5739_v54, %v2552_v62  ;;  %2725 = vadd.xlane.f32.xlu0 %v2724_v22  ;;  %v6642_v22 = vld [vmem:[#allocation43_spill] sm:$0xff] }
 0x484   : > { %v5963_v33 = vpop.eup %4371  ;;  %v2659_v4 = vmul.f32 1.442695, %v2608_v25 }
 0x485   : > { %v2558_v11 = vpop.xlane.xlu1 %2557  ;;  %v2561_v60 = vpop.xlane.xlu0 %2560  ;;  %v2730_v42 = vsel %vm2492_vm11, %v5963_v33, 0.0 }
 0x486   : > { %4377 = vpow2.f32 %v2659_v4  ;;  %v2610_v58 = vsub.f32 %v5756_v51, %v2558_v11  ;;  %v2611_v35 = vsub.f32 %v5760_v15, %v2561_v60  ;;  %2731 = vadd.xlane.f32.xlu0 %v2730_v42  ;;  %v6643_v42 = vld [vmem:[#allocation44_spill] sm:$0xff] }
 0x488   : > { %v5969_v31 = vpop.eup %4373  ;;  %v2663_v53 = vmul.f32 1.442695, %v2610_v58  ;;  %v2665_v29 = vmul.f32 1.442695, %v2611_v35 }
 0x489   : > { %v5971_v54 = vpop.xlane.xlu1 %2563  ;;  %v5973_v14 = vpop.xlane.xlu0 %2566  ;;  %v2736_v30 = vsel %vm2492_vm11, %v5969_v31, 0.0 }
 0x48a   : > { %4379 = vpow2.f32 %v2663_v53  ;;  %2737 = vadd.xlane.f32.xlu0 %v2736_v30 }
 0x48b   : > { %4381 = vpow2.f32 %v2665_v29  ;;  %v6644_v29 = vld [vmem:[#allocation47_spill] sm:$0xff] }
 0x48c   : > { %v5977_v52 = vpop.eup %4375 }
 0x48d   : > { %v2570_v51 = vpop.xlane.xlu1 %2569  ;;  %v2573_v50 = vpop.xlane.xlu0 %2572  ;;  %v2739_v15 = vsel %vm2492_vm11, %v5977_v52, 0.0 }
 0x48e   : > { %v2614_v6 = vsub.f32 %v5816_v34, %v2570_v51  ;;  %v2615_v44 = vsub.f32 %v5828_v28, %v2573_v50  ;;  %2740 = vadd.xlane.f32.xlu1 %v2739_v15  ;;  %v6645_v15 = vld [vmem:[#allocation51_spill] sm:$0xff] }
 0x490   : > { %v5983_v3 = vpop.eup %4377  ;;  %v2671_v16 = vmul.f32 1.442695, %v2614_v6  ;;  %v2673_v56 = vmul.f32 1.442695, %v2615_v44  ;;  %v6646_v6 = vld [vmem:[#allocation48_spill] sm:$0xff] }
 0x491   : > { %v5985_v37 = vpop.xlane.xlu1 %2575  ;;  %v2687_v61 = vpop.xlane.xlu0 %2686  ;;  %v2742_v39 = vsel %vm2492_vm11, %v5983_v3, 0.0  ;;  %v6647_v44 = vld [vmem:[#allocation52_spill] sm:$0xff] }
 0x492   : > { %4383 = vpow2.f32 %v2671_v16  ;;  %2743 = vadd.xlane.f32.xlu0 %v2742_v39  ;;  %v6648_v16 = vld [vmem:[#allocation41_spill] sm:$0xff]  ;;  %v6653_v39 = vld [vmem:[#allocation50_spill] sm:$0xff] }
 0x493   : > { %4385 = vpow2.f32 %v2673_v56  ;;  %v6488_v56 = vmov 0.0  }
 0x494   : > { %v5989_v59 = vpop.eup %4379  ;;  %4387 = vrcp.f32 %v2687_v61  ;;  %4166 = vmatprep.subr.bf16.mxu1 %v6488_v56  ;;  %4226 = vmatprep.subr.bf16.mxu0 %v6488_v56 }
 0x495   : > { %v2690_v34 = vpop.xlane.xlu1 %2689  ;;  %v2748_v28 = vsel %vm2492_vm11, %v5989_v59, 0.0  ;;  %v5993_v24 = vpop.eup %4381  ;;  %4168 = vmatprep.mubr.msk.bf16.mxu1 %vm4570_vm10, %v6488_v56  ;;  %4228 = vmatprep.mubr.msk.bf16.mxu0 %vm4570_vm10, %v6488_v56  ;;  %v6673_v56 = vld [vmem:[#allocation74_spill] sm:$0xff] }
 0x496   : > { %2749 = vadd.xlane.f32.xlu0 %v2748_v28  ;;  %4389 = vrcp.f32 %v2690_v34  ;;  %v2751_v38 = vsel %vm2492_vm11, %v5993_v24, 0.0  ;;  %v2612_v28 = vsub.f32 %v5784_v10, %v5971_v54 }
 0x49a   : > { %2752 = vadd.xlane.f32.xlu0 %v2751_v38  ;;  %v6654_v38 = vld [vmem:[#allocation68_spill] sm:$0xff] }
 0x49c   : > { %v5997_v8 = vpop.eup %4383 }
 0x49d   : > { %v5999_v43 = vpop.eup %4385  ;;  %v2760_v7 = vsel %vm2492_vm11, %v5997_v8, 0.0 }
 0x49e   : > { %6641 = vst [vmem:[#allocation63_spill] sm:$0xff] %v5999_v43  ;;  %v4388_v23 = vpop.eup %4387  ;;  %2761 = vadd.xlane.f32.xlu0 %v2760_v7  ;;  %v2763_v11 = vsel %vm2492_vm11, %v5999_v43, 0.0  ;;  %v2667_v7 = vmul.f32 1.442695, %v2612_v28 }
 0x49f   : > { %v2813_v62 = vmul.f32 %v4388_v23, %v2687_v61  ;;  %2948 = vperm.xlu1 %4317, %v6642_v22   ;;  %v6652_v61 = vld [vmem:[#allocation46_spill] sm:$0xff] }
 0x4a0   : > { %v4390_v25 = vpop.eup %4389  ;;  %v6655_v22 = vld [vmem:[#allocation78_spill] sm:$0xff] }
 0x4a1   : > { %v2845_v4 = vsub.f32 2.0, %v2813_v62  ;;  %v2814_v60 = vmul.f32 %v4390_v25, %v2690_v34  ;;  %v2582_v62 = vpop.xlane.xlu1 %2581 }
 0x4a2   : > { %2764 = vadd.xlane.f32.xlu0 %v2763_v11 }
 0x4a3   : > { %2958 = vperm.xlu1 %4317, %v6643_v42   ;;  %v2877_v58 = vmul.f32 %v4388_v23, %v2845_v4  ;;  %v2846_v35 = vsub.f32 2.0, %v2814_v60  ;;  %v2613_v23 = vsub.f32 %v5789_v21, %v5973_v14  ;;  %v6656_v4 = vld [vmem:[#allocation79_spill] sm:$0xff]  ;;  %v6657_v42 = vld [vmem:[#allocation81_spill] sm:$0xff] }
 0x4a5   : > { %v2878_v53 = vmul.f32 %v4390_v25, %v2846_v35  ;;  %v6009_v30 = vmul.f32 %v5835_v26, %v2877_v58  ;;  %v6649_v26 = vld [vmem:[#allocation42_spill] sm:$0xff]  ;;  %v2669_v25 = vmul.f32 1.442695, %v2613_v23  ;;  %v2588_v11 = vpop.xlane.xlu1 %2587 }
 0x4a6   : > { %v2620_v14 = vsub.f32 %v5890_v19, %v2588_v11  ;;  %v6663_v11 = vld [vmem:[#allocation82_spill] sm:$0xff] }
 0x4a7   : > { %2968 = vperm.xlu1 %4317, %v6644_v29   ;;  %v6012_v51 = vmul.f32 %v5862_v45, %v2878_v53  ;;  %v6650_v45 = vld [vmem:[#allocation45_spill] sm:$0xff]  ;;  %v2618_v53 = vsub.f32 %v5878_v9, %v2582_v62 }
 0x4a9   : > { %v6058_v29 = vpop.xlane.xlu1 %2695 }
 0x4ab   : > { %2978 = vperm.xlu1 %4317, %v6645_v15  }
 0x4af   : > { %2988 = vperm.xlu1 %4317, %v6646_v6  }
 0x4b3   : > { %2998 = vperm.xlu1 %4317, %v6647_v44   ;;  %v2679_v44 = vmul.f32 1.442695, %v2618_v53  ;;  %v6666_v53 = vld [vmem:[#allocation84_spill] sm:$0xff] }
 0x4b7   : > { %3008 = vperm.xlu1 %4317, %v5189_v63   ;;  %v6651_v63 = vld [vmem:[#allocation49_spill] sm:$0xff] }
 0x4b8   : > { %2943 = vperm.xlu0 %4318, %v6648_v16  }
 0x4bb   : > { %3018 = vperm.xlu1 %4317, %v5399_v41   ;;  %v2609_v41 = vsub.f32 %v5725_v5, %v5958_v47  ;;  %v2616_v5 = vsub.f32 %v5856_v48, %v5985_v37  ;;  %v2579_v47 = vpop.xlane.xlu0 %2578  ;;  %v2683_v37 = vmul.f32 1.442695, %v2620_v14 }
 0x4bc   : > { %2953 = vperm.xlu0 %4318, %v6649_v26   ;;  %v2617_v54 = vsub.f32 %v5866_v55, %v2579_v47 }
 0x4bd   : > { %v2661_v34 = vmul.f32 1.442695, %v2609_v41  ;;  %v2675_v10 = vmul.f32 1.442695, %v2616_v5 }
 0x4be   : > { %v2677_v21 = vmul.f32 1.442695, %v2617_v54 }
 0x4bf   : > { %4391 = vpow2.f32 %v2661_v34  ;;  %v2585_v19 = vpop.xlane.xlu0 %2584 }
 0x4c0   : > { %2963 = vperm.xlu0 %4318, %v6650_v45   ;;  %4393 = vpow2.f32 %v2667_v7  ;;  %v2619_v16 = vsub.f32 %v5880_v12, %v2585_v19  ;;  %v6667_v19 = vld [vmem:[#allocation69_spill] sm:$0xff] }
 0x4c1   : > { %4395 = vpow2.f32 %v2669_v25 }
 0x4c2   : > { %4397 = vpow2.f32 %v2675_v10  ;;  %v2681_v9 = vmul.f32 1.442695, %v2619_v16  ;;  %v6668_v16 = vld [vmem:[#allocation86_spill] sm:$0xff] }
 0x4c3   : > { %4399 = vpow2.f32 %v2677_v21  ;;  %v6079_v34 = vpop.xlane.xlu0 %2692  ;;  %v6664_v21 = vld [vmem:[#allocation70_spill] sm:$0xff] }
 0x4c4   : > { %2973 = vperm.xlu0 %4318, %v6651_v63   ;;  %4401 = vpow2.f32 %v2683_v37  ;;  %v6069_v63 = vpop.xlane.xlu1 %2701  ;;  %v6665_v37 = vld [vmem:[#allocation83_spill] sm:$0xff] }
 0x4c5   : > { %4403 = vpow2.f32 %v2679_v44 }
 0x4c6   : > { %4405 = vpow2.f32 %v2681_v9  ;;  %v6669_v9 = vld [vmem:[#allocation85_spill] sm:$0xff] }
 0x4c7   : > { %v6089_v62 = vpop.xlane.xlu0 %2698 }
 0x4c8   : > { %2983 = vperm.xlu0 %4318, %v6652_v61  }
 0x4c9   : > { %v6045_v60 = vpop.eup %4391 }
 0x4ca   : > { %v2745_v58 = vsel %vm2492_vm11, %v6045_v60, 0.0  ;;  %v6051_v48 = vpop.eup %4393 }
 0x4cb   : > { %v2754_v55 = vsel %vm2492_vm11, %v6051_v48, 0.0  ;;  %v6055_v35 = vpop.eup %4395  ;;  %v6095_v5 = vpop.xlane.xlu0 %2707 }
 0x4cc   : > { %2993 = vperm.xlu0 %4318, %v6653_v39   ;;  %v2757_v15 = vsel %vm2492_vm11, %v6055_v35, 0.0  ;;  %v6062_v6 = vpop.eup %4397 }
 0x4cd   : > { %v2766_v26 = vsel %vm2492_vm11, %v6062_v6, 0.0  ;;  %v6067_v45 = vpop.eup %4399 }
 0x4ce   : > { %6658 = vst [vmem:[#allocation53_spill] sm:$0xff] %v6067_v45  ;;  %v2769_v61 = vsel %vm2492_vm11, %v6067_v45, 0.0  ;;  %v6073_v41 = vpop.eup %4401  ;;  %v6075_v39 = vpop.xlane.xlu1 %2704 }
 0x4cf   : > { %6659 = vst [vmem:[#allocation54_spill] sm:$0xff] %v6073_v41  ;;  %v2778_v12 = vsel %vm2492_vm11, %v6073_v41, 0.0 }
 0x4d0   : > { %3003 = vperm.xlu0 %4318, %v6654_v38   ;;  %v6083_v38 = vpop.eup %4403 }
 0x4d1   : > { %6660 = vst [vmem:[#allocation56_spill] sm:$0xff] %v6083_v38  ;;  %v2772_v7 = vsel %vm2492_vm11, %v6083_v38, 0.0  ;;  %v6087_v23 = vpop.eup %4405 }
 0x4d2   : > { %v6081_v28 = vpop.xlane.xlu1 %2710  ;;  %6661 = vst [vmem:[#allocation59_spill] sm:$0xff] %v6087_v23  ;;  %v2775_v25 = vsel %vm2492_vm11, %v6087_v23, 0.0  ;;  %v6100_v10 = vpop.xlane.xlu0 %2713 }
 0x4d4   : > { %3013 = vperm.xlu0 %4318, %v6655_v22  }
 0x4d6   : > { %v6091_v22 = vpop.xlane.xlu1 %2716 }
 0x4d8   : > { %3023 = vperm.xlu0 %4318, %v6656_v4   ;;  %v6662_v4 = vld [vmem:[#allocation80_spill] sm:$0xff] }
 0x4da   : > { %v6097_v47 = vpop.xlane.xlu1 %2722 }
 0x4dc   : > { %3033 = vperm.xlu0 %4318, %v6657_v42   ;;  %v6103_v42 = vpop.xlane.xlu0 %2719 }
 0x4de   : > { %v2729_v54 = vpop.xlane.xlu1 %2728 }
 0x4df   : > { %2746 = vadd.xlane.f32.xlu1 %v2745_v58  ;;  %4407 = vrcp.f32 %v2729_v54 }
 0x4e2   : > { %v2735_v14 = vpop.xlane.xlu1 %2734 }
 0x4e3   : > { %2755 = vadd.xlane.f32.xlu1 %v2754_v55  ;;  %4409 = vrcp.f32 %v2735_v14 }
 0x4e7   : > { %2758 = vadd.xlane.f32.xlu1 %v2757_v15 }
 0x4e9   : > { %v4408_v15 = vpop.eup %4407 }
 0x4eb   : > { %2767 = vadd.xlane.f32.xlu1 %v2766_v26  ;;  %v2827_v26 = vmul.f32 %v4408_v15, %v2729_v54 }
 0x4ef   : > { %2770 = vadd.xlane.f32.xlu1 %v2769_v61  ;;  %v4410_v61 = vpop.eup %4409 }
 0x4f3   : > { %2779 = vadd.xlane.f32.xlu1 %v2778_v12 }
 0x4fb   : > { %2773 = vadd.xlane.f32.xlu0 %v2772_v7  ;;  %v6670_v7 = vld [vmem:[#allocation72_spill] sm:$0xff] }
 0x4ff   : > { %2776 = vadd.xlane.f32.xlu0 %v2775_v25  ;;  %v2859_v25 = vsub.f32 2.0, %v2827_v26  ;;  %v6674_v26 = vld [vmem:[#allocation88_spill] sm:$0xff] }
 0x501   : > { %v2891_v50 = vmul.f32 %v4408_v15, %v2859_v25  ;;  %v6675_v15 = vld [vmem:[#allocation87_spill] sm:$0xff] }
 0x504   : > { %3028 = vperm.xlu1 %4317, %v6662_v4   ;;  %v2829_v4 = vmul.f32 %v4410_v61, %v2735_v14  ;;  %v6121_v14 = vmul.f32 %v5944_v0, %v2891_v50 }
 0x508   : > { %3038 = vperm.xlu1 %4317, %v6663_v11   ;;  %v6671_v11 = vld [vmem:[#allocation71_spill] sm:$0xff] }
 0x50c   : > { %3048 = vperm.xlu1 %4317, %v6664_v21  }
 0x50f   : > { %v6106_v58 = vpop.xlane.xlu0 %2725 }
 0x510   : > { %3053 = vperm.xlu1 %4317, %v6665_v37  }
 0x513   : > { %v2732_v55 = vpop.xlane.xlu0 %2731 }
 0x514   : > { %4411 = vrcp.f32 %v2732_v55  ;;  %3058 = vperm.xlu1 %4317, %v6666_v53  }
 0x515   : > { %3043 = vperm.xlu0 %4318, %v6667_v19   ;;  %v6672_v19 = vld [vmem:[#allocation76_spill] sm:$0xff] }
 0x517   : > { %v2738_v44 = vpop.xlane.xlu0 %2737 }
 0x518   : > { %4413 = vrcp.f32 %v2738_v44  ;;  %3068 = vperm.xlu1 %4317, %v6668_v16   ;;  %v2861_v16 = vsub.f32 2.0, %v2829_v4 }
 0x519   : > { %3063 = vperm.xlu0 %4318, %v6669_v9  }
 0x51b   : > { %v2741_v12 = vpop.xlane.xlu1 %2740 }
 0x51c   : > { %4415 = vrcp.f32 %v2741_v12  ;;  %3078 = vperm.xlu1 %4317, %v6670_v7  }
 0x51d   : > { %3073 = vperm.xlu0 %4318, %v6671_v11  }
 0x51e   : > { %v4412_v21 = vpop.eup %4411 }
 0x51f   : > { %v2828_v37 = vmul.f32 %v4412_v21, %v2732_v55  ;;  %v2744_v53 = vpop.xlane.xlu0 %2743  ;;  %v2893_v55 = vmul.f32 %v4410_v61, %v2861_v16 }
 0x520   : > { %4417 = vrcp.f32 %v2744_v53  ;;  %3088 = vperm.xlu1 %4317, %v6672_v19  }
 0x521   : > { %v2860_v54 = vsub.f32 2.0, %v2828_v37  ;;  %3083 = vperm.xlu0 %4318, %v6673_v56   ;;  %4419 = vrcp.f32 %v6058_v29  ;;  %v6133_v0 = vmul.f32 %v5948_v36, %v2893_v55  ;;  %v6679_v56 = vld [vmem:[#allocation9_spill] sm:$0xff] }
 0x522   : > { %v4414_v9 = vpop.eup %4413  ;;  %4421 = vrcp.f32 %v6079_v34 }
 0x523   : > { %v2892_v41 = vmul.f32 %v4412_v21, %v2860_v54  ;;  %v2830_v45 = vmul.f32 %v4414_v9, %v2738_v44  ;;  %v6117_v23 = vpop.xlane.xlu0 %2749  ;;  %4423 = vrcp.f32 %v6069_v63 }
 0x524   : > { %3098 = vperm.xlu1 %4317, %v6674_v26   ;;  %4425 = vrcp.f32 %v6089_v62 }
 0x525   : > { %v6124_v7 = vmul.f32 %v5963_v33, %v2892_v41  ;;  %v2862_v11 = vsub.f32 2.0, %v2830_v45  ;;  %3093 = vperm.xlu0 %4318, %v6675_v15   ;;  %4427 = vrcp.f32 %v6075_v39  ;;  %v6678_v41 = vld [vmem:[#allocation11_spill] sm:$0xff] }
 0x526   : > { %v4416_v25 = vpop.eup %4415  ;;  %4429 = vrcp.f32 %v6095_v5 }
 0x527   : > { %v2894_v4 = vmul.f32 %v4414_v9, %v2862_v11  ;;  %v2831_v44 = vmul.f32 %v4416_v25, %v2741_v12  ;;  %v6129_v21 = vpop.xlane.xlu0 %2752  ;;  %v2949_v9 = vpop.permute.xlu1 %2948  ;;  %4431 = vrcp.f32 %v6081_v28 }
 0x528   : > { %4433 = vrcp.f32 %v6100_v10 }
 0x529   : > { %v6136_v50 = vmul.f32 %v5969_v31, %v2894_v4  ;;  %v2863_v33 = vsub.f32 2.0, %v2831_v44  ;;  %v6677_v4 = vld [vmem:[#allocation10_spill] sm:$0xff]  ;;  %4435 = vrcp.f32 %v6091_v22 }
 0x52a   : > { %v4418_v45 = vpop.eup %4417  ;;  %4437 = vrcp.f32 %v6103_v42 }
 0x52b   : > { %v2832_v61 = vmul.f32 %v4418_v45, %v2744_v53  ;;  %v2895_v37 = vmul.f32 %v4416_v25, %v2863_v33  ;;  %v6141_v19 = vpop.xlane.xlu0 %2761  ;;  %v4420_v54 = vpop.eup %4419  ;;  %v6676_v25 = vld [vmem:[#allocation12_spill] sm:$0xff]  ;;  %4439 = vrcp.f32 %v6106_v58 }
 0x52c   : > { %v4422_v55 = vpop.eup %4421  ;;  %v2816_v11 = vmul.f32 %v4420_v54, %v6058_v29  ;;  %4441 = vrcp.f32 %v6097_v47 }
 0x52d   : > { %v2864_v12 = vsub.f32 2.0, %v2832_v61  ;;  %v6145_v36 = vmul.f32 %v5977_v52, %v2895_v37  ;;  %v2815_v15 = vmul.f32 %v4422_v55, %v6079_v34  ;;  %v4424_v61 = vpop.eup %4423 }
 0x52e   : > { %v2848_v33 = vsub.f32 2.0, %v2816_v11  ;;  %v4426_v53 = vpop.eup %4425  ;;  %v2818_v43 = vmul.f32 %v4424_v61, %v6069_v63 }
 0x52f   : > { %v2896_v16 = vmul.f32 %v4418_v45, %v2864_v12  ;;  %v6153_v26 = vpop.xlane.xlu0 %2764  ;;  %v2959_v45 = vpop.permute.xlu1 %2958  ;;  %v2847_v12 = vsub.f32 2.0, %v2815_v15  ;;  %v6681_v15 = vpack.c.bf16 %v6012_v51, %v6009_v30 }
 0x530   : > { %v3104_v29 = vmul.f32 %v2959_v45, %v6678_v41  ;;  %v2880_v38 = vmul.f32 %v4420_v54, %v2848_v33  ;;  %v4428_v63 = vpop.eup %4427  ;;  %v2850_v54 = vsub.f32 2.0, %v2818_v43  ;;  %v6683_v33 = vld [vmem:[#allocation16_spill] sm:$0xff] }
 0x531   : > { %v6148_v31 = vmul.f32 %v5983_v3, %v2896_v16  ;;  %v3102_v3 = vmul.f32 %v2949_v9, %v6676_v25  ;;  %v6680_v9 = vmov 0.0   ;;  %v2879_v11 = vmul.f32 %v4422_v55, %v2847_v12 }
 0x532   : > { %v2817_v25 = vmul.f32 %v4426_v53, %v6089_v62  ;;  %v6682_v62 = vld [vmem:[#allocation15_spill] sm:$0xff]  ;;  %v2882_v12 = vmul.f32 %v4424_v61, %v2850_v54 }
 0x533   : > { %v2969_v55 = vpop.permute.xlu1 %2968  ;;  %v2911_v30 = vmul.f32 %v5888_v1, %v2879_v11 }
 0x534   : > { %v2849_v51 = vsub.f32 2.0, %v2817_v25  ;;  %v3106_v45 = vmul.f32 %v2969_v55, %v6683_v33 }
 0x537   : > { %v2944_v52 = vpop.permute.xlu0 %2943  ;;  %v2979_v61 = vpop.permute.xlu1 %2978 }
 0x538   : > { %v3101_v44 = vmul.f32 %v2944_v52, %v6677_v4  ;;  %v4430_v4 = vpop.eup %4429 }
 0x539   : > { %v4432_v1 = vpop.eup %4431 }
 0x53a   : > { %v3149_v37 = vpack.c.bf16 %v3102_v3, %v3101_v44  ;;  %v2819_v44 = vmul.f32 %v4428_v63, %v6075_v39  ;;  %v2914_v39 = vmul.f32 %v5906_v32, %v2882_v12  ;;  %v2821_v54 = vmul.f32 %v4432_v1, %v6081_v28 }
 0x53b   : > { %v2954_v16 = vpop.permute.xlu0 %2953 }
 0x53c   : > { %v3103_v34 = vmul.f32 %v2954_v16, %v6679_v56  ;;  %4167 = vmatpush3.bf16.msra.mxu1 %v3149_v37  ;;  %v2912_v56 = vmul.f32 %v5892_v2, %v2880_v38  ;;  %v2820_v16 = vmul.f32 %v4430_v4, %v6095_v5  ;;  %v2881_v2 = vmul.f32 %v4426_v53, %v2849_v51  ;;  %v4434_v5 = vpop.eup %4433 }
 0x53d   : > { %4172 = vmatprep.subr.bf16.mxu1 %v6680_v9  ;;  %v2851_v38 = vsub.f32 2.0, %v2819_v44  ;;  %v2822_v55 = vmul.f32 %v4434_v5, %v6100_v10  ;;  %v2989_v44 = vpop.permute.xlu1 %2988 }
 0x53e   : > { %v3150_v52 = vpack.c.bf16 %v3104_v29, %v3103_v34  ;;  %v3134_v37 = vpack.c.bf16 %v2912_v56, %v2911_v30  ;;  %v2852_v53 = vsub.f32 2.0, %v2820_v16  ;;  %v6684_v34 = vld [vmem:[#allocation13_spill] sm:$0xff]  ;;  %v2913_v11 = vmul.f32 %v5894_v40, %v2881_v2  ;;  %v4436_v40 = vpop.eup %4435 }
 0x53f   : > { %4169 = vmatmul.mubr.msk.bf16.vlgmr.msra.gmra.mrb[0].mxu1 %vm2492_vm11, %v6681_v15  ;;  %v2964_v41 = vpop.permute.xlu0 %2963  ;;  %v2883_v25 = vmul.f32 %v4428_v63, %v2851_v38  ;;  %v6685_v15 = vld [vmem:[#allocation14_spill] sm:$0xff]  ;;  %v2853_v63 = vsub.f32 2.0, %v2821_v54  ;;  %v2854_v51 = vsub.f32 2.0, %v2822_v55  ;;  %v4438_v28 = vpop.eup %4437 }
 0x540   : > { %4173 = vmatpush3.bf16.msra.mxu1 %v3150_v52  ;;  %4174 = vmatprep.mubr.msk.bf16.mxu1 %vm4570_vm10, %v6680_v9  ;;  %v3105_v3 = vmul.f32 %v2964_v41, %v6682_v62  ;;  %v3108_v41 = vmul.f32 %v2979_v61, %v6685_v15  ;;  %v3135_v56 = vpack.c.bf16 %v2914_v39, %v2913_v11 }
 0x541   : > { %4178 = vmatprep.subr.bf16.mxu1 %v6680_v9  ;;  %v2884_v62 = vmul.f32 %v4430_v4, %v2852_v53  ;;  %v2915_v30 = vmul.f32 %v5919_v20, %v2883_v25  ;;  %v6686_v4 = vld [vmem:[#allocation23_spill] sm:$0xff]  ;;  %v2885_v12 = vmul.f32 %v4432_v1, %v2853_v63  ;;  %v2886_v16 = vmul.f32 %v4434_v5, %v2854_v51  ;;  %v2999_v1 = vpop.permute.xlu1 %2998  ;;  %v6688_v5 = vld [vmem:[#allocation17_spill] sm:$0xff]  ;;  %v6691_v63 = vld [vmem:[#allocation36_spill] sm:$0xff] }
 0x542   : > { %v3151_v29 = vpack.c.bf16 %v3106_v45, %v3105_v3  ;;  %v6687_v45 = vld [vmem:[#allocation24_spill] sm:$0xff]  ;;  %v2824_v2 = vmul.f32 %v4438_v28, %v6103_v42 }
 0x543   : > { %v2974_v43 = vpop.permute.xlu0 %2973  ;;  %v2916_v10 = vmul.f32 %v5900_v17, %v2884_v62  ;;  %v2917_v17 = vmul.f32 %v5924_v27, %v2885_v12  ;;  %v2918_v39 = vmul.f32 %v5926_v46, %v2886_v16 }
 0x544   : > { %v3107_v52 = vmul.f32 %v2974_v43, %v6684_v34  ;;  %v2856_v53 = vsub.f32 2.0, %v2824_v2 }
 0x545   : > { %v3136_v20 = vpack.c.bf16 %v2916_v10, %v2915_v30  ;;  %v3137_v25 = vpack.c.bf16 %v2918_v39, %v2917_v17  ;;  %v6690_v30 = vld [vmem:[#allocation35_spill] sm:$0xff] }
 0x546   : > { %v3152_v3 = vpack.c.bf16 %v3108_v41, %v3107_v52  ;;  %v6689_v52 = vld [vmem:[#allocation18_spill] sm:$0xff]  ;;  %v2888_v41 = vmul.f32 %v4438_v28, %v2856_v53 }
 0x547   : > { %4175 = vmatmul.mubr.msk.bf16.vlgmr.msra.gmra.mrb[4].mxu1 %vm2492_vm11, %v3134_v37  ;;  %v2984_v32 = vpop.permute.xlu0 %2983  ;;  %v3110_v37 = vmul.f32 %v2989_v44, %v6687_v45  ;;  %v3112_v11 = vmul.f32 %v2999_v1, %v6689_v52 }
 0x548   : > { %4179 = vmatpush3.bf16.msra.mxu1 %v3151_v29  ;;  %4180 = vmatprep.mubr.msk.bf16.mxu1 %vm4570_vm10, %v6680_v9  ;;  %v3109_v33 = vmul.f32 %v2984_v32, %v6686_v4  ;;  %v2823_v29 = vmul.f32 %v4436_v40, %v6091_v22  ;;  %v4440_v22 = vpop.eup %4439  ;;  %v2920_v62 = vmul.f32 %v5934_v13, %v2888_v41  ;;  %v3009_v32 = vpop.permute.xlu1 %3008  ;;  %v6692_v13 = vld [vmem:[#allocation29_spill] sm:$0xff] }
 0x549   : > { %4184 = vmatprep.subr.bf16.mxu1 %v6680_v9  ;;  %v4442_v34 = vpop.eup %4441 }
 0x54a   : > { %v3153_v43 = vpack.c.bf16 %v3110_v37, %v3109_v33  ;;  %v2855_v61 = vsub.f32 2.0, %v2823_v29  ;;  %v2825_v27 = vmul.f32 %v4442_v34, %v6097_v47  ;;  %v3114_v47 = vmul.f32 %v3009_v32, %v6691_v63  ;;  %v6693_v37 = vld [vmem:[#allocation30_spill] sm:$0xff] }
 0x54b   : > { %v2994_v38 = vpop.permute.xlu0 %2993 }
 0x54c   : > { %v3111_v42 = vmul.f32 %v2994_v38, %v6688_v5  ;;  %v2887_v15 = vmul.f32 %v4436_v40, %v2855_v61  ;;  %v2857_v40 = vsub.f32 2.0, %v2825_v27  ;;  %v3019_v33 = vpop.permute.xlu1 %3018  ;;  %v6694_v38 = vpack.c.bf16 %v6124_v7, %v6121_v14  ;;  %v6697_v27 = vld [vmem:[#allocation19_spill] sm:$0xff] }
 0x54d   : > { %v3116_v12 = vmul.f32 %v3019_v33, %v6693_v37 }
 0x54e   : > { %v3154_v54 = vpack.c.bf16 %v3112_v11, %v3111_v42  ;;  %v2919_v55 = vmul.f32 %v5932_v18, %v2887_v15  ;;  %v2889_v10 = vmul.f32 %v4442_v34, %v2857_v40  ;;  %v6696_v42 = vld [vmem:[#allocation22_spill] sm:$0xff] }
 0x54f   : > { %4181 = vmatmul.mubr.msk.bf16.vlgmr.msra.gmra.mrb[8].mxu1 %vm2492_vm11, %v3135_v56  ;;  %v2826_v56 = vmul.f32 %v4440_v22, %v6106_v58  ;;  %v3004_v46 = vpop.permute.xlu0 %3003 }
 0x550   : > { %4185 = vmatpush3.bf16.msra.mxu1 %v3152_v3  ;;  %4186 = vmatprep.mubr.msk.bf16.mxu1 %vm4570_vm10, %v6680_v9  ;;  %v3113_v58 = vmul.f32 %v3004_v46, %v6690_v30  ;;  %v3138_v51 = vpack.c.bf16 %v2920_v62, %v2919_v55  ;;  %v2921_v45 = vmul.f32 %v5940_v49, %v2889_v10  ;;  %v6698_v55 = vld [vmem:[#allocation21_spill] sm:$0xff] }
 0x551   : > { %4190 = vmatprep.subr.bf16.mxu1 %v6680_v9  ;;  %v2858_v3 = vsub.f32 2.0, %v2826_v56 }
 0x552   : > { %v3155_v28 = vpack.c.bf16 %v3114_v47, %v3113_v58  ;;  %v6699_v47 = vpack.c.bf16 %v6136_v50, %v6133_v0 }
 0x553   : > { %v2890_v44 = vmul.f32 %v4440_v22, %v2858_v3  ;;  %v3014_v4 = vpop.permute.xlu0 %3013  ;;  %v6695_v22 = vld [vmem:[#allocation20_spill] sm:$0xff] }
 0x555   : > { %v2922_v18 = vmul.f32 %v5956_v57, %v2890_v44 }
 0x557   : > { %4187 = vmatmul.mubr.msk.bf16.vlgmr.msra.gmra.mrb[12].mxu1 %vm2492_vm11, %v3136_v20  ;;  %v3115_v20 = vmul.f32 %v3014_v4, %v6692_v13  ;;  %v3139_v29 = vpack.c.bf16 %v2922_v18, %v2921_v45  ;;  %v3024_v39 = vpop.permute.xlu0 %3023 }
 0x558   : > { %4191 = vmatpush3.bf16.msra.mxu1 %v3153_v43  ;;  %4192 = vmatprep.mubr.msk.bf16.mxu1 %vm4570_vm10, %v6680_v9  ;;  %v3117_v5 = vmul.f32 %v3024_v39, %v6695_v22  ;;  %v6701_v39 = vld [vmem:[#allocation28_spill] sm:$0xff] }
 0x559   : > { %4196 = vmatprep.subr.bf16.mxu1 %v6680_v9  ;;  %v3156_v2 = vpack.c.bf16 %v3116_v12, %v3115_v20 }
 0x55b   : > { %v3034_v14 = vpop.permute.xlu0 %3033 }
 0x55c   : > { %v3119_v46 = vmul.f32 %v3034_v14, %v6697_v27  ;;  %v6702_v14 = vld [vmem:[#allocation25_spill] sm:$0xff] }
 0x55f   : > { %4193 = vmatmul.mubr.msk.bf16.vlgmr.msra.gmra.mrb[16].mxu1 %vm2492_vm11, %v3137_v25 }
 0x560   : > { %4197 = vmatpush3.bf16.msra.mxu1 %v3154_v54  ;;  %4198 = vmatprep.mubr.msk.bf16.mxu1 %vm4570_vm10, %v6680_v9 }
 0x561   : > { %4202 = vmatprep.subr.bf16.mxu1 %v6680_v9 }
 0x567   : > { %4199 = vmatmul.mubr.msk.bf16.vlgmr.msra.gmra.mrb[20].mxu1 %vm2492_vm11, %v3138_v51 }
 0x568   : > { %4203 = vmatpush3.bf16.msra.mxu1 %v3155_v28  ;;  %4204 = vmatprep.mubr.msk.bf16.mxu1 %vm4570_vm10, %v6680_v9 }
 0x569   : > { %4208 = vmatprep.subr.bf16.mxu1 %v6680_v9 }
 0x56c   : > { %v2747_v16 = vpop.xlane.xlu1 %2746 }
 0x56d   : > { %4443 = vrcp.f32 %v2747_v16 }
 0x56f   : > { %4205 = vmatmul.mubr.msk.bf16.vlgmr.msra.gmra.mrb[24].mxu1 %vm2492_vm11, %v3139_v29 }
 0x570   : > { %4209 = vmatpush3.bf16.msra.mxu1 %v3156_v2  ;;  %v2756_v43 = vpop.xlane.xlu1 %2755  ;;  %4210 = vmatprep.mubr.msk.bf16.mxu1 %vm4570_vm10, %v6680_v9 }
 0x571   : > { %4214 = vmatprep.subr.bf16.mxu1 %v6680_v9  ;;  %4445 = vrcp.f32 %v2756_v43 }
 0x572   : > { %4447 = vrcp.f32 %v6117_v23 }
 0x573   : > { %4449 = vrcp.f32 %v6129_v21 }
 0x574   : > { %v2759_v57 = vpop.xlane.xlu1 %2758 }
 0x575   : > { %4451 = vrcp.f32 %v2759_v57 }
 0x577   : > { %4211 = vmatmul.mubr.msk.bf16.vlgmr.msra.gmra.mrb[28].mxu1 %vm2492_vm11, %v6694_v38  ;;  %v4444_v53 = vpop.eup %4443  ;;  %v6700_v38 = vpack.c.bf16 %v6148_v31, %v6145_v36 }
 0x578   : > { %v2768_v49 = vpop.xlane.xlu1 %2767  ;;  %4216 = vmatprep.mubr.msk.bf16.mxu1 %vm4570_vm10, %v6680_v9  ;;  %v2833_v15 = vmul.f32 %v4444_v53, %v2747_v16 }
 0x579   : > { %4453 = vrcp.f32 %v2768_v49 }
 0x57a   : > { %4455 = vrcp.f32 %v6141_v19  ;;  %v2865_v58 = vsub.f32 2.0, %v2833_v15 }
 0x57b   : > { %v4446_v1 = vpop.eup %4445  ;;  %4457 = vrcp.f32 %v6153_v26 }
 0x57c   : > { %v6242_v17 = vpop.xlane.xlu1 %2770  ;;  %v4448_v52 = vpop.eup %4447  ;;  %v2836_v41 = vmul.f32 %v4446_v1, %v2756_v43  ;;  %v2897_v0 = vmul.f32 %v4444_v53, %v2865_v58 }
 0x57d   : > { %v4450_v11 = vpop.eup %4449  ;;  %v2834_v3 = vmul.f32 %v4448_v52, %v6117_v23 }
 0x57e   : > { %v2835_v32 = vmul.f32 %v4450_v11, %v6129_v21  ;;  %v2868_v40 = vsub.f32 2.0, %v2836_v41  ;;  %v2929_v16 = vmul.f32 %v6045_v60, %v2897_v0 }
 0x57f   : > { %v4452_v44 = vpop.eup %4451  ;;  %v2866_v23 = vsub.f32 2.0, %v2834_v3  ;;  %v6706_v3 = vld [vmem:[#allocation32_spill] sm:$0xff] }
 0x580   : > { %v6245_v61 = vpop.xlane.xlu1 %2779  ;;  %v2867_v21 = vsub.f32 2.0, %v2835_v32  ;;  %v2900_v50 = vmul.f32 %v4446_v1, %v2868_v40  ;;  %v2837_v4 = vmul.f32 %v4452_v44, %v2759_v57  ;;  %v6704_v1 = vld [vmem:[#allocation26_spill] sm:$0xff] }
 0x581   : > { %v2898_v13 = vmul.f32 %v4448_v52, %v2866_v23 }
 0x582   : > { %v2899_v20 = vmul.f32 %v4450_v11, %v2867_v21  ;;  %v2932_v29 = vmul.f32 %v6051_v48, %v2900_v50  ;;  %v2869_v2 = vsub.f32 2.0, %v2837_v4 }
 0x583   : > { %v4454_v28 = vpop.eup %4453  ;;  %v2930_v48 = vmul.f32 %v5989_v59, %v2898_v13 }
 0x584   : > { %v3029_v7 = vpop.permute.xlu1 %3028  ;;  %v4456_v10 = vpop.eup %4455  ;;  %v2840_v45 = vmul.f32 %v4454_v28, %v2768_v49  ;;  %v2931_v22 = vmul.f32 %v5993_v24, %v2899_v20 }
 0x585   : > { %v3118_v34 = vmul.f32 %v3029_v7, %v6696_v42  ;;  %v4458_v18 = vpop.eup %4457  ;;  %v2838_v37 = vmul.f32 %v4456_v10, %v6141_v19  ;;  %v6703_v7 = vld [vmem:[#allocation27_spill] sm:$0xff] }
 0x586   : > { %v2839_v12 = vmul.f32 %v4458_v18, %v6153_v26  ;;  %v2872_v36 = vsub.f32 2.0, %v2840_v45  ;;  %v3144_v15 = vpack.c.bf16 %v2932_v29, %v2931_v22  ;;  %v6711_v29 = vld [vmem:[#allocation38_spill] sm:$0xff]  ;;  %v6715_v22 = vld [vmem:[#allocation59_spill] sm:$0xff] }
 0x587   : > { %v3157_v25 = vpack.c.bf16 %v3118_v34, %v3117_v5  ;;  %v2870_v5 = vsub.f32 2.0, %v2838_v37 }
 0x588   : > { %v3039_v56 = vpop.permute.xlu1 %3038  ;;  %v6251_v54 = vpop.xlane.xlu0 %2773  ;;  %v2871_v11 = vsub.f32 2.0, %v2839_v12  ;;  %v2904_v59 = vmul.f32 %v4454_v28, %v2872_v36  ;;  %v6707_v28 = vld [vmem:[#allocation33_spill] sm:$0xff] }
 0x589   : > { %v3120_v62 = vmul.f32 %v3039_v56, %v6698_v55  ;;  %4215 = vmatpush3.bf16.msra.mxu1 %v3157_v25  ;;  %4459 = vrcp.f32 %v6251_v54  ;;  %v3143_v25 = vpack.c.bf16 %v2930_v48, %v2929_v16  ;;  %v6705_v55 = vld [vmem:[#allocation34_spill] sm:$0xff]  ;;  %v2902_v58 = vmul.f32 %v4456_v10, %v2870_v5  ;;  %v6710_v16 = vld [vmem:[#allocation40_spill] sm:$0xff]  ;;  %v6716_v5 = vld [vmem:[#allocation53_spill] sm:$0xff] }
 0x58a   : > { %4220 = vmatprep.subr.bf16.mxu1 %v6680_v9 }
 0x58b   : > { %v3158_v30 = vpack.c.bf16 %v3120_v62, %v3119_v46  ;;  %v2901_v46 = vmul.f32 %v4452_v44, %v2869_v2 }
 0x58c   : > { %v3049_v63 = vpop.permute.xlu1 %3048  ;;  %4217 = vmatmul.mubr.msk.bf16.vlgmr.msra.gmra.mrb[32].mxu1 %vm2492_vm11, %v6699_v47  ;;  %v2777_v51 = vpop.xlane.xlu0 %2776 }
 0x58d   : > { %4461 = vrcp.f32 %v2777_v51  ;;  %4221 = vmatpush3.bf16.msra.mxu1 %v3158_v30  ;;  %4222 = vmatprep.mubr.msk.bf16.mxu1 %vm4570_vm10, %v6680_v9  ;;  %v3122_v53 = vmul.f32 %v3049_v63, %v6701_v39  ;;  %v2903_v63 = vmul.f32 %v4458_v18, %v2871_v11  ;;  %v2933_v10 = vmul.f32 %v6055_v35, %v2901_v46  ;;  %v6709_v18 = vld [vmem:[#allocation63_spill] sm:$0xff] }
 0x58e   : > { %4463 = vrcp.f32 %v6242_v17  ;;  %4232 = vmatprep.subr.bf16.mxu1 %v6680_v9 }
 0x58f   : > { %4465 = vrcp.f32 %v6245_v61  ;;  %v2935_v13 = vmul.f32 %v6709_v18, %v2903_v63 }
 0x590   : > { %v3054_v33 = vpop.permute.xlu1 %3053 }
 0x591   : > { %v3123_v49 = vmul.f32 %v3054_v33, %v6702_v14  ;;  %v2934_v33 = vmul.f32 %v5997_v8, %v2902_v58 }
 0x593   : > { %v4460_v60 = vpop.eup %4459  ;;  %v3145_v2 = vpack.c.bf16 %v2934_v33, %v2933_v10 }
 0x594   : > { %v3059_v43 = vpop.permute.xlu1 %3058  ;;  %4223 = vmatmul.mubr.msk.bf16.vlgmr.msra.gmra.mrb[36].mxu1 %vm2492_vm11, %v6700_v38  ;;  %v3044_v57 = vpop.permute.xlu0 %3043  ;;  %v2842_v24 = vmul.f32 %v4460_v60, %v6251_v54 }
 0x595   : > { %v3124_v19 = vmul.f32 %v3059_v43, %v6703_v7  ;;  %v3121_v26 = vmul.f32 %v3044_v57, %v6704_v1  ;;  %4234 = vmatprep.mubr.msk.bf16.mxu1 %vm4570_vm10, %v6680_v9  ;;  %v6712_v7 = vld [vmem:[#allocation39_spill] sm:$0xff]  ;;  %v6713_v1 = vld [vmem:[#allocation37_spill] sm:$0xff] }
 0x596   : > { %v2874_v50 = vsub.f32 2.0, %v2842_v24 }
 0x597   : > { %v4462_v31 = vpop.eup %4461  ;;  %v3160_v42 = vpack.c.bf16 %v3124_v19, %v3123_v49  ;;  %v3159_v34 = vpack.c.bf16 %v3122_v53, %v3121_v26 }
 0x598   : > { %v4464_v52 = vpop.eup %4463  ;;  %v3069_v41 = vpop.permute.xlu1 %3068  ;;  %v2843_v30 = vmul.f32 %v4462_v31, %v2777_v51  ;;  %v6708_v51 = vld [vmem:[#allocation31_spill] sm:$0xff]  ;;  %v2906_v38 = vmul.f32 %v4460_v60, %v2874_v50  ;;  %v6714_v60 = vld [vmem:[#allocation56_spill] sm:$0xff] }
 0x599   : > { %v3064_v56 = vpop.permute.xlu0 %3063  ;;  %v4466_v27 = vpop.eup %4465  ;;  %v3126_v62 = vmul.f32 %v3069_v41, %v6705_v55  ;;  %4227 = vmatpush3.bf16.msra.mxu0 %v3159_v34  ;;  %4233 = vmatpush3.bf16.msra.mxu1 %v3160_v42  ;;  %v2841_v47 = vmul.f32 %v4464_v52, %v6242_v17  ;;  %v2936_v17 = vmul.f32 %v6062_v6, %v2904_v59  ;;  %v6717_v34 = vld [vmem:[#allocation54_spill] sm:$0xff] }
 0x59a   : > { %v3125_v32 = vmul.f32 %v3064_v56, %v6706_v3  ;;  %4238 = vmatprep.subr.bf16.mxu0 %v6680_v9  ;;  %4244 = vmatprep.subr.bf16.mxu1 %v6680_v9  ;;  %v2844_v44 = vmul.f32 %v4466_v27, %v6245_v61  ;;  %v2875_v61 = vsub.f32 2.0, %v2843_v30  ;;  %v2938_v48 = vmul.f32 %v6714_v60, %v2906_v38 }
 0x59b   : > { %v2873_v20 = vsub.f32 2.0, %v2841_v47  ;;  %v3146_v43 = vpack.c.bf16 %v2936_v17, %v2935_v13 }
 0x59c   : > { %v3161_v40 = vpack.c.bf16 %v3126_v62, %v3125_v32  ;;  %v3079_v23 = vpop.permute.xlu1 %3078  ;;  %4229 = vmatmul.mubr.msk.bf16.vlgmr.msra.gmra.mrb[32].mxu0 %vm2492_vm11, %v3143_v25  ;;  %4235 = vmatmul.mubr.msk.bf16.vlgmr.msra.gmra.mrb[40].mxu1 %vm2492_vm11, %v3144_v15  ;;  %v2876_v45 = vsub.f32 2.0, %v2844_v44  ;;  %v2907_v57 = vmul.f32 %v4462_v31, %v2875_v61 }
 0x59d   : > { %v3074_v21 = vpop.permute.xlu0 %3073  ;;  %v3128_v54 = vmul.f32 %v3079_v23, %v6707_v28  ;;  %4240 = vmatprep.mubr.msk.bf16.mxu0 %vm4570_vm10, %v6680_v9  ;;  %4246 = vmatprep.mubr.msk.bf16.mxu1 %vm4570_vm10, %v6680_v9  ;;  %v2905_v53 = vmul.f32 %v4464_v52, %v2873_v20 }
 0x59e   : > { %v3127_v0 = vmul.f32 %v3074_v21, %v6708_v51  ;;  %4239 = vmatpush3.bf16.msra.mxu0 %v3161_v40  ;;  %v2908_v8 = vmul.f32 %v4466_v27, %v2876_v45  ;;  %v2939_v36 = vmul.f32 %v6715_v22, %v2907_v57 }
 0x59f   : > { %4250 = vmatprep.subr.bf16.mxu0 %v6680_v9  ;;  %v2937_v42 = vmul.f32 %v6716_v5, %v2905_v53 }
 0x5a0   : > { %v3162_v4 = vpack.c.bf16 %v3128_v54, %v3127_v0  ;;  %v3089_v37 = vpop.permute.xlu1 %3088  ;;  %v2940_v52 = vmul.f32 %v6717_v34, %v2908_v8 }
 0x5a1   : > { %v3084_v12 = vpop.permute.xlu0 %3083  ;;  %v3130_v35 = vmul.f32 %v3089_v37, %v6710_v16  ;;  %v3147_v11 = vpack.c.bf16 %v2938_v48, %v2937_v42 }
 0x5a2   : > { %v3129_v6 = vmul.f32 %v3084_v12, %v6711_v29  ;;  %4245 = vmatpush3.bf16.msra.mxu1 %v3162_v4  ;;  %v3148_v25 = vpack.c.bf16 %v2940_v52, %v2939_v36 }
 0x5a3   : > { %4256 = vmatprep.subr.bf16.mxu1 %v6680_v9 }
 0x5a4   : > { %v3163_v39 = vpack.c.bf16 %v3130_v35, %v3129_v6  ;;  %v3099_v14 = vpop.permute.xlu1 %3098  ;;  %4241 = vmatmul.mubr.msk.bf16.vlgmr.msra.gmra.mrb[36].mxu0 %vm2492_vm11, %v3145_v2 }
 0x5a5   : > { %4247 = vmatmul.mubr.msk.bf16.vlgmr.msra.gmra.mrb[44].mxu1 %vm2492_vm11, %v3146_v43  ;;  %v3094_v49 = vpop.permute.xlu0 %3093  ;;  %v3132_v19 = vmul.f32 %v3099_v14, %v6712_v7  ;;  %4252 = vmatprep.mubr.msk.bf16.mxu0 %vm4570_vm10, %v6680_v9 }
 0x5a6   : > { %v3131_v26 = vmul.f32 %v3094_v49, %v6713_v1  ;;  %4251 = vmatpush3.bf16.msra.mxu0 %v3163_v39  ;;  %4258 = vmatprep.mubr.msk.bf16.mxu1 %vm4570_vm10, %v6680_v9 }
 0x5a8   : > { %v3164_v31 = vpack.c.bf16 %v3132_v19, %v3131_v26 }
 0x5aa   : > { %4257 = vmatpush3.bf16.msra.mxu1 %v3164_v31 }
 0x5ac   : > { %4253 = vmatmul.mubr.msk.bf16.vlgmr.msra.gmra.mrb[40].mxu0 %vm2492_vm11, %v3147_v11 }
 0x5ad   : > { %4259 = vmatmul.mubr.msk.bf16.vlgmr.msra.gmra.mrb[48].mxu1 %vm2492_vm11, %v3148_v25 }
 0x612   : > { %v3202_v15 = vpop.f32.mrb[0].mxu1 }
 0x613   : > { %3869 = vst [vmem:[%s6322_s13] sm:$0xff] %v3202_v15  ;;  %v4170_v9 = vpop.f32.mrb[1].mxu1 }
 0x614   : > { %v3205_v41 = vpop.f32.mrb[2].mxu1 }
 0x615   : > { %3870 = vst [vmem:[%s6322_s13 + $0x8] sm:$0xff] %v3205_v41  ;;  %v4171_v56 = vpop.f32.mrb[3].mxu1 }
 0x61a   : > { %v3246_v27 = vpop.f32.mrb[4].mxu1 }
 0x61b   : > { %3871 = vst [vmem:[%s6322_s13 + $0x10] sm:$0xff] %v3246_v27  ;;  %v4176_v46 = vpop.f32.mrb[5].mxu1 }
 0x61c   : > { %v3249_v55 = vpop.f32.mrb[6].mxu1 }
 0x61d   : > { %3872 = vst [vmem:[%s6322_s13 + $0x18] sm:$0xff] %v3249_v55  ;;  %v4177_v62 = vpop.f32.mrb[7].mxu1 }
 0x622   : > { %v3290_v3 = vpop.f32.mrb[8].mxu1 }
 0x623   : > { %3873 = vst [vmem:[%s6322_s13 + $0x20] sm:$0xff] %v3290_v3  ;;  %v4182_v32 = vpop.f32.mrb[9].mxu1 }
 0x624   : > { %v3293_v59 = vpop.f32.mrb[10].mxu1 }
 0x625   : > { %3874 = vst [vmem:[%s6322_s13 + $0x28] sm:$0xff] %v3293_v59  ;;  %v4183_v24 = vpop.f32.mrb[11].mxu1 }
 0x62a   : > { %v3334_v30 = vpop.f32.mrb[12].mxu1 }
 0x62b   : > { %3875 = vst [vmem:[%s6322_s13 + $0x30] sm:$0xff] %v3334_v30  ;;  %v4188_v58 = vpop.f32.mrb[13].mxu1 }
 0x62c   : > { %v3337_v40 = vpop.f32.mrb[14].mxu1 }
 0x62d   : > { %3876 = vst [vmem:[%s6322_s13 + $0x38] sm:$0xff] %v3337_v40  ;;  %v4189_v63 = vpop.f32.mrb[15].mxu1 }
 0x632   : > { %v3378_v47 = vpop.f32.mrb[16].mxu1 }
 0x633   : > { %3877 = vst [vmem:[%s6322_s13 + $0x40] sm:$0xff] %v3378_v47  ;;  %v4194_v44 = vpop.f32.mrb[17].mxu1 }
 0x634   : > { %v3381_v23 = vpop.f32.mrb[18].mxu1 }
 0x635   : > { %3878 = vst [vmem:[%s6322_s13 + $0x48] sm:$0xff] %v3381_v23  ;;  %v4195_v21 = vpop.f32.mrb[19].mxu1 }
 0x63a   : > { %v3422_v28 = vpop.f32.mrb[20].mxu1 }
 0x63b   : > { %3879 = vst [vmem:[%s6322_s13 + $0x50] sm:$0xff] %v3422_v28  ;;  %v4200_v54 = vpop.f32.mrb[21].mxu1 }
 0x63c   : > { %v3425_v51 = vpop.f32.mrb[22].mxu1 }
 0x63d   : > { %3880 = vst [vmem:[%s6322_s13 + $0x58] sm:$0xff] %v3425_v51  ;;  %v4201_v0 = vpop.f32.mrb[23].mxu1 }
 0x642   : > { %v3466_v10 = vpop.f32.mrb[24].mxu1 }
 0x643   : > { %3881 = vst [vmem:[%s6322_s13 + $0x60] sm:$0xff] %v3466_v10  ;;  %v4206_v17 = vpop.f32.mrb[25].mxu1 }
 0x644   : > { %v3469_v50 = vpop.f32.mrb[26].mxu1 }
 0x645   : > { %3882 = vst [vmem:[%s6322_s13 + $0x68] sm:$0xff] %v3469_v50  ;;  %v4207_v61 = vpop.f32.mrb[27].mxu1 }
 0x64a   : > { %v3510_v4 = vpop.f32.mrb[28].mxu1 }
 0x64b   : > { %3883 = vst [vmem:[%s6322_s13 + $0x70] sm:$0xff] %v3510_v4  ;;  %v4212_v33 = vpop.f32.mrb[29].mxu1 }
 0x64c   : > { %v3513_v18 = vpop.f32.mrb[30].mxu1 }
 0x64d   : > { %3884 = vst [vmem:[%s6322_s13 + $0x78] sm:$0xff] %v3513_v18  ;;  %v4213_v13 = vpop.f32.mrb[31].mxu1 }
 0x65f   : > { %v3554_v20 = vpop.f32.mrb[32].mxu1 }
 0x660   : > { %3885 = vst [vmem:[%s6322_s13 + $0x80] sm:$0xff] %v3554_v20  ;;  %v4218_v45 = vpop.f32.mrb[33].mxu1 }
 0x661   : > { %v3557_v37 = vpop.f32.mrb[34].mxu1 }
 0x662   : > { %3886 = vst [vmem:[%s6322_s13 + $0x88] sm:$0xff] %v3557_v37  ;;  %v4219_v12 = vpop.f32.mrb[35].mxu1 }
 0x667   : > { %v3598_v16 = vpop.f32.mrb[36].mxu1 }
 0x668   : > { %3887 = vst [vmem:[%s6322_s13 + $0x90] sm:$0xff] %v3598_v16  ;;  %v4224_v35 = vpop.f32.mrb[37].mxu1 }
 0x669   : > { %v3601_v29 = vpop.f32.mrb[38].mxu1 }
 0x66a   : > { %3888 = vst [vmem:[%s6322_s13 + $0x98] sm:$0xff] %v3601_v29  ;;  %v4225_v6 = vpop.f32.mrb[39].mxu1 }
 0x66f   : > { %v3642_v2 = vpop.f32.mrb[32].mxu0  ;;  %v3686_v43 = vpop.f32.mrb[40].mxu1 }
 0x670   : > { %3889 = vst [vmem:[%s6322_s13 + $0xa0] sm:$0xff] %v3642_v2  ;;  %3891 = vst [vmem:[%s6322_s13 + $0xb0] sm:$0xff] %v3686_v43  ;;  %v4230_v38 = vpop.f32.mrb[33].mxu0  ;;  %v4236_v57 = vpop.f32.mrb[41].mxu1 }
 0x671   : > { %v3645_v39 = vpop.f32.mrb[34].mxu0  ;;  %v3689_v53 = vpop.f32.mrb[42].mxu1 }
 0x672   : > { %3890 = vst [vmem:[%s6322_s13 + $0xa8] sm:$0xff] %v3645_v39  ;;  %3892 = vst [vmem:[%s6322_s13 + $0xb8] sm:$0xff] %v3689_v53  ;;  %v4231_v8 = vpop.f32.mrb[35].mxu0  ;;  %v4237_v14 = vpop.f32.mrb[43].mxu1 }
 0x677   : > { %v3730_v49 = vpop.f32.mrb[36].mxu0 }
 0x678   : > { %v3774_v7 = vpop.f32.mrb[44].mxu1  ;;  %3893 = vst [vmem:[%s6322_s13 + $0xc0] sm:$0xff] %v3730_v49  ;;  %v4242_v19 = vpop.f32.mrb[37].mxu0 }
 0x679   : > { %3895 = vst [vmem:[%s6322_s13 + $0xd0] sm:$0xff] %v3774_v7  ;;  %v4248_v1 = vpop.f32.mrb[45].mxu1  ;;  %v3733_v26 = vpop.f32.mrb[38].mxu0 }
 0x67a   : > { %v3777_v60 = vpop.f32.mrb[46].mxu1  ;;  %3894 = vst [vmem:[%s6322_s13 + $0xc8] sm:$0xff] %v3733_v26  ;;  %v4243_v48 = vpop.f32.mrb[39].mxu0 }
 0x67b   : > { %3896 = vst [vmem:[%s6322_s13 + $0xd8] sm:$0xff] %v3777_v60  ;;  %v4249_v22 = vpop.f32.mrb[47].mxu1 }
 0x67f   : > { %v3818_v36 = vpop.f32.mrb[40].mxu0 }
 0x680   : > { %v3862_v31 = vpop.f32.mrb[48].mxu1  ;;  %3897 = vst [vmem:[%s6322_s13 + $0xe0] sm:$0xff] %v3818_v36  ;;  %v4254_v5 = vpop.f32.mrb[41].mxu0 }
 0x681   : > { %3899 = vst [vmem:[%s6322_s13 + $0xf0] sm:$0xff] %v3862_v31  ;;  %v4260_v42 = vpop.f32.mrb[49].mxu1  ;;  %v3821_v34 = vpop.f32.mrb[42].mxu0 }
 0x682   : > { %v3865_v52 = vpop.f32.mrb[50].mxu1  ;;  %3898 = vst [vmem:[%s6322_s13 + $0xe8] sm:$0xff] %v3821_v34  ;;  %v4255_v11 = vpop.f32.mrb[43].mxu0 }
 0x683   : > { %3900 = vst [vmem:[%s6322_s13 + $0xf8] sm:$0xff] %v3865_v52  ;;  %v4261_v25 = vpop.f32.mrb[51].mxu1 }
 0x684   : > { %4510 = shalt.err (!%p4507_p4)
}
 0x685   : > { %s4511_s25 = scalar_lea.hbm %s6357_s12, 4096  ;;  %s4515_s19 = scalar_lea.hbm %s6414_s7, 8192 }
 0x686   : > { %p4512_p5 = scmp.ne.s32.totalorder %s6357_s12, %s4511_s25  ;;  %p4516_p1 = scmp.lt.u32.totalorder %s6357_s12, %s6414_s7 }
 0x687   : > { %p4517_p3 = scmp.lt.u32.totalorder %s4515_s19, %s4511_s25  ;;  %p4519_p11 = scmp.lt.u32.totalorder %s4511_s25, %s6357_s12 }
 0x688   : > { %p4513_p7 = pnand %p4512_p5, %p6718_p12 }
 0x689   : > { %p4518_p6 = por %p4517_p3, %p4516_p1 }
 0x68a   : > { %p4514_p9 = pneg %p4513_p7 }
 0x68b   : > { %p4520_p13 = por %p4519_p11, %p4518_p6 }
 0x68d   : > { %p4521_p8 = pnand %p4520_p13, %p4514_p9 }
 0x68f   : > { %4524 = shalt.err (!%p4521_p8)
}
 0x690   : > { %s4572_s30 = smov 128   ;;  %s4573_s9 = smov 8  }
 0x691   : > { %4266 = dma.vmem_to_hbm [thread:$0]  (%p6718_p12), %s6359_s22, 4096, %s6357_s12, %s3902_s6, %s4572_s30, %s4572_s30, %s4573_s9  }
 0x692 PF: > { %s3931_s17 = sand.u32 1, %s4551_s26   ;;  %p6719_p10 = scmp.ne.s32.totalorder %s6498_s15, 0 }
 0x693   : > { %p6720_p0 = scmp.ge.s32.totalorder %s4563_s29, 2  ;;  %s3932_s21 = scalar_lea.sflag [#allocation5], %s3931_s17 }
 0x695   : > { %p4273_p2 = pnand %p6720_p0, %p6719_p10 }
 0x697   : > { %4546 = dma.done.wait (!%p4273_p2), %s3932_s21, 4096  }
 0x698   : > { %4548 = vsyncadd (!%p4273_p2), %s3932_s21, 4294963200  ;;  %p22_p4 = scmp.ge.s32.totalorder %s4642_s8, 4   ;;  %s6721_s26 = smov %s4555_s27 }
 0x699   : > { %s6722_s27 = smov %s4559_s28  ;;  %s6723_s28 = smov %s4654_s11 }
 0x69a   : > { %s6724_s29 = smov %s4642_s8  ;;  %24 = sbr.rel (!%p22_p4) target bundleno = 8 (0x8), region = 96 }
 0x6a1   :  { %3937 = vsyncpa [#allocation4], 1 }
 0x6a2   :  { %3939 = vsyncpa [#allocation4 + $0x1], 1 }
 0x6a3   :  { %3940 = vsyncpa [#allocation5], 1 }
 0x6a4   :  { %3942 = vsyncpa [#allocation5 + $0x1], 1 }

</bundles_post_ra>
